<compile_context>
chip_gen: v6e
topology: v6e:2x2x1
jax: 0.10.0
libtpu: 0.0.40
codegen_flags: <defaults>
</compile_context>

<pallas_src>
import functools

import jax
import jax.numpy as jnp
from jax.experimental import pallas as pl
from jax.experimental.pallas import tpu as pltpu

FEAT = 512                    # per-backbone feature dim (hardcoded in the PyTorch module)
N_MODELS = 3
INPUT_DIM = FEAT * N_MODELS   # 1536
GATING_DIM = 512


# ----------------------------------------------------------------------------------------
# Kernel 1: synthetic backbones (1x1 conv -> ReLU -> global average pool) for all 3 planes,
# accumulated over spatial tiles into a per-batch (1536, 1) fused-feature column.
# ----------------------------------------------------------------------------------------
def _feature_kernel(
    # inputs
    x0_ref, x1_ref, x2_ref,                                   # (1, C, S_TILE) f32
    wb0_ref, bb0_ref, wb1_ref, bb1_ref, wb2_ref, bb2_ref,     # (512, C) bf16 / (512, 1) f32
    # outputs
    fused_ref,                                                # (1, 1536, 1) f32
    # scratch
    acc_ref,                                                  # (1536, 1) f32 accumulator
    *,
    inv_s,                                                    # python float: 1 / (H*W)
):
    s_step = pl.program_id(1)

    @pl.when(s_step == 0)
    def _init():
        acc_ref[...] = jnp.zeros_like(acc_ref)

    def accumulate(x_ref, w_ref, b_ref, m):
        # Cast to bf16 in-kernel (only C x S_TILE elements) so the wrapper never spends an
        # extra HBM pass converting the full input tensors.
        x = x_ref[0].astype(jnp.bfloat16)                     # (C, S_TILE)
        # 1x1 conv over channels: (FEAT, C) @ (C, S_TILE) -> (FEAT, S_TILE), f32 MXU accum.
        h = jnp.dot(w_ref[...], x, preferred_element_type=jnp.float32)
        h = jnp.maximum(h + b_ref[...], 0.0)                  # bias (FEAT,1) bcast + ReLU (VPU)
        # Partial global-average-pool: sum over the spatial lanes of this tile.
        acc_ref[m * FEAT:(m + 1) * FEAT, :] += jnp.sum(h, axis=1, keepdims=True)

    accumulate(x0_ref, wb0_ref, bb0_ref, 0)
    accumulate(x1_ref, wb1_ref, bb1_ref, 1)
    accumulate(x2_ref, wb2_ref, bb2_ref, 2)

    @pl.when(s_step == pl.num_programs(1) - 1)
    def _finalize():
        # fused == torch.cat([f0, f1, f2], dim=1) for this batch row (features on sublanes).
        fused_ref[0] = acc_ref[...] * inv_s                   # (1536, 1) mean pool


# ----------------------------------------------------------------------------------------
# Kernel 2: GatedFusion gate MLP + classifier, batched over all B rows in one pass.
# ----------------------------------------------------------------------------------------
def _head_kernel(
    fused_ref,                                                # (B, 1536) f32
    w1_ref, b1_ref,                                           # (1536, 512) bf16 / (1, 512) f32
    w2_ref, b2_ref,                                           # (512, 1536) bf16 / (1, 1536) f32
    wc_ref, bc_ref,                                           # (1, 1536) f32 / (1, 1) f32
    out_ref,                                                  # (B, 1) f32
):
    fused = fused_ref[...]                                    # (B, 1536) f32
    fb = fused.astype(jnp.bfloat16)

    # Linear(1536,512) -> ReLU -> Linear(512,1536) -> Sigmoid, all rows at once on the MXU.
    g = jnp.dot(fb, w1_ref[...], preferred_element_type=jnp.float32) + b1_ref[...]   # (B, 512)
    g = jnp.maximum(g, 0.0)
    z = jnp.dot(g.astype(jnp.bfloat16), w2_ref[...],
                preferred_element_type=jnp.float32) + b2_ref[...]                     # (B, 1536)
    # Sigmoid: exp on the EUP + EUP approximate reciprocal (off the VALU).
    gate = pl.reciprocal(1.0 + jnp.exp(-z), approx=True)

    gated = fused * gate                                                              # (B, 1536)

    # Classifier Linear(1536, 1) as VPU multiply + lane reduce (avoid N=1 MXU matvec).
    out_ref[...] = jnp.sum(gated * wc_ref[...], axis=1, keepdims=True) + bc_ref[...]  # (B, 1)


def _pick_s_tile(s):
    for cand in (2048, 1024, 512, 256, 128):
        if s % cand == 0:
            return cand
    return s  # fallback: single tile over the (odd-sized) spatial dim


def late_fused_model3(x0, x1, x2, params, *, s_tile=None):
    """x0/x1/x2: NCHW float32 arrays (B, C, H, W). Returns (B, 1) logits."""
    B, C, H, W = x0.shape
    S = H * W

    # NCHW -> (B, C, S): a free reshape (no transpose); spatial dim lands on the lane axis.
    t0 = x0.reshape(B, C, S)
    t1 = x1.reshape(B, C, S)
    t2 = x2.reshape(B, C, S)

    if s_tile is None:
        s_tile = _pick_s_tile(S)
    assert S % s_tile == 0, (S, s_tile)
    grid = (B, S // s_tile)

    x_spec = pl.BlockSpec((1, C, s_tile), lambda b, s: (b, 0, s))

    def full_spec(arr):
        # Whole array as one block; constant index_map -> fetched once across the grid.
        return pl.BlockSpec(arr.shape, lambda b, s: (0,) * arr.ndim)

    feat_inputs = (
        t0, t1, t2,
        params["wb0"], params["bb0"],
        params["wb1"], params["bb1"],
        params["wb2"], params["bb2"],
    )
    in_specs = [x_spec, x_spec, x_spec] + [full_spec(a) for a in feat_inputs[3:]]

    fused = pl.pallas_call(
        functools.partial(_feature_kernel, inv_s=1.0 / float(S)),
        out_shape=jax.ShapeDtypeStruct((B, INPUT_DIM, 1), jnp.float32),
        grid_spec=pltpu.PrefetchScalarGridSpec(
            num_scalar_prefetch=0,
            grid=grid,
            in_specs=in_specs,
            out_specs=pl.BlockSpec((1, INPUT_DIM, 1), lambda b, s: (b, 0, 0)),
            scratch_shapes=[pltpu.VMEM((INPUT_DIM, 1), jnp.float32)],
        ),
        compiler_params=pltpu.CompilerParams(
            dimension_semantics=("parallel", "arbitrary"),
            vmem_limit_bytes=32 * 1024 * 1024,
        ),
    )(*feat_inputs)

    # (B, 1536, 1) -> (B, 1536): identical bytes in HBM (free); the head kernel's DMA then
    # loads it as a dense lane-major (B, 1536) operand for the batched MXU matmuls.
    fused2d = fused.reshape(B, INPUT_DIM)

    head_inputs = (
        fused2d,
        params["w1"], params["b1"],
        params["w2"], params["b2"],
        params["wc"], params["bc"],
    )

    def head_spec(arr):
        return pl.BlockSpec(arr.shape, lambda i: (0,) * arr.ndim)

    out = pl.pallas_call(
        _head_kernel,
        out_shape=jax.ShapeDtypeStruct((B, 1), jnp.float32),
        grid_spec=pltpu.PrefetchScalarGridSpec(
            num_scalar_prefetch=0,
            grid=(1,),
            in_specs=[head_spec(a) for a in head_inputs],
            out_specs=pl.BlockSpec((B, 1), lambda i: (0, 0)),
        ),
        compiler_params=pltpu.CompilerParams(
            dimension_semantics=("arbitrary",),
            vmem_limit_bytes=32 * 1024 * 1024,
        ),
    )(*head_inputs)
    return out


def init_params(key, in_channels):
    """Deterministic parameter init. MXU weights stored bf16 (pre-transposed), biases f32."""
    keys = jax.random.split(key, 12)
    k = iter(keys)

    def uniform(kw, shape, scale, dtype=jnp.float32):
        return jax.random.uniform(kw, shape, jnp.float32, -scale, scale).astype(dtype)

    params = {}
    sb = in_channels ** -0.5
    for i in range(N_MODELS):
        # synthetic backbone: 1x1 conv (C -> 512), weight stored (out, in) like the conv.
        params[f"wb{i}"] = uniform(next(k), (FEAT, in_channels), sb, jnp.bfloat16)
        params[f"bb{i}"] = uniform(next(k), (FEAT, 1), 0.1)
    s1 = INPUT_DIM ** -0.5
    s2 = GATING_DIM ** -0.5
    # GatedFusion gate weights, stored transposed (in, out) so the batched row-major
    # matmuls in the head kernel are plain dots.
    params["w1"] = uniform(next(k), (INPUT_DIM, GATING_DIM), s1, jnp.bfloat16)   # = W1.T
    params["b1"] = uniform(next(k), (1, GATING_DIM), s1)
    params["w2"] = uniform(next(k), (GATING_DIM, INPUT_DIM), s2, jnp.bfloat16)   # = W2.T
    params["b2"] = uniform(next(k), (1, INPUT_DIM), s2)
    # classifier (kept f32: VPU path in kernel)
    params["wc"] = uniform(next(k), (1, INPUT_DIM), s1)
    params["bc"] = uniform(next(k), (1, 1), s1)
    return params


def reference_forward(x0, x1, x2, params):
    """Pure-JAX reference mirroring the kernel's bf16-operand / f32-accumulate math."""
    def feat(x, w, b):
        B, C, H, W = x.shape
        xt = x.reshape(B, C, H * W).astype(jnp.bfloat16)
        h = jnp.einsum("fc,bcs->bfs", w, xt, preferred_element_type=jnp.float32)
        h = jnp.maximum(h + b[None, :, :], 0.0)
        return jnp.mean(h, axis=2)                              # (B, FEAT)

    feats = [feat(x, params[f"wb{i}"], params[f"bb{i}"])
             for i, x in enumerate((x0, x1, x2))]
    fused = jnp.concatenate(feats, axis=1)                      # (B, 1536)
    g = jnp.dot(fused.astype(jnp.bfloat16), params["w1"],
                preferred_element_type=jnp.float32) + params["b1"]
    g = jnp.maximum(g, 0.0)
    z = jnp.dot(g.astype(jnp.bfloat16), params["w2"],
                preferred_element_type=jnp.float32) + params["b2"]
    gate = jax.nn.sigmoid(z)
    gated = fused * gate
    return jnp.sum(gated * params["wc"], axis=1, keepdims=True) + params["bc"]   # (B, 1)


if __name__ == "__main__":
    B, C, H, W = 2, 4, 16, 16
    key = jax.random.PRNGKey(0)
    kx0, kx1, kx2, kp = jax.random.split(key, 4)

    x0 = jax.random.normal(kx0, (B, C, H, W), jnp.float32)
    x1 = jax.random.normal(kx1, (B, C, H, W), jnp.float32)
    x2 = jax.random.normal(kx2, (B, C, H, W), jnp.float32)
    params = init_params(kp, C)

    # s_tile=128 so the toy shape (S=256) exercises the multi-step S reduction path;
    # real backbone sizes use the larger default tiles picked by _pick_s_tile.
    out = late_fused_model3(x0, x1, x2, params, s_tile=128)
    out = jax.block_until_ready(out)
    ref = jax.block_until_ready(reference_forward(x0, x1, x2, params))

    assert out.shape == (B, 1), out.shape
    assert jnp.allclose(out, ref, atol=1e-2, rtol=1e-2), (out, ref)

    print("KERNEL_OK")
</pallas_src>

<mosaic_0001>
module attributes {stable_mosaic.version = 11 : i64} {
  func.func @_feature_kernel(%arg0: i32, %arg1: i32, %arg2: memref<1x4x128xf32, #tpu.memory_space<vmem>>, %arg3: memref<1x4x128xf32, #tpu.memory_space<vmem>>, %arg4: memref<1x4x128xf32, #tpu.memory_space<vmem>>, %arg5: memref<512x4xbf16, #tpu.memory_space<vmem>>, %arg6: memref<512x1xf32, #tpu.memory_space<vmem>>, %arg7: memref<512x4xbf16, #tpu.memory_space<vmem>>, %arg8: memref<512x1xf32, #tpu.memory_space<vmem>>, %arg9: memref<512x4xbf16, #tpu.memory_space<vmem>>, %arg10: memref<512x1xf32, #tpu.memory_space<vmem>>, %arg11: memref<1x1536x1xf32, #tpu.memory_space<vmem>>, %arg12: memref<1536x1xf32, #tpu.memory_space<vmem>>) attributes {dimension_semantics = [#tpu.dimension_semantics<parallel>, #tpu.dimension_semantics<arbitrary>], iteration_bounds = array<i64: 2, 2>, scalar_prefetch = 0 : i64, scratch_operands = 1 : i64, tpu.core_type = #tpu.core_type<tc>, window_params = [{transform_indices = @transform_0, window_bounds = array<i64: 1, 4, 128>}, {transform_indices = @transform_1, window_bounds = array<i64: 1, 4, 128>}, {transform_indices = @transform_2, window_bounds = array<i64: 1, 4, 128>}, {pipeline_mode = #tpu.pipeline_mode<synchronous>, transform_indices = @transform_3, window_bounds = array<i64: 512, 4>}, {pipeline_mode = #tpu.pipeline_mode<synchronous>, transform_indices = @transform_4, window_bounds = array<i64: 512, 1>}, {pipeline_mode = #tpu.pipeline_mode<synchronous>, transform_indices = @transform_5, window_bounds = array<i64: 512, 4>}, {pipeline_mode = #tpu.pipeline_mode<synchronous>, transform_indices = @transform_6, window_bounds = array<i64: 512, 1>}, {pipeline_mode = #tpu.pipeline_mode<synchronous>, transform_indices = @transform_7, window_bounds = array<i64: 512, 4>}, {pipeline_mode = #tpu.pipeline_mode<synchronous>, transform_indices = @transform_8, window_bounds = array<i64: 512, 1>}, {transform_indices = @transform_9, window_bounds = array<i64: 1, 1536, 1>}]} {
    %c0_i32 = arith.constant 0 : i32
    %0 = arith.cmpi eq, %arg1, %c0_i32 : i32
    %1 = arith.extui %0 : i1 to i32
    %c0_i32_0 = arith.constant 0 : i32
    %2 = arith.cmpi ne, %1, %c0_i32_0 : i32
    scf.if %2 {
      %cst_40 = arith.constant 0.000000e+00 : f32
      %51 = vector.broadcast %cst_40 : f32 to vector<1536x1xf32>
      %c0_41 = arith.constant 0 : index
      %c0_42 = arith.constant 0 : index
      %52 = vector.load %arg12[%c0_41, %c0_42] : memref<1536x1xf32, #tpu.memory_space<vmem>>, vector<1536x1xf32>
      tpu.vector_store %arg12[%c0_41, %c0_42], %51 {strides = array<i32>} : memref<1536x1xf32, #tpu.memory_space<vmem>>, vector<1536x1xf32>,
    } else {
    }
    %c0 = arith.constant 0 : index
    %c0_1 = arith.constant 0 : index
    %c0_2 = arith.constant 0 : index
    %3 = vector.load %arg2[%c0, %c0_1, %c0_2] : memref<1x4x128xf32, #tpu.memory_space<vmem>>, vector<1x4x128xf32>
    %4 = vector.shape_cast %3 : vector<1x4x128xf32> to vector<4x128xf32>
    %5 = arith.truncf %4 : vector<4x128xf32> to vector<4x128xbf16>
    %c0_3 = arith.constant 0 : index
    %c0_4 = arith.constant 0 : index
    %6 = vector.load %arg5[%c0_3, %c0_4] : memref<512x4xbf16, #tpu.memory_space<vmem>>, vector<512x4xbf16>
    %cst = arith.constant dense<0.000000e+00> : vector<512x128xf32>
    %7 = tpu.matmul %6, %5, %cst {dimension_numbers = #tpu.dot_dimension_numbers<[1], [0], [0], [1], [0, 0, 1, 1], [], []>} : vector<512x4xbf16>, vector<4x128xbf16>, vector<512x128xf32> -> vector<512x128xf32>
    %c0_5 = arith.constant 0 : index
    %c0_6 = arith.constant 0 : index
    %8 = vector.load %arg6[%c0_5, %c0_6] : memref<512x1xf32, #tpu.memory_space<vmem>>, vector<512x1xf32>
    %9 = vector.broadcast %8 : vector<512x1xf32> to vector<512x128xf32>
    %10 = arith.addf %7, %9 : vector<512x128xf32>
    %cst_7 = arith.constant 0.000000e+00 : f32
    %11 = vector.broadcast %cst_7 : f32 to vector<512x128xf32>
    %12 = arith.maximumf %10, %11 : vector<512x128xf32>
    %c0_8 = arith.constant 0 : index
    %c0_9 = arith.constant 0 : index
    %13 = vector.load %arg12[%c0_8, %c0_9] : memref<1536x1xf32, #tpu.memory_space<vmem>>, vector<512x1xf32>
    %cst_10 = arith.constant dense<0.000000e+00> : vector<512xf32>
    %14 = vector.multi_reduction <add>, %12, %cst_10 [1] : vector<512x128xf32> to vector<512xf32>
    %15 = vector.shape_cast %14 : vector<512xf32> to vector<512x1xf32>
    %16 = arith.addf %13, %15 : vector<512x1xf32>
    %c0_11 = arith.constant 0 : index
    %c0_12 = arith.constant 0 : index
    %17 = vector.load %arg12[%c0_11, %c0_12] : memref<1536x1xf32, #tpu.memory_space<vmem>>, vector<512x1xf32>
    tpu.vector_store %arg12[%c0_11, %c0_12], %16 {strides = array<i32>} : memref<1536x1xf32, #tpu.memory_space<vmem>>, vector<512x1xf32>,
    %c0_13 = arith.constant 0 : index
    %c0_14 = arith.constant 0 : index
    %c0_15 = arith.constant 0 : index
    %18 = vector.load %arg3[%c0_13, %c0_14, %c0_15] : memref<1x4x128xf32, #tpu.memory_space<vmem>>, vector<1x4x128xf32>
    %19 = vector.shape_cast %18 : vector<1x4x128xf32> to vector<4x128xf32>
    %20 = arith.truncf %19 : vector<4x128xf32> to vector<4x128xbf16>
    %c0_16 = arith.constant 0 : index
    %c0_17 = arith.constant 0 : index
    %21 = vector.load %arg7[%c0_16, %c0_17] : memref<512x4xbf16, #tpu.memory_space<vmem>>, vector<512x4xbf16>
    %cst_18 = arith.constant dense<0.000000e+00> : vector<512x128xf32>
    %22 = tpu.matmul %21, %20, %cst_18 {dimension_numbers = #tpu.dot_dimension_numbers<[1], [0], [0], [1], [0, 0, 1, 1], [], []>} : vector<512x4xbf16>, vector<4x128xbf16>, vector<512x128xf32> -> vector<512x128xf32>
    %c0_19 = arith.constant 0 : index
    %c0_20 = arith.constant 0 : index
    %23 = vector.load %arg8[%c0_19, %c0_20] : memref<512x1xf32, #tpu.memory_space<vmem>>, vector<512x1xf32>
    %24 = vector.broadcast %23 : vector<512x1xf32> to vector<512x128xf32>
    %25 = arith.addf %22, %24 : vector<512x128xf32>
    %cst_21 = arith.constant 0.000000e+00 : f32
    %26 = vector.broadcast %cst_21 : f32 to vector<512x128xf32>
    %27 = arith.maximumf %25, %26 : vector<512x128xf32>
    %c512 = arith.constant 512 : index
    %c0_22 = arith.constant 0 : index
    %28 = vector.load %arg12[%c512, %c0_22] : memref<1536x1xf32, #tpu.memory_space<vmem>>, vector<512x1xf32>
    %cst_23 = arith.constant dense<0.000000e+00> : vector<512xf32>
    %29 = vector.multi_reduction <add>, %27, %cst_23 [1] : vector<512x128xf32> to vector<512xf32>
    %30 = vector.shape_cast %29 : vector<512xf32> to vector<512x1xf32>
    %31 = arith.addf %28, %30 : vector<512x1xf32>
    %c512_24 = arith.constant 512 : index
    %c0_25 = arith.constant 0 : index
    %32 = vector.load %arg12[%c512_24, %c0_25] : memref<1536x1xf32, #tpu.memory_space<vmem>>, vector<512x1xf32>
    tpu.vector_store %arg12[%c512_24, %c0_25], %31 {strides = array<i32>} : memref<1536x1xf32, #tpu.memory_space<vmem>>, vector<512x1xf32>,
    %c0_26 = arith.constant 0 : index
    %c0_27 = arith.constant 0 : index
    %c0_28 = arith.constant 0 : index
    %33 = vector.load %arg4[%c0_26, %c0_27, %c0_28] : memref<1x4x128xf32, #tpu.memory_space<vmem>>, vector<1x4x128xf32>
    %34 = vector.shape_cast %33 : vector<1x4x128xf32> to vector<4x128xf32>
    %35 = arith.truncf %34 : vector<4x128xf32> to vector<4x128xbf16>
    %c0_29 = arith.constant 0 : index
    %c0_30 = arith.constant 0 : index
    %36 = vector.load %arg9[%c0_29, %c0_30] : memref<512x4xbf16, #tpu.memory_space<vmem>>, vector<512x4xbf16>
    %cst_31 = arith.constant dense<0.000000e+00> : vector<512x128xf32>
    %37 = tpu.matmul %36, %35, %cst_31 {dimension_numbers = #tpu.dot_dimension_numbers<[1], [0], [0], [1], [0, 0, 1, 1], [], []>} : vector<512x4xbf16>, vector<4x128xbf16>, vector<512x128xf32> -> vector<512x128xf32>
    %c0_32 = arith.constant 0 : index
    %c0_33 = arith.constant 0 : index
    %38 = vector.load %arg10[%c0_32, %c0_33] : memref<512x1xf32, #tpu.memory_space<vmem>>, vector<512x1xf32>
    %39 = vector.broadcast %38 : vector<512x1xf32> to vector<512x128xf32>
    %40 = arith.addf %37, %39 : vector<512x128xf32>
    %cst_34 = arith.constant 0.000000e+00 : f32
    %41 = vector.broadcast %cst_34 : f32 to vector<512x128xf32>
    %42 = arith.maximumf %40, %41 : vector<512x128xf32>
    %c1024 = arith.constant 1024 : index
    %c0_35 = arith.constant 0 : index
    %43 = vector.load %arg12[%c1024, %c0_35] : memref<1536x1xf32, #tpu.memory_space<vmem>>, vector<512x1xf32>
    %cst_36 = arith.constant dense<0.000000e+00> : vector<512xf32>
    %44 = vector.multi_reduction <add>, %42, %cst_36 [1] : vector<512x128xf32> to vector<512xf32>
    %45 = vector.shape_cast %44 : vector<512xf32> to vector<512x1xf32>
    %46 = arith.addf %43, %45 : vector<512x1xf32>
    %c1024_37 = arith.constant 1024 : index
    %c0_38 = arith.constant 0 : index
    %47 = vector.load %arg12[%c1024_37, %c0_38] : memref<1536x1xf32, #tpu.memory_space<vmem>>, vector<512x1xf32>
    tpu.vector_store %arg12[%c1024_37, %c0_38], %46 {strides = array<i32>} : memref<1536x1xf32, #tpu.memory_space<vmem>>, vector<512x1xf32>,
    %c1_i32 = arith.constant 1 : i32
    %48 = arith.cmpi eq, %arg1, %c1_i32 : i32
    %49 = arith.extui %48 : i1 to i32
    %c0_i32_39 = arith.constant 0 : i32
    %50 = arith.cmpi ne, %49, %c0_i32_39 : i32
    scf.if %50 {
      %c0_40 = arith.constant 0 : index
      %c0_41 = arith.constant 0 : index
      %51 = vector.load %arg12[%c0_40, %c0_41] : memref<1536x1xf32, #tpu.memory_space<vmem>>, vector<1536x1xf32>
      %cst_42 = arith.constant 3.906250e-03 : f32
      %52 = vector.broadcast %cst_42 : f32 to vector<1536x1xf32>
      %53 = arith.mulf %51, %52 : vector<1536x1xf32>
      %c0_43 = arith.constant 0 : index
      %c0_44 = arith.constant 0 : index
      %c0_45 = arith.constant 0 : index
      %54 = vector.load %arg11[%c0_43, %c0_44, %c0_45] : memref<1x1536x1xf32, #tpu.memory_space<vmem>>, vector<1x1536x1xf32>
      %55 = vector.shape_cast %54 : vector<1x1536x1xf32> to vector<1536x1xf32>
      %56 = vector.shape_cast %53 : vector<1536x1xf32> to vector<1x1536x1xf32>
      tpu.vector_store %arg11[%c0_43, %c0_44, %c0_45], %56 {strides = array<i32>} : memref<1x1536x1xf32, #tpu.memory_space<vmem>>, vector<1x1536x1xf32>,
    } else {
    }
    return
  }
  func.func @transform_0(%arg0: i32, %arg1: i32) -> (i32, i32, i32) {
    %c0_i32 = arith.constant 0 : i32
    %c0_i32_0 = arith.constant 0 : i32
    return %arg0, %c0_i32, %arg1 : i32, i32, i32
  }
  func.func @transform_1(%arg0: i32, %arg1: i32) -> (i32, i32, i32) {
    %c0_i32 = arith.constant 0 : i32
    %c0_i32_0 = arith.constant 0 : i32
    return %arg0, %c0_i32, %arg1 : i32, i32, i32
  }
  func.func @transform_2(%arg0: i32, %arg1: i32) -> (i32, i32, i32) {
    %c0_i32 = arith.constant 0 : i32
    %c0_i32_0 = arith.constant 0 : i32
    return %arg0, %c0_i32, %arg1 : i32, i32, i32
  }
  func.func @transform_3(%arg0: i32, %arg1: i32) -> (i32, i32) {
    %c0_i32 = arith.constant 0 : i32
    %c0_i32_0 = arith.constant 0 : i32
    %c0_i32_1 = arith.constant 0 : i32
    return %c0_i32, %c0_i32_0 : i32, i32
  }
  func.func @transform_4(%arg0: i32, %arg1: i32) -> (i32, i32) {
    %c0_i32 = arith.constant 0 : i32
    %c0_i32_0 = arith.constant 0 : i32
    %c0_i32_1 = arith.constant 0 : i32
    return %c0_i32, %c0_i32_0 : i32, i32
  }
  func.func @transform_5(%arg0: i32, %arg1: i32) -> (i32, i32) {
    %c0_i32 = arith.constant 0 : i32
    %c0_i32_0 = arith.constant 0 : i32
    %c0_i32_1 = arith.constant 0 : i32
    return %c0_i32, %c0_i32_0 : i32, i32
  }
  func.func @transform_6(%arg0: i32, %arg1: i32) -> (i32, i32) {
    %c0_i32 = arith.constant 0 : i32
    %c0_i32_0 = arith.constant 0 : i32
    %c0_i32_1 = arith.constant 0 : i32
    return %c0_i32, %c0_i32_0 : i32, i32
  }
  func.func @transform_7(%arg0: i32, %arg1: i32) -> (i32, i32) {
    %c0_i32 = arith.constant 0 : i32
    %c0_i32_0 = arith.constant 0 : i32
    %c0_i32_1 = arith.constant 0 : i32
    return %c0_i32, %c0_i32_0 : i32, i32
  }
  func.func @transform_8(%arg0: i32, %arg1: i32) -> (i32, i32) {
    %c0_i32 = arith.constant 0 : i32
    %c0_i32_0 = arith.constant 0 : i32
    %c0_i32_1 = arith.constant 0 : i32
    return %c0_i32, %c0_i32_0 : i32, i32
  }
  func.func @transform_9(%arg0: i32, %arg1: i32) -> (i32, i32, i32) {
    %c0_i32 = arith.constant 0 : i32
    %c0_i32_0 = arith.constant 0 : i32
    %c0_i32_1 = arith.constant 0 : i32
    return %arg0, %c0_i32, %c0_i32_0 : i32, i32, i32
  }
}

</mosaic_0001>

<bundles_post_ra>
// kernel: tpu_custom_call.1
= control target key start
LH: loop header
LB: loop body
LE: loop exit
PB: predicated region body
PF: predicated region fallthrough
CT: control target
= control target key end

     0   :  { %s9079_s0 = inlined_call_operand.hbm [shape: f32[2,4,256], index: 0, kind: input, shape index: {}]   ;;  %s9080_s1 = inlined_call_operand.hbm [shape: f32[2,4,256], index: 1, kind: input, shape index: {}]   ;;  %s9081_s2 = inlined_call_operand.hbm [shape: f32[2,4,256], index: 2, kind: input, shape index: {}]   ;;  %s9082_s3 = inlined_call_operand.vmem [shape: bf16[512,4], index: 3, kind: input, shape index: {}]   ;;  %s9083_s4 = inlined_call_operand.vmem [shape: f32[512,1], index: 4, kind: input, shape index: {}]   ;;  %s9084_s5 = inlined_call_operand.vmem [shape: bf16[512,4], index: 5, kind: input, shape index: {}]   ;;  %s9085_s6 = inlined_call_operand.vmem [shape: f32[512,1], index: 6, kind: input, shape index: {}]   ;;  %s9086_s7 = inlined_call_operand.vmem [shape: bf16[512,4], index: 7, kind: input, shape index: {}]   ;;  %s9087_s8 = inlined_call_operand.vmem [shape: f32[512,1], index: 8, kind: input, shape index: {}]   ;;  %s9088_s9 = inlined_call_operand.vmem [shape: f32[2,1536,1], index: 9, kind: output, shape index: {}]  }
   0x1   :  { %9096 = sst [smem:[#allocation14_spill]] %s9079_s0 }
   0x2   :  { %9097 = sst [smem:[#allocation15_spill]] %s9080_s1 }
   0x3   :  { %9098 = sst [smem:[#allocation16_spill]] %s9087_s8 }
   0x4   :  { %14 = vsyncpa [#allocation4], 0 }
   0x5   :  { %16 = vsyncpa [#allocation4 + $0x1], 0 }
   0x6   :  { %17 = vsyncpa [#allocation6], 0 }
   0x7   :  { %19 = vsyncpa [#allocation6 + $0x1], 0  ;;  %s6409_s30 = smov 0   ;;  %s6411_s10 = smov 0  }
   0x8   :  { %s6413_s11 = smov 0   ;;  %s6415_s12 = smov 0  }
   0x9   :  { %s6417_s13 = smov 0   ;;  %s6419_s14 = smov 0  }
   0xa   :  { %s6421_s15 = smov 0   ;;  %s6423_s16 = smov 0  }
   0xb LB: > { %9099 = sst [smem:[#allocation10_spill]] %s6344_s14  ;;  %s9089_s17 = sadd.s32 4294967295, %s6352_s16   ;;  %s6352_s16 = sphi %s6423_s16, %s25_s16   ;;  %s6348_s15 = sphi %s6421_s15, %s9114_s15   ;;  %s6344_s14 = sphi %s6419_s14, %s9113_s14   ;;  %s6340_s13 = sphi %s6417_s13, %s9112_s13   ;;  %s6336_s12 = sphi %s6415_s12, %s9111_s12   ;;  %s6332_s11 = sphi %s6413_s11, %s9117_s11   ;;  %s6328_s10 = sphi %s6411_s10, %s9116_s10   ;;  %s6324_s30 = sphi %s6409_s30, %s9115_s30  }
   0xc   : > { %9100 = sst [smem:[#allocation11_spill]] %s6348_s15  ;;  %s34_s18 = sadd.s32 1, %s6344_s14 }
   0xd   : > { %p35_p0 = scmp.ge.s32.totalorder %s34_s18, 2  ;;  %s37_s19 = sadd.s32 1, %s6348_s15 }
   0xe   : > { %s46_s20 = sadd.s32 1, %s6332_s11  ;;  %p53_p1 = scmp.ne.s32.totalorder %s6332_s11, %s6328_s10 }
   0xf   : > { %s9119_s18 = smov (%p35_p0, %s34_s18), 0  ;;  %s9121_s19 = smov (!%p35_p0, %s37_s19), %s6348_s15 }
  0x10   : > { %9101 = sst [smem:[#allocation12_spill]] %s9119_s18  ;;  %s42_s21 = ssub.s32 %s6344_s14, %s9119_s18 }
  0x11   : > { %p54_p2 = scmp.eq.s32.totalorder %s6352_s16, 0  ;;  %p39_p3 = scmp.ge.s32.totalorder %s9121_s19, 2 }
  0x12   : > { %p59_p4 = scmp.ne.s32.totalorder %s6328_s10, %s6324_s30  ;;  %p60_p6 = scmp.eq.s32.totalorder %s9089_s17, 0 }
  0x13   : > { %p55_p5 = por %p54_p2, %p53_p1  ;;  %s9123_s19 = smov (%p39_p3, %s9121_s19), 0 }
  0x14   : > { %9102 = sst [smem:[#allocation13_spill]] %s9123_s19  ;;  %p6464_p7 = por %p60_p6, %p59_p4 }
  0x15   : > { %s41_s23 = ssub.s32 %s6348_s15, %s9123_s19  ;;  %p6033_p8 = scmp.lt.s32.totalorder %s6352_s16, 4 }
  0x16   : > { %s43_s24 = sor.u32 %s42_s21, %s41_s23  ;;  %s9090_s25 = sand.u32 1, %s6332_s11  }
  0x17   : > { %p44_p9 = scmp.eq.s32.totalorder %s43_s24, 0  ;;  %s6474_s26 = sshll.u32 %s9090_s25, 2 }
  0x18   : > { %s5504_s27 = sshll.u32 %s6348_s15, 1  ;;  %p6477_p10 = pnand %p6033_p8, %p55_p5 }
  0x19   : > { %s6482_s29 = scalar_select %p44_p9, %s6332_s11, %s46_s20  }
  0x1a   : > { %s318_s30 = sadd.s32 %s6344_s14, %s5504_s27  ;;  %s329_s21 = sand.u32 1, %s6352_s16  }
  0x1b   : > { %s6485_s17 = sshll.u32 %s318_s30, 6  ;;  %s9105_s1 = sld [smem:[#allocation15_spill]] }
  0x1c   : > { %s333_s19 = scalar_lea.vmem [#allocation5], %s6474_s26  ;;  %p5512_p11 = scmp.ge.s32.totalorder %s6352_s16, 1 }
  0x1d   : > { %s342_s18 = sshll.u32 %s333_s19, 4  ;;  %s6494_s15 = scalar_lea.sflag [#allocation6], %s329_s21  ;;  %s343_s18 = int_to_ptr.vmem [resolvable:$true] %s342_s18 }
  0x1e   : > { %p6200_p12 = pneg %p6477_p10  ;;  %s6211_s8 = scalar_lea.vmem %s343_s18, 64 }
  0x1f   : > { %p6212_p13 = scmp.ne.s32.totalorder %s343_s18, %s6211_s8  ;;  %s6354_s20 = smov [#allocation5]  }
  0x20   : > { %s6216_s27 = sshll.u32 %s6354_s20, 4  ;;  %s6217_s27 = int_to_ptr.vmem [resolvable:$false] %s6216_s27 }
  0x21   : > { %s340_s25 = scalar_lea.hbm %s9105_s1, %s6485_s17  ;;  %p6214_p0 = pnand %p6212_p13, %p6200_p12 }
  0x22   : > { %s6218_s30 = scalar_lea.vmem %s6217_s27, 128  ;;  %p6219_p2 = scmp.lt.s32.totalorder %s343_s18, %s6217_s27 }
  0x23   : > { %p6215_p1 = pneg %p6214_p0  ;;  %p6220_p3 = scmp.lt.s32.totalorder %s6218_s30, %s6211_s8 }
  0x25   : > { %p6221_p4 = por %p6220_p3, %p6219_p2 }
  0x27   : > { %p6222_p5 = pnand %p6221_p4, %p6215_p1 }
  0x29   : > { %6225 = shalt.err (!%p6222_p5)
}
  0x2a   : > { %6029 = dma.hbm_to_vmem [thread:$0]  (!%p6477_p10), %s340_s25, 64, %s343_s18, %s6494_s15  }
  0x2b   : > { %p367_p6 = scmp.lt.s32.totalorder %s6352_s16, 5  ;;  %s9107_s0 = sld [smem:[#allocation14_spill]] }
  0x2c   : > { %s313_s24 = scalar_lea.vmem [#allocation3], %s6474_s26  ;;  %s9108_s27 = sand.u32 1, %s6332_s11  }
  0x2d   : > { %p6507_p8 = pnand %p5512_p11, %p367_p6  ;;  %s322_s20 = sshll.u32 %s313_s24, 4  ;;  %s323_s20 = int_to_ptr.vmem [resolvable:$true] %s322_s20 }
  0x2e   : > { %s310_s30 = scalar_lea.sflag [#allocation4], %s9108_s27  ;;  %s6239_s1 = scalar_lea.vmem %s323_s20, 64 }
  0x2f   : > { %p6240_p9 = scmp.ne.s32.totalorder %s323_s20, %s6239_s1  ;;  %s6355_s18 = smov [#allocation3]  }
  0x30   : > { %s6244_s25 = sshll.u32 %s6355_s18, 4  ;;  %s6245_s25 = int_to_ptr.vmem [resolvable:$false] %s6244_s25 }
  0x31   : > { %s320_s23 = scalar_lea.hbm %s9107_s0, %s6485_s17  ;;  %p6242_p13 = pnand %p6240_p9, %p6200_p12 }
  0x32   : > { %s6246_s14 = scalar_lea.vmem %s6245_s25, 128  ;;  %p6247_p11 = scmp.lt.s32.totalorder %s323_s20, %s6245_s25 }
  0x33   : > { %p6243_p0 = pneg %p6242_p13  ;;  %p6248_p1 = scmp.lt.s32.totalorder %s6246_s14, %s6239_s1 }
  0x35   : > { %p6249_p2 = por %p6248_p1, %p6247_p11 }
  0x37   : > { %p6250_p3 = pnand %p6249_p2, %p6243_p0 }
  0x39   : > { %6253 = shalt.err (!%p6250_p3)
}
  0x3a   : > { %6026 = dma.hbm_to_vmem [thread:$0]  (!%p6477_p10), %s320_s23, 64, %s323_s20, %s310_s30  }
  0x3b   : > { %s360_s24 = scalar_lea.hbm %s9081_s2, %s6485_s17  ;;  %s353_s27 = scalar_lea.vmem [#allocation7], %s6474_s26 }
  0x3c   : > { %s362_s0 = sshll.u32 %s353_s27, 4  ;;  %s6356_s1 = smov [#allocation7]   ;;  %s363_s0 = int_to_ptr.vmem [resolvable:$true] %s362_s0 }
  0x3d   : > { %s6267_s18 = scalar_lea.vmem %s363_s0, 64  ;;  %s6272_s14 = sshll.u32 %s6356_s1, 4  ;;  %s6273_s14 = int_to_ptr.vmem [resolvable:$false] %s6272_s14 }
  0x3e   : > { %p6268_p4 = scmp.ne.s32.totalorder %s363_s0, %s6267_s18  ;;  %s6274_s25 = scalar_lea.vmem %s6273_s14, 128 }
  0x3f   : > { %p6275_p9 = scmp.lt.s32.totalorder %s363_s0, %s6273_s14  ;;  %p6276_p13 = scmp.lt.s32.totalorder %s6274_s25, %s6267_s18 }
  0x40   : > { %p6270_p5 = pnand %p6268_p4, %p6200_p12 }
  0x41   : > { %p6277_p0 = por %p6276_p13, %p6275_p9 }
  0x42   : > { %p6271_p6 = pneg %p6270_p5 }
  0x44   : > { %p6278_p11 = pnand %p6277_p0, %p6271_p6 }
  0x46   : > { %6281 = shalt.err (!%p6278_p11)
}
  0x47   : > { %6032 = dma.hbm_to_vmem [thread:$0]  (!%p6477_p10), %s360_s24, 64, %s363_s0, %s6494_s15  }
  0x48   : > { %371 = sbr.rel (%p6507_p8) target bundleno = 1616 (0x650), region = 56  ;;  %s373_s17 = sand.u32 (!%p6507_p8), 1, %s6328_s10  }
  0x49   : > { %s6537_s26 = sshll.u32 (!%p6507_p8), %s373_s17, 2  ;;  %s374_s23 = scalar_lea.sflag (!%p6507_p8), [#allocation4], %s373_s17 }
  0x4a   : > { %s377_s20 = scalar_lea.vmem (!%p6507_p8), [#allocation3], %s6537_s26 }
  0x4d   : > { %6315 = dma.done.wait (%p6464_p7), %s374_s23, 64  }
  0x4e   : > { %6317 = vsyncadd (%p6464_p7), %s374_s23, 4294967232  ;;  %s9109_s28 = sadd.s32 4294967295, %s6352_s16   ;;  %s386_s19 = scalar_lea.vmem [#allocation5], %s6537_s26 }
  0x4f   : > { %s382_s0 = sand.u32 1, %s9109_s28  }
  0x50   : > { %s383_s15 = scalar_lea.sflag [#allocation6], %s382_s0 }
  0x51   : > { %6319 = dma.done.wait (%p6464_p7), %s383_s15, 128  }
  0x52   : > { %6321 = vsyncadd (%p6464_p7), %s383_s15, 4294967168  ;;  %p440_p10 = scmp.lt.s32.totalorder %s6340_s13, 1  ;;  %s395_s27 = scalar_lea.vmem [#allocation7], %s6537_s26 }
  0x53   : > { %p5517_p12 = scmp.ne.s32.totalorder %s6336_s12, 0 }
  0x54   : > { %s9125_s13 = smov (!%p440_p10, %s6340_s13), 1 }
  0x55   : > { %s6016_s30 = smul.u32 1536, %s9125_s13 }
  0x56   : > { %449 = sbr.rel (%p5517_p12) target bundleno = 188 (0xbc), region = 72 }
  0x57   : > { %s6556_s24 = scalar_lea.vmem %s9088_s9, %s6016_s30 }
  0x5b   : > { %vm450_vm0 = vcmask 7168   ;;  %v6357_v0 = vmov 0.0  }
  0x5c   : > { %451 = vst.msk [vmem:[#allocation2] sm:$0xff] %vm450_vm0, %v6357_v0  ;;  %452 = vst.msk [vmem:[#allocation2 + $0x8] sm:$0xff] %vm450_vm0, %v6357_v0 }
  0x5d   : > { %453 = vst.msk [vmem:[#allocation2 + $0x10] sm:$0xff] %vm450_vm0, %v6357_v0  ;;  %454 = vst.msk [vmem:[#allocation2 + $0x18] sm:$0xff] %vm450_vm0, %v6357_v0 }
  0x5e   : > { %455 = vst.msk [vmem:[#allocation2 + $0x20] sm:$0xff] %vm450_vm0, %v6357_v0  ;;  %456 = vst.msk [vmem:[#allocation2 + $0x28] sm:$0xff] %vm450_vm0, %v6357_v0 }
  0x5f   : > { %457 = vst.msk [vmem:[#allocation2 + $0x30] sm:$0xff] %vm450_vm0, %v6357_v0  ;;  %458 = vst.msk [vmem:[#allocation2 + $0x38] sm:$0xff] %vm450_vm0, %v6357_v0 }
  0x60   : > { %459 = vst.msk [vmem:[#allocation2 + $0x40] sm:$0xff] %vm450_vm0, %v6357_v0  ;;  %460 = vst.msk [vmem:[#allocation2 + $0x48] sm:$0xff] %vm450_vm0, %v6357_v0 }
  0x61   : > { %461 = vst.msk [vmem:[#allocation2 + $0x50] sm:$0xff] %vm450_vm0, %v6357_v0  ;;  %462 = vst.msk [vmem:[#allocation2 + $0x58] sm:$0xff] %vm450_vm0, %v6357_v0 }
  0x62   : > { %463 = vst.msk [vmem:[#allocation2 + $0x60] sm:$0xff] %vm450_vm0, %v6357_v0  ;;  %464 = vst.msk [vmem:[#allocation2 + $0x68] sm:$0xff] %vm450_vm0, %v6357_v0 }
  0x63   : > { %465 = vst.msk [vmem:[#allocation2 + $0x70] sm:$0xff] %vm450_vm0, %v6357_v0  ;;  %466 = vst.msk [vmem:[#allocation2 + $0x78] sm:$0xff] %vm450_vm0, %v6357_v0 }
  0x64   : > { %467 = vst.msk [vmem:[#allocation2 + $0x80] sm:$0xff] %vm450_vm0, %v6357_v0  ;;  %468 = vst.msk [vmem:[#allocation2 + $0x88] sm:$0xff] %vm450_vm0, %v6357_v0 }
  0x65   : > { %469 = vst.msk [vmem:[#allocation2 + $0x90] sm:$0xff] %vm450_vm0, %v6357_v0  ;;  %470 = vst.msk [vmem:[#allocation2 + $0x98] sm:$0xff] %vm450_vm0, %v6357_v0 }
  0x66   : > { %471 = vst.msk [vmem:[#allocation2 + $0xa0] sm:$0xff] %vm450_vm0, %v6357_v0  ;;  %472 = vst.msk [vmem:[#allocation2 + $0xa8] sm:$0xff] %vm450_vm0, %v6357_v0 }
  0x67   : > { %473 = vst.msk [vmem:[#allocation2 + $0xb0] sm:$0xff] %vm450_vm0, %v6357_v0  ;;  %474 = vst.msk [vmem:[#allocation2 + $0xb8] sm:$0xff] %vm450_vm0, %v6357_v0 }
  0x68   : > { %475 = vst.msk [vmem:[#allocation2 + $0xc0] sm:$0xff] %vm450_vm0, %v6357_v0  ;;  %476 = vst.msk [vmem:[#allocation2 + $0xc8] sm:$0xff] %vm450_vm0, %v6357_v0 }
  0x69   : > { %477 = vst.msk [vmem:[#allocation2 + $0xd0] sm:$0xff] %vm450_vm0, %v6357_v0  ;;  %478 = vst.msk [vmem:[#allocation2 + $0xd8] sm:$0xff] %vm450_vm0, %v6357_v0 }
  0x6a   : > { %479 = vst.msk [vmem:[#allocation2 + $0xe0] sm:$0xff] %vm450_vm0, %v6357_v0  ;;  %480 = vst.msk [vmem:[#allocation2 + $0xe8] sm:$0xff] %vm450_vm0, %v6357_v0 }
  0x6b   : > { %481 = vst.msk [vmem:[#allocation2 + $0xf0] sm:$0xff] %vm450_vm0, %v6357_v0  ;;  %482 = vst.msk [vmem:[#allocation2 + $0xf8] sm:$0xff] %vm450_vm0, %v6357_v0 }
  0x6c   : > { %483 = vst.msk [vmem:[#allocation2 + $0x100] sm:$0xff] %vm450_vm0, %v6357_v0  ;;  %484 = vst.msk [vmem:[#allocation2 + $0x108] sm:$0xff] %vm450_vm0, %v6357_v0 }
  0x6d   : > { %485 = vst.msk [vmem:[#allocation2 + $0x110] sm:$0xff] %vm450_vm0, %v6357_v0  ;;  %486 = vst.msk [vmem:[#allocation2 + $0x118] sm:$0xff] %vm450_vm0, %v6357_v0 }
  0x6e   : > { %487 = vst.msk [vmem:[#allocation2 + $0x120] sm:$0xff] %vm450_vm0, %v6357_v0  ;;  %488 = vst.msk [vmem:[#allocation2 + $0x128] sm:$0xff] %vm450_vm0, %v6357_v0 }
  0x6f   : > { %489 = vst.msk [vmem:[#allocation2 + $0x130] sm:$0xff] %vm450_vm0, %v6357_v0  ;;  %490 = vst.msk [vmem:[#allocation2 + $0x138] sm:$0xff] %vm450_vm0, %v6357_v0 }
  0x70   : > { %491 = vst.msk [vmem:[#allocation2 + $0x140] sm:$0xff] %vm450_vm0, %v6357_v0  ;;  %492 = vst.msk [vmem:[#allocation2 + $0x148] sm:$0xff] %vm450_vm0, %v6357_v0 }
  0x71   : > { %493 = vst.msk [vmem:[#allocation2 + $0x150] sm:$0xff] %vm450_vm0, %v6357_v0  ;;  %494 = vst.msk [vmem:[#allocation2 + $0x158] sm:$0xff] %vm450_vm0, %v6357_v0 }
  0x72   : > { %495 = vst.msk [vmem:[#allocation2 + $0x160] sm:$0xff] %vm450_vm0, %v6357_v0  ;;  %496 = vst.msk [vmem:[#allocation2 + $0x168] sm:$0xff] %vm450_vm0, %v6357_v0 }
  0x73   : > { %497 = vst.msk [vmem:[#allocation2 + $0x170] sm:$0xff] %vm450_vm0, %v6357_v0  ;;  %498 = vst.msk [vmem:[#allocation2 + $0x178] sm:$0xff] %vm450_vm0, %v6357_v0 }
  0x74   : > { %499 = vst.msk [vmem:[#allocation2 + $0x180] sm:$0xff] %vm450_vm0, %v6357_v0  ;;  %500 = vst.msk [vmem:[#allocation2 + $0x188] sm:$0xff] %vm450_vm0, %v6357_v0 }
  0x75   : > { %501 = vst.msk [vmem:[#allocation2 + $0x190] sm:$0xff] %vm450_vm0, %v6357_v0  ;;  %502 = vst.msk [vmem:[#allocation2 + $0x198] sm:$0xff] %vm450_vm0, %v6357_v0 }
  0x76   : > { %503 = vst.msk [vmem:[#allocation2 + $0x1a0] sm:$0xff] %vm450_vm0, %v6357_v0  ;;  %504 = vst.msk [vmem:[#allocation2 + $0x1a8] sm:$0xff] %vm450_vm0, %v6357_v0 }
  0x77   : > { %505 = vst.msk [vmem:[#allocation2 + $0x1b0] sm:$0xff] %vm450_vm0, %v6357_v0  ;;  %506 = vst.msk [vmem:[#allocation2 + $0x1b8] sm:$0xff] %vm450_vm0, %v6357_v0 }
  0x78   : > { %507 = vst.msk [vmem:[#allocation2 + $0x1c0] sm:$0xff] %vm450_vm0, %v6357_v0  ;;  %508 = vst.msk [vmem:[#allocation2 + $0x1c8] sm:$0xff] %vm450_vm0, %v6357_v0 }
  0x79   : > { %509 = vst.msk [vmem:[#allocation2 + $0x1d0] sm:$0xff] %vm450_vm0, %v6357_v0  ;;  %510 = vst.msk [vmem:[#allocation2 + $0x1d8] sm:$0xff] %vm450_vm0, %v6357_v0 }
  0x7a   : > { %511 = vst.msk [vmem:[#allocation2 + $0x1e0] sm:$0xff] %vm450_vm0, %v6357_v0  ;;  %512 = vst.msk [vmem:[#allocation2 + $0x1e8] sm:$0xff] %vm450_vm0, %v6357_v0 }
  0x7b   : > { %513 = vst.msk [vmem:[#allocation2 + $0x1f0] sm:$0xff] %vm450_vm0, %v6357_v0  ;;  %514 = vst.msk [vmem:[#allocation2 + $0x1f8] sm:$0xff] %vm450_vm0, %v6357_v0 }
  0x7c   : > { %515 = vst.msk [vmem:[#allocation2 + $0x200] sm:$0xff] %vm450_vm0, %v6357_v0  ;;  %516 = vst.msk [vmem:[#allocation2 + $0x208] sm:$0xff] %vm450_vm0, %v6357_v0 }
  0x7d   : > { %517 = vst.msk [vmem:[#allocation2 + $0x210] sm:$0xff] %vm450_vm0, %v6357_v0  ;;  %518 = vst.msk [vmem:[#allocation2 + $0x218] sm:$0xff] %vm450_vm0, %v6357_v0 }
  0x7e   : > { %519 = vst.msk [vmem:[#allocation2 + $0x220] sm:$0xff] %vm450_vm0, %v6357_v0  ;;  %520 = vst.msk [vmem:[#allocation2 + $0x228] sm:$0xff] %vm450_vm0, %v6357_v0 }
  0x7f   : > { %521 = vst.msk [vmem:[#allocation2 + $0x230] sm:$0xff] %vm450_vm0, %v6357_v0  ;;  %522 = vst.msk [vmem:[#allocation2 + $0x238] sm:$0xff] %vm450_vm0, %v6357_v0 }
  0x80   : > { %523 = vst.msk [vmem:[#allocation2 + $0x240] sm:$0xff] %vm450_vm0, %v6357_v0  ;;  %524 = vst.msk [vmem:[#allocation2 + $0x248] sm:$0xff] %vm450_vm0, %v6357_v0 }
  0x81   : > { %525 = vst.msk [vmem:[#allocation2 + $0x250] sm:$0xff] %vm450_vm0, %v6357_v0  ;;  %526 = vst.msk [vmem:[#allocation2 + $0x258] sm:$0xff] %vm450_vm0, %v6357_v0 }
  0x82   : > { %527 = vst.msk [vmem:[#allocation2 + $0x260] sm:$0xff] %vm450_vm0, %v6357_v0  ;;  %528 = vst.msk [vmem:[#allocation2 + $0x268] sm:$0xff] %vm450_vm0, %v6357_v0 }
  0x83   : > { %529 = vst.msk [vmem:[#allocation2 + $0x270] sm:$0xff] %vm450_vm0, %v6357_v0  ;;  %530 = vst.msk [vmem:[#allocation2 + $0x278] sm:$0xff] %vm450_vm0, %v6357_v0 }
  0x84   : > { %531 = vst.msk [vmem:[#allocation2 + $0x280] sm:$0xff] %vm450_vm0, %v6357_v0  ;;  %532 = vst.msk [vmem:[#allocation2 + $0x288] sm:$0xff] %vm450_vm0, %v6357_v0 }
  0x85   : > { %533 = vst.msk [vmem:[#allocation2 + $0x290] sm:$0xff] %vm450_vm0, %v6357_v0  ;;  %534 = vst.msk [vmem:[#allocation2 + $0x298] sm:$0xff] %vm450_vm0, %v6357_v0 }
  0x86   : > { %535 = vst.msk [vmem:[#allocation2 + $0x2a0] sm:$0xff] %vm450_vm0, %v6357_v0  ;;  %536 = vst.msk [vmem:[#allocation2 + $0x2a8] sm:$0xff] %vm450_vm0, %v6357_v0 }
  0x87   : > { %537 = vst.msk [vmem:[#allocation2 + $0x2b0] sm:$0xff] %vm450_vm0, %v6357_v0  ;;  %538 = vst.msk [vmem:[#allocation2 + $0x2b8] sm:$0xff] %vm450_vm0, %v6357_v0 }
  0x88   : > { %539 = vst.msk [vmem:[#allocation2 + $0x2c0] sm:$0xff] %vm450_vm0, %v6357_v0  ;;  %540 = vst.msk [vmem:[#allocation2 + $0x2c8] sm:$0xff] %vm450_vm0, %v6357_v0 }
  0x89   : > { %541 = vst.msk [vmem:[#allocation2 + $0x2d0] sm:$0xff] %vm450_vm0, %v6357_v0  ;;  %542 = vst.msk [vmem:[#allocation2 + $0x2d8] sm:$0xff] %vm450_vm0, %v6357_v0 }
  0x8a   : > { %543 = vst.msk [vmem:[#allocation2 + $0x2e0] sm:$0xff] %vm450_vm0, %v6357_v0  ;;  %544 = vst.msk [vmem:[#allocation2 + $0x2e8] sm:$0xff] %vm450_vm0, %v6357_v0 }
  0x8b   : > { %545 = vst.msk [vmem:[#allocation2 + $0x2f0] sm:$0xff] %vm450_vm0, %v6357_v0  ;;  %546 = vst.msk [vmem:[#allocation2 + $0x2f8] sm:$0xff] %vm450_vm0, %v6357_v0 }
  0x8c   : > { %547 = vst.msk [vmem:[#allocation2 + $0x300] sm:$0xff] %vm450_vm0, %v6357_v0  ;;  %548 = vst.msk [vmem:[#allocation2 + $0x308] sm:$0xff] %vm450_vm0, %v6357_v0 }
  0x8d   : > { %549 = vst.msk [vmem:[#allocation2 + $0x310] sm:$0xff] %vm450_vm0, %v6357_v0  ;;  %550 = vst.msk [vmem:[#allocation2 + $0x318] sm:$0xff] %vm450_vm0, %v6357_v0 }
  0x8e   : > { %551 = vst.msk [vmem:[#allocation2 + $0x320] sm:$0xff] %vm450_vm0, %v6357_v0  ;;  %552 = vst.msk [vmem:[#allocation2 + $0x328] sm:$0xff] %vm450_vm0, %v6357_v0 }
  0x8f   : > { %553 = vst.msk [vmem:[#allocation2 + $0x330] sm:$0xff] %vm450_vm0, %v6357_v0  ;;  %554 = vst.msk [vmem:[#allocation2 + $0x338] sm:$0xff] %vm450_vm0, %v6357_v0 }
  0x90   : > { %555 = vst.msk [vmem:[#allocation2 + $0x340] sm:$0xff] %vm450_vm0, %v6357_v0  ;;  %556 = vst.msk [vmem:[#allocation2 + $0x348] sm:$0xff] %vm450_vm0, %v6357_v0 }
  0x91   : > { %557 = vst.msk [vmem:[#allocation2 + $0x350] sm:$0xff] %vm450_vm0, %v6357_v0  ;;  %558 = vst.msk [vmem:[#allocation2 + $0x358] sm:$0xff] %vm450_vm0, %v6357_v0 }
  0x92   : > { %559 = vst.msk [vmem:[#allocation2 + $0x360] sm:$0xff] %vm450_vm0, %v6357_v0  ;;  %560 = vst.msk [vmem:[#allocation2 + $0x368] sm:$0xff] %vm450_vm0, %v6357_v0 }
  0x93   : > { %561 = vst.msk [vmem:[#allocation2 + $0x370] sm:$0xff] %vm450_vm0, %v6357_v0  ;;  %562 = vst.msk [vmem:[#allocation2 + $0x378] sm:$0xff] %vm450_vm0, %v6357_v0 }
  0x94   : > { %563 = vst.msk [vmem:[#allocation2 + $0x380] sm:$0xff] %vm450_vm0, %v6357_v0  ;;  %564 = vst.msk [vmem:[#allocation2 + $0x388] sm:$0xff] %vm450_vm0, %v6357_v0 }
  0x95   : > { %565 = vst.msk [vmem:[#allocation2 + $0x390] sm:$0xff] %vm450_vm0, %v6357_v0  ;;  %566 = vst.msk [vmem:[#allocation2 + $0x398] sm:$0xff] %vm450_vm0, %v6357_v0 }
  0x96   : > { %567 = vst.msk [vmem:[#allocation2 + $0x3a0] sm:$0xff] %vm450_vm0, %v6357_v0  ;;  %568 = vst.msk [vmem:[#allocation2 + $0x3a8] sm:$0xff] %vm450_vm0, %v6357_v0 }
  0x97   : > { %569 = vst.msk [vmem:[#allocation2 + $0x3b0] sm:$0xff] %vm450_vm0, %v6357_v0  ;;  %570 = vst.msk [vmem:[#allocation2 + $0x3b8] sm:$0xff] %vm450_vm0, %v6357_v0 }
  0x98   : > { %571 = vst.msk [vmem:[#allocation2 + $0x3c0] sm:$0xff] %vm450_vm0, %v6357_v0  ;;  %572 = vst.msk [vmem:[#allocation2 + $0x3c8] sm:$0xff] %vm450_vm0, %v6357_v0 }
  0x99   : > { %573 = vst.msk [vmem:[#allocation2 + $0x3d0] sm:$0xff] %vm450_vm0, %v6357_v0  ;;  %574 = vst.msk [vmem:[#allocation2 + $0x3d8] sm:$0xff] %vm450_vm0, %v6357_v0 }
  0x9a   : > { %575 = vst.msk [vmem:[#allocation2 + $0x3e0] sm:$0xff] %vm450_vm0, %v6357_v0  ;;  %576 = vst.msk [vmem:[#allocation2 + $0x3e8] sm:$0xff] %vm450_vm0, %v6357_v0 }
  0x9b   : > { %577 = vst.msk [vmem:[#allocation2 + $0x3f0] sm:$0xff] %vm450_vm0, %v6357_v0  ;;  %578 = vst.msk [vmem:[#allocation2 + $0x3f8] sm:$0xff] %vm450_vm0, %v6357_v0 }
  0x9c   : > { %579 = vst.msk [vmem:[#allocation2 + $0x400] sm:$0xff] %vm450_vm0, %v6357_v0  ;;  %580 = vst.msk [vmem:[#allocation2 + $0x408] sm:$0xff] %vm450_vm0, %v6357_v0 }
  0x9d   : > { %581 = vst.msk [vmem:[#allocation2 + $0x410] sm:$0xff] %vm450_vm0, %v6357_v0  ;;  %582 = vst.msk [vmem:[#allocation2 + $0x418] sm:$0xff] %vm450_vm0, %v6357_v0 }
  0x9e   : > { %583 = vst.msk [vmem:[#allocation2 + $0x420] sm:$0xff] %vm450_vm0, %v6357_v0  ;;  %584 = vst.msk [vmem:[#allocation2 + $0x428] sm:$0xff] %vm450_vm0, %v6357_v0 }
  0x9f   : > { %585 = vst.msk [vmem:[#allocation2 + $0x430] sm:$0xff] %vm450_vm0, %v6357_v0  ;;  %586 = vst.msk [vmem:[#allocation2 + $0x438] sm:$0xff] %vm450_vm0, %v6357_v0 }
  0xa0   : > { %587 = vst.msk [vmem:[#allocation2 + $0x440] sm:$0xff] %vm450_vm0, %v6357_v0  ;;  %588 = vst.msk [vmem:[#allocation2 + $0x448] sm:$0xff] %vm450_vm0, %v6357_v0 }
  0xa1   : > { %589 = vst.msk [vmem:[#allocation2 + $0x450] sm:$0xff] %vm450_vm0, %v6357_v0  ;;  %590 = vst.msk [vmem:[#allocation2 + $0x458] sm:$0xff] %vm450_vm0, %v6357_v0 }
  0xa2   : > { %591 = vst.msk [vmem:[#allocation2 + $0x460] sm:$0xff] %vm450_vm0, %v6357_v0  ;;  %592 = vst.msk [vmem:[#allocation2 + $0x468] sm:$0xff] %vm450_vm0, %v6357_v0 }
  0xa3   : > { %593 = vst.msk [vmem:[#allocation2 + $0x470] sm:$0xff] %vm450_vm0, %v6357_v0  ;;  %594 = vst.msk [vmem:[#allocation2 + $0x478] sm:$0xff] %vm450_vm0, %v6357_v0 }
  0xa4   : > { %595 = vst.msk [vmem:[#allocation2 + $0x480] sm:$0xff] %vm450_vm0, %v6357_v0  ;;  %596 = vst.msk [vmem:[#allocation2 + $0x488] sm:$0xff] %vm450_vm0, %v6357_v0 }
  0xa5   : > { %597 = vst.msk [vmem:[#allocation2 + $0x490] sm:$0xff] %vm450_vm0, %v6357_v0  ;;  %598 = vst.msk [vmem:[#allocation2 + $0x498] sm:$0xff] %vm450_vm0, %v6357_v0 }
  0xa6   : > { %599 = vst.msk [vmem:[#allocation2 + $0x4a0] sm:$0xff] %vm450_vm0, %v6357_v0  ;;  %600 = vst.msk [vmem:[#allocation2 + $0x4a8] sm:$0xff] %vm450_vm0, %v6357_v0 }
  0xa7   : > { %601 = vst.msk [vmem:[#allocation2 + $0x4b0] sm:$0xff] %vm450_vm0, %v6357_v0  ;;  %602 = vst.msk [vmem:[#allocation2 + $0x4b8] sm:$0xff] %vm450_vm0, %v6357_v0 }
  0xa8   : > { %603 = vst.msk [vmem:[#allocation2 + $0x4c0] sm:$0xff] %vm450_vm0, %v6357_v0  ;;  %604 = vst.msk [vmem:[#allocation2 + $0x4c8] sm:$0xff] %vm450_vm0, %v6357_v0 }
  0xa9   : > { %605 = vst.msk [vmem:[#allocation2 + $0x4d0] sm:$0xff] %vm450_vm0, %v6357_v0  ;;  %606 = vst.msk [vmem:[#allocation2 + $0x4d8] sm:$0xff] %vm450_vm0, %v6357_v0 }
  0xaa   : > { %607 = vst.msk [vmem:[#allocation2 + $0x4e0] sm:$0xff] %vm450_vm0, %v6357_v0  ;;  %608 = vst.msk [vmem:[#allocation2 + $0x4e8] sm:$0xff] %vm450_vm0, %v6357_v0 }
  0xab   : > { %609 = vst.msk [vmem:[#allocation2 + $0x4f0] sm:$0xff] %vm450_vm0, %v6357_v0  ;;  %610 = vst.msk [vmem:[#allocation2 + $0x4f8] sm:$0xff] %vm450_vm0, %v6357_v0 }
  0xac   : > { %611 = vst.msk [vmem:[#allocation2 + $0x500] sm:$0xff] %vm450_vm0, %v6357_v0  ;;  %612 = vst.msk [vmem:[#allocation2 + $0x508] sm:$0xff] %vm450_vm0, %v6357_v0 }
  0xad   : > { %613 = vst.msk [vmem:[#allocation2 + $0x510] sm:$0xff] %vm450_vm0, %v6357_v0  ;;  %614 = vst.msk [vmem:[#allocation2 + $0x518] sm:$0xff] %vm450_vm0, %v6357_v0 }
  0xae   : > { %615 = vst.msk [vmem:[#allocation2 + $0x520] sm:$0xff] %vm450_vm0, %v6357_v0  ;;  %616 = vst.msk [vmem:[#allocation2 + $0x528] sm:$0xff] %vm450_vm0, %v6357_v0 }
  0xaf   : > { %617 = vst.msk [vmem:[#allocation2 + $0x530] sm:$0xff] %vm450_vm0, %v6357_v0  ;;  %618 = vst.msk [vmem:[#allocation2 + $0x538] sm:$0xff] %vm450_vm0, %v6357_v0 }
  0xb0   : > { %619 = vst.msk [vmem:[#allocation2 + $0x540] sm:$0xff] %vm450_vm0, %v6357_v0  ;;  %620 = vst.msk [vmem:[#allocation2 + $0x548] sm:$0xff] %vm450_vm0, %v6357_v0 }
  0xb1   : > { %621 = vst.msk [vmem:[#allocation2 + $0x550] sm:$0xff] %vm450_vm0, %v6357_v0  ;;  %622 = vst.msk [vmem:[#allocation2 + $0x558] sm:$0xff] %vm450_vm0, %v6357_v0 }
  0xb2   : > { %623 = vst.msk [vmem:[#allocation2 + $0x560] sm:$0xff] %vm450_vm0, %v6357_v0  ;;  %624 = vst.msk [vmem:[#allocation2 + $0x568] sm:$0xff] %vm450_vm0, %v6357_v0 }
  0xb3   : > { %625 = vst.msk [vmem:[#allocation2 + $0x570] sm:$0xff] %vm450_vm0, %v6357_v0  ;;  %626 = vst.msk [vmem:[#allocation2 + $0x578] sm:$0xff] %vm450_vm0, %v6357_v0 }
  0xb4   : > { %627 = vst.msk [vmem:[#allocation2 + $0x580] sm:$0xff] %vm450_vm0, %v6357_v0  ;;  %628 = vst.msk [vmem:[#allocation2 + $0x588] sm:$0xff] %vm450_vm0, %v6357_v0 }
  0xb5   : > { %629 = vst.msk [vmem:[#allocation2 + $0x590] sm:$0xff] %vm450_vm0, %v6357_v0  ;;  %630 = vst.msk [vmem:[#allocation2 + $0x598] sm:$0xff] %vm450_vm0, %v6357_v0 }
  0xb6   : > { %631 = vst.msk [vmem:[#allocation2 + $0x5a0] sm:$0xff] %vm450_vm0, %v6357_v0  ;;  %632 = vst.msk [vmem:[#allocation2 + $0x5a8] sm:$0xff] %vm450_vm0, %v6357_v0 }
  0xb7   : > { %633 = vst.msk [vmem:[#allocation2 + $0x5b0] sm:$0xff] %vm450_vm0, %v6357_v0  ;;  %634 = vst.msk [vmem:[#allocation2 + $0x5b8] sm:$0xff] %vm450_vm0, %v6357_v0 }
  0xb8   : > { %635 = vst.msk [vmem:[#allocation2 + $0x5c0] sm:$0xff] %vm450_vm0, %v6357_v0  ;;  %636 = vst.msk [vmem:[#allocation2 + $0x5c8] sm:$0xff] %vm450_vm0, %v6357_v0 }
  0xb9   : > { %637 = vst.msk [vmem:[#allocation2 + $0x5d0] sm:$0xff] %vm450_vm0, %v6357_v0  ;;  %638 = vst.msk [vmem:[#allocation2 + $0x5d8] sm:$0xff] %vm450_vm0, %v6357_v0 }
  0xba   : > { %639 = vst.msk [vmem:[#allocation2 + $0x5e0] sm:$0xff] %vm450_vm0, %v6357_v0  ;;  %640 = vst.msk [vmem:[#allocation2 + $0x5e8] sm:$0xff] %vm450_vm0, %v6357_v0 }
  0xbb   : > { %641 = vst.msk [vmem:[#allocation2 + $0x5f0] sm:$0xff] %vm450_vm0, %v6357_v0  ;;  %642 = vst.msk [vmem:[#allocation2 + $0x5f8] sm:$0xff] %vm450_vm0, %v6357_v0 }
  0xbc PF: > { %v711_v1 = vld [vmem:[%s9083_s4 + $0x10] sm:$0xff]  ;;  %v709_v2 = vld [vmem:[%s9083_s4] sm:$0xff]  ;;  %vm1350_vm1 = vcmask 1041408   ;;  %v6358_v4 = vmov 0   ;;  %v712_v6 = vld [vmem:[%s9083_s4 + $0x18] sm:$0xff]  ;;  %vm1253_vm2 = vcmask 31744  }
  0xbd   : > { %v643_v3 = vld [vmem:[%s377_s20] sm:$0xf]  ;;  %6101 = vset.pattern.permute.xlu1 %v6358_v4  ;;  %6100 = vset.pattern.permute.xlu0 %v6358_v4  ;;  %v710_v7 = vld [vmem:[%s9083_s4 + $0x8] sm:$0xff]  ;;  %v6106_v15 = vld [vmem:[%s9082_s3 + $0x10] sm:$0xff]   ;;  %vm1963_vm3 = vcmask 7168   ;;  %s9110_s26 = sld [smem:[#allocation16_spill]] }
  0xbe   : > { %v644_v5 = vpack.c.bf16 %v643_v3, %v643_v3  ;;  %785 = vperm.xlu1 %6101, %v711_v1   ;;  %775 = vperm.xlu0 %6100, %v709_v2   ;;  %v6102_v8 = vld [vmem:[%s9082_s3] sm:$0xff]   ;;  %v6104_v11 = vld [vmem:[%s9082_s3 + $0x8] sm:$0xff]   ;;  %v6107_v16 = vld [vmem:[%s9082_s3 + $0x90] sm:$0xff]   ;;  %p5710_p7 = scmp.ne.s32.totalorder %s6336_s12, 1 }
  0xbf   : > { %v6103_v10 = vld [vmem:[%s9082_s3 + $0x80] sm:$0xff]   ;;  %5814 = vmatprep.mubr.msk.bf16.mxu0 %vm1253_vm2, %v6102_v8  ;;  %v6105_v12 = vld [vmem:[%s9082_s3 + $0x88] sm:$0xff]   ;;  %v716_v17 = vld [vmem:[%s9083_s4 + $0x38] sm:$0xff] }
  0xc0   : > { %6012 = vmatprep.subr.msk.bf16.mxu0 %vm1350_vm1, %v644_v5  ;;  %6013 = vmatprep.subr.msk.bf16.mxu1 %vm1350_vm1, %v644_v5  ;;  %v1352_v9 = vsel %vm1350_vm1, %v644_v5, 0  ;;  %v714_v13 = vld [vmem:[%s9083_s4 + $0x28] sm:$0xff]  ;;  %v713_v14 = vld [vmem:[%s9083_s4 + $0x20] sm:$0xff]  ;;  %v715_v18 = vld [vmem:[%s9083_s4 + $0x30] sm:$0xff] }
  0xc1   : > { %5813 = vmatpush3.bf16.msra.mxu0 %v1352_v9  ;;  %6011 = vmatpush3.bf16.msra.mxu1 %v1352_v9  ;;  %v6108_v19 = vld [vmem:[%s9082_s3 + $0x18] sm:$0xff]   ;;  %v718_v21 = vld [vmem:[%s9083_s4 + $0x48] sm:$0xff]  ;;  %v6110_v22 = vld [vmem:[%s9082_s3 + $0x20] sm:$0xff]  }
  0xc2   : > { %5846 = vmatprep.mubr.msk.bf16.mxu1 %vm1253_vm2, %v6103_v10  ;;  %790 = vperm.xlu1 %6101, %v712_v6   ;;  %v6109_v20 = vld [vmem:[%s9082_s3 + $0x98] sm:$0xff]   ;;  %v6111_v23 = vld [vmem:[%s9082_s3 + $0xa0] sm:$0xff]   ;;  %v719_v26 = vld [vmem:[%s9083_s4 + $0x50] sm:$0xff] }
  0xc3   : > { %780 = vperm.xlu0 %6100, %v710_v7   ;;  %v717_v24 = vld [vmem:[%s9083_s4 + $0x40] sm:$0xff]  ;;  %v720_v25 = vld [vmem:[%s9083_s4 + $0x58] sm:$0xff]  ;;  %v6112_v27 = vld [vmem:[%s9082_s3 + $0x28] sm:$0xff]  }
  0xc4   : > { %5815 = vmatmul.mubr.msk.bf16.vlgmr.msra.gmra.mxu0 %vm1253_vm2, %v6104_v11  ;;  %5847 = vmatmul.mubr.msk.bf16.vlgmr.msra.gmra.mxu1 %vm1253_vm2, %v6105_v12  ;;  %v6113_v28 = vld [vmem:[%s9082_s3 + $0xa8] sm:$0xff]   ;;  %v6114_v29 = vld [vmem:[%s9082_s3 + $0x30] sm:$0xff]   ;;  %v721_v32 = vld [vmem:[%s9083_s4 + $0x60] sm:$0xff] }
  0xc5   : > { %5818 = vmatprep.mubr.msk.bf16.mxu0 %vm1253_vm2, %v6106_v15  ;;  %5850 = vmatprep.mubr.msk.bf16.mxu1 %vm1253_vm2, %v6107_v16  ;;  %v6115_v30 = vld [vmem:[%s9082_s3 + $0xb0] sm:$0xff]   ;;  %v722_v31 = vld [vmem:[%s9083_s4 + $0x68] sm:$0xff]  ;;  %v724_v33 = vld [vmem:[%s9083_s4 + $0x78] sm:$0xff] }
  0xc6   : > { %800 = vperm.xlu1 %6101, %v714_v13   ;;  %v723_v34 = vld [vmem:[%s9083_s4 + $0x70] sm:$0xff]  ;;  %v6116_v35 = vld [vmem:[%s9082_s3 + $0x38] sm:$0xff]   ;;  %v6118_v37 = vld [vmem:[%s9082_s3 + $0x40] sm:$0xff]  }
  0xc7   : > { %795 = vperm.xlu0 %6100, %v713_v14   ;;  %v6117_v36 = vld [vmem:[%s9082_s3 + $0xb8] sm:$0xff]   ;;  %v6119_v38 = vld [vmem:[%s9082_s3 + $0xc0] sm:$0xff]   ;;  %v726_v39 = vld [vmem:[%s9083_s4 + $0x88] sm:$0xff] }
  0xc8   : > { %v725_v40 = vld [vmem:[%s9083_s4 + $0x80] sm:$0xff]  ;;  %v728_v41 = vld [vmem:[%s9083_s4 + $0x98] sm:$0xff]  ;;  %v727_v42 = vld [vmem:[%s9083_s4 + $0x90] sm:$0xff] }
  0xc9   : > { %v6120_v43 = vld [vmem:[%s9082_s3 + $0x48] sm:$0xff]   ;;  %v6122_v45 = vld [vmem:[%s9082_s3 + $0x50] sm:$0xff]   ;;  %v729_v48 = vld [vmem:[%s9083_s4 + $0xa0] sm:$0xff] }
  0xca   : > { %810 = vperm.xlu1 %6101, %v716_v17   ;;  %v6121_v44 = vld [vmem:[%s9082_s3 + $0xc8] sm:$0xff]   ;;  %v6123_v46 = vld [vmem:[%s9082_s3 + $0xd0] sm:$0xff]   ;;  %v732_v49 = vld [vmem:[%s9083_s4 + $0xb8] sm:$0xff] }
  0xcb   : > { %805 = vperm.xlu0 %6100, %v715_v18   ;;  %v730_v47 = vld [vmem:[%s9083_s4 + $0xa8] sm:$0xff]  ;;  %v731_v50 = vld [vmem:[%s9083_s4 + $0xb0] sm:$0xff]  ;;  %v6124_v51 = vld [vmem:[%s9082_s3 + $0x58] sm:$0xff]  }
  0xcc   : > { %5819 = vmatmul.mubr.msk.bf16.gmra.mxu0 %vm1253_vm2, %v6108_v19  ;;  %5851 = vmatmul.mubr.msk.bf16.gmra.mxu1 %vm1253_vm2, %v6109_v20  ;;  %v6125_v52 = vld [vmem:[%s9082_s3 + $0xd8] sm:$0xff]   ;;  %v6126_v53 = vld [vmem:[%s9082_s3 + $0x60] sm:$0xff]   ;;  %v734_v55 = vld [vmem:[%s9083_s4 + $0xc8] sm:$0xff] }
  0xcd   : > { %5822 = vmatprep.mubr.msk.bf16.mxu0 %vm1253_vm2, %v6110_v22  ;;  %5854 = vmatprep.mubr.msk.bf16.mxu1 %vm1253_vm2, %v6111_v23  ;;  %v6127_v54 = vld [vmem:[%s9082_s3 + $0xe0] sm:$0xff]   ;;  %v736_v57 = vld [vmem:[%s9083_s4 + $0xd8] sm:$0xff]  ;;  %v735_v58 = vld [vmem:[%s9083_s4 + $0xd0] sm:$0xff] }
  0xce   : > { %820 = vperm.xlu1 %6101, %v718_v21   ;;  %v733_v56 = vld [vmem:[%s9083_s4 + $0xc0] sm:$0xff]  ;;  %v6128_v59 = vld [vmem:[%s9082_s3 + $0x68] sm:$0xff]   ;;  %v6130_v61 = vld [vmem:[%s9082_s3 + $0x70] sm:$0xff]  }
  0xcf   : > { %815 = vperm.xlu0 %6100, %v717_v24   ;;  %v6129_v60 = vld [vmem:[%s9082_s3 + $0xe8] sm:$0xff]   ;;  %v6131_v62 = vld [vmem:[%s9082_s3 + $0xf0] sm:$0xff]   ;;  %v737_v0 = vld [vmem:[%s9083_s4 + $0xe0] sm:$0xff] }
  0xd0   : > { %v738_v63 = vld [vmem:[%s9083_s4 + $0xe8] sm:$0xff]  ;;  %v740_v1 = vld [vmem:[%s9083_s4 + $0xf8] sm:$0xff]  ;;  %v739_v2 = vld [vmem:[%s9083_s4 + $0xf0] sm:$0xff] }
  0xd1   : > { %v6132_v3 = vld [vmem:[%s9082_s3 + $0x78] sm:$0xff]   ;;  %v742_v5 = vld [vmem:[%s9083_s4 + $0x108] sm:$0xff]  ;;  %v741_v6 = vld [vmem:[%s9083_s4 + $0x100] sm:$0xff] }
  0xd2   : > { %830 = vperm.xlu1 %6101, %v720_v25   ;;  %v6133_v4 = vld [vmem:[%s9082_s3 + $0xf8] sm:$0xff]   ;;  %v743_v8 = vld [vmem:[%s9083_s4 + $0x110] sm:$0xff]  ;;  %v746_v9 = vld [vmem:[%s9083_s4 + $0x128] sm:$0xff] }
  0xd3   : > { %825 = vperm.xlu0 %6100, %v719_v26   ;;  %v744_v7 = vld [vmem:[%s9083_s4 + $0x118] sm:$0xff]  ;;  %v745_v10 = vld [vmem:[%s9083_s4 + $0x120] sm:$0xff]  ;;  %v747_v12 = vld [vmem:[%s9083_s4 + $0x130] sm:$0xff] }
  0xd4   : > { %5823 = vmatmul.mubr.msk.bf16.gmra.mxu0 %vm1253_vm2, %v6112_v27  ;;  %5855 = vmatmul.mubr.msk.bf16.gmra.mxu1 %vm1253_vm2, %v6113_v28  ;;  %v748_v11 = vld [vmem:[%s9083_s4 + $0x138] sm:$0xff]  ;;  %v750_v13 = vld [vmem:[%s9083_s4 + $0x148] sm:$0xff]  ;;  %v749_v14 = vld [vmem:[%s9083_s4 + $0x140] sm:$0xff] }
  0xd5   : > { %5826 = vmatprep.mubr.msk.bf16.mxu0 %vm1253_vm2, %v6114_v29  ;;  %5858 = vmatprep.mubr.msk.bf16.mxu1 %vm1253_vm2, %v6115_v30  ;;  %v752_v15 = vld [vmem:[%s9083_s4 + $0x158] sm:$0xff]  ;;  %v751_v16 = vld [vmem:[%s9083_s4 + $0x150] sm:$0xff]  ;;  %v754_v17 = vld [vmem:[%s9083_s4 + $0x168] sm:$0xff] }
  0xd6   : > { %840 = vperm.xlu1 %6101, %v722_v31   ;;  %v753_v18 = vld [vmem:[%s9083_s4 + $0x160] sm:$0xff]  ;;  %v756_v19 = vld [vmem:[%s9083_s4 + $0x178] sm:$0xff]  ;;  %v755_v20 = vld [vmem:[%s9083_s4 + $0x170] sm:$0xff] }
  0xd7   : > { %835 = vperm.xlu0 %6100, %v721_v32   ;;  %v758_v21 = vld [vmem:[%s9083_s4 + $0x188] sm:$0xff]  ;;  %v757_v22 = vld [vmem:[%s9083_s4 + $0x180] sm:$0xff]  ;;  %v760_v23 = vld [vmem:[%s9083_s4 + $0x198] sm:$0xff] }
  0xd8   : > { %v759_v24 = vld [vmem:[%s9083_s4 + $0x190] sm:$0xff]  ;;  %v762_v25 = vld [vmem:[%s9083_s4 + $0x1a8] sm:$0xff]  ;;  %v761_v26 = vld [vmem:[%s9083_s4 + $0x1a0] sm:$0xff] }
  0xd9   : > { %v764_v27 = vld [vmem:[%s9083_s4 + $0x1b8] sm:$0xff]  ;;  %v763_v28 = vld [vmem:[%s9083_s4 + $0x1b0] sm:$0xff]  ;;  %v766_v29 = vld [vmem:[%s9083_s4 + $0x1c8] sm:$0xff] }
  0xda   : > { %850 = vperm.xlu1 %6101, %v724_v33   ;;  %v765_v30 = vld [vmem:[%s9083_s4 + $0x1c0] sm:$0xff]  ;;  %v768_v31 = vld [vmem:[%s9083_s4 + $0x1d8] sm:$0xff]  ;;  %v767_v32 = vld [vmem:[%s9083_s4 + $0x1d0] sm:$0xff] }
  0xdb   : > { %845 = vperm.xlu0 %6100, %v723_v34   ;;  %v770_v33 = vld [vmem:[%s9083_s4 + $0x1e8] sm:$0xff]  ;;  %v769_v34 = vld [vmem:[%s9083_s4 + $0x1e0] sm:$0xff] }
  0xdc   : > { %5827 = vmatmul.mubr.msk.bf16.gmra.mxu0 %vm1253_vm2, %v6116_v35  ;;  %5859 = vmatmul.mubr.msk.bf16.gmra.mxu1 %vm1253_vm2, %v6117_v36  ;;  %v771_v35 = vld [vmem:[%s9083_s4 + $0x1f0] sm:$0xff] }
  0xdd   : > { %5830 = vmatprep.mubr.msk.bf16.mxu0 %vm1253_vm2, %v6118_v37  ;;  %5862 = vmatprep.mubr.msk.bf16.mxu1 %vm1253_vm2, %v6119_v38 }
  0xde   : > { %860 = vperm.xlu1 %6101, %v726_v39  }
  0xdf   : > { %855 = vperm.xlu0 %6100, %v725_v40  }
  0xe2   : > { %870 = vperm.xlu1 %6101, %v728_v41  }
  0xe3   : > { %865 = vperm.xlu0 %6100, %v727_v42  }
  0xe4   : > { %5831 = vmatmul.mubr.msk.bf16.gmra.mxu0 %vm1253_vm2, %v6120_v43  ;;  %5863 = vmatmul.mubr.msk.bf16.gmra.mxu1 %vm1253_vm2, %v6121_v44  ;;  %v2028_v44 = vld [vmem:[%s386_s19] sm:$0xf] }
  0xe5   : > { %5834 = vmatprep.mubr.msk.bf16.mxu0 %vm1253_vm2, %v6122_v45  ;;  %5866 = vmatprep.mubr.msk.bf16.mxu1 %vm1253_vm2, %v6123_v46 }
  0xe6   : > { %880 = vperm.xlu1 %6101, %v730_v47   ;;  %v2029_v47 = vpack.c.bf16 %v2028_v44, %v2028_v44 }
  0xe7   : > { %875 = vperm.xlu0 %6100, %v729_v48  }
  0xe8   : > { %6014 = vmatprep.subr.msk.bf16.mxu1 %vm1350_vm1, %v2029_v47  ;;  %v2735_v48 = vsel %vm1350_vm1, %v2029_v47, 0 }
  0xe9   : > { %5879 = vmatpush3.bf16.msra.mxu1 %v2735_v48 }
  0xea   : > { %890 = vperm.xlu1 %6101, %v732_v49   ;;  %v6134_v49 = vld [vmem:[%s9084_s5] sm:$0xff]  }
  0xeb   : > { %885 = vperm.xlu0 %6100, %v731_v50   ;;  %v6135_v50 = vld [vmem:[%s9084_s5 + $0x8] sm:$0xff]  }
  0xec   : > { %5835 = vmatmul.mubr.msk.bf16.gmra.mxu0 %vm1253_vm2, %v6124_v51  ;;  %5867 = vmatmul.mubr.msk.bf16.gmra.mxu1 %vm1253_vm2, %v6125_v52 }
  0xed   : > { %5838 = vmatprep.mubr.msk.bf16.mxu0 %vm1253_vm2, %v6126_v53  ;;  %5870 = vmatprep.mubr.msk.bf16.mxu1 %vm1253_vm2, %v6127_v54 }
  0xee   : > { %900 = vperm.xlu1 %6101, %v734_v55   ;;  %v6136_v55 = vld [vmem:[%s9084_s5 + $0x10] sm:$0xff]  }
  0xef   : > { %895 = vperm.xlu0 %6100, %v733_v56   ;;  %v6137_v56 = vld [vmem:[%s9084_s5 + $0x18] sm:$0xff]  }
  0xf2   : > { %910 = vperm.xlu1 %6101, %v736_v57  }
  0xf3   : > { %905 = vperm.xlu0 %6100, %v735_v58  }
  0xf4   : > { %5839 = vmatmul.mubr.msk.bf16.gmra.mxu0 %vm1253_vm2, %v6128_v59  ;;  %5871 = vmatmul.mubr.msk.bf16.gmra.mxu1 %vm1253_vm2, %v6129_v60 }
  0xf5   : > { %5842 = vmatprep.mubr.msk.bf16.mxu0 %vm1253_vm2, %v6130_v61  ;;  %5874 = vmatprep.mubr.msk.bf16.mxu1 %vm1253_vm2, %v6131_v62  ;;  %v6138_v61 = vld [vmem:[%s9084_s5 + $0x20] sm:$0xff]   ;;  %v6139_v62 = vld [vmem:[%s9084_s5 + $0x28] sm:$0xff]  }
  0xf6   : > { %920 = vperm.xlu1 %6101, %v738_v63  }
  0xf7   : > { %915 = vperm.xlu0 %6100, %v737_v0  }
  0xfa   : > { %930 = vperm.xlu1 %6101, %v740_v1  }
  0xfb   : > { %925 = vperm.xlu0 %6100, %v739_v2  }
  0xfc   : > { %5843 = vmatmul.mubr.msk.bf16.gmra.mxu0 %vm1253_vm2, %v6132_v3  ;;  %5875 = vmatmul.mubr.msk.bf16.gmra.mxu1 %vm1253_vm2, %v6133_v4  ;;  %v6140_v3 = vld [vmem:[%s9084_s5 + $0x30] sm:$0xff]   ;;  %v6141_v4 = vld [vmem:[%s9084_s5 + $0x38] sm:$0xff]  }
  0xfd   : > { %5880 = vmatprep.mubr.msk.bf16.mxu1 %vm1253_vm2, %v6134_v49 }
  0xfe   : > { %940 = vperm.xlu1 %6101, %v742_v5  }
  0xff   : > { %935 = vperm.xlu0 %6100, %v741_v6  }
 0x102   : > { %950 = vperm.xlu1 %6101, %v744_v7  }
 0x103   : > { %945 = vperm.xlu0 %6100, %v743_v8   ;;  %v6142_v8 = vld [vmem:[%s9084_s5 + $0x40] sm:$0xff]  }
 0x104   : > { %5881 = vmatmul.mubr.msk.bf16.vlgmr.msra.gmra.mxu1 %vm1253_vm2, %v6135_v50 }
 0x105   : > { %5884 = vmatprep.mubr.msk.bf16.mxu1 %vm1253_vm2, %v6136_v55 }
 0x106   : > { %960 = vperm.xlu1 %6101, %v746_v9   ;;  %v6143_v9 = vld [vmem:[%s9084_s5 + $0x48] sm:$0xff]  }
 0x107   : > { %955 = vperm.xlu0 %6100, %v745_v10  }
 0x10a   : > { %970 = vperm.xlu1 %6101, %v748_v11  }
 0x10b   : > { %965 = vperm.xlu0 %6100, %v747_v12  }
 0x10c   : > { %5885 = vmatmul.mubr.msk.bf16.gmra.mxu1 %vm1253_vm2, %v6137_v56 }
 0x10d   : > { %5888 = vmatprep.mubr.msk.bf16.mxu1 %vm1253_vm2, %v6138_v61 }
 0x10e   : > { %980 = vperm.xlu1 %6101, %v750_v13   ;;  %v6144_v13 = vld [vmem:[%s9084_s5 + $0x50] sm:$0xff]  }
 0x10f   : > { %975 = vperm.xlu0 %6100, %v749_v14   ;;  %v6145_v14 = vld [vmem:[%s9084_s5 + $0x58] sm:$0xff]  }
 0x112   : > { %990 = vperm.xlu1 %6101, %v752_v15  }
 0x113   : > { %985 = vperm.xlu0 %6100, %v751_v16  }
 0x114   : > { %5889 = vmatmul.mubr.msk.bf16.gmra.mxu1 %vm1253_vm2, %v6139_v62 }
 0x115   : > { %5892 = vmatprep.mubr.msk.bf16.mxu1 %vm1253_vm2, %v6140_v3 }
 0x116   : > { %1000 = vperm.xlu1 %6101, %v754_v17  }
 0x117   : > { %995 = vperm.xlu0 %6100, %v753_v18  }
 0x11a   : > { %1010 = vperm.xlu1 %6101, %v756_v19   ;;  %v6146_v19 = vld [vmem:[%s9084_s5 + $0x60] sm:$0xff]  }
 0x11b   : > { %1005 = vperm.xlu0 %6100, %v755_v20   ;;  %v6147_v20 = vld [vmem:[%s9084_s5 + $0x68] sm:$0xff]  }
 0x11c   : > { %5893 = vmatmul.mubr.msk.bf16.gmra.mxu1 %vm1253_vm2, %v6141_v4 }
 0x11d   : > { %5896 = vmatprep.mubr.msk.bf16.mxu1 %vm1253_vm2, %v6142_v8 }
 0x11e   : > { %1020 = vperm.xlu1 %6101, %v758_v21  }
 0x11f   : > { %1015 = vperm.xlu0 %6100, %v757_v22  }
 0x122   : > { %1030 = vperm.xlu1 %6101, %v760_v23  }
 0x123   : > { %1025 = vperm.xlu0 %6100, %v759_v24  }
 0x124   : > { %5897 = vmatmul.mubr.msk.bf16.gmra.mxu1 %vm1253_vm2, %v6143_v9 }
 0x125   : > { %5900 = vmatprep.mubr.msk.bf16.mxu1 %vm1253_vm2, %v6144_v13 }
 0x126   : > { %1040 = vperm.xlu1 %6101, %v762_v25  }
 0x127   : > { %1035 = vperm.xlu0 %6100, %v761_v26  }
 0x12a   : > { %1050 = vperm.xlu1 %6101, %v764_v27   ;;  %v6148_v27 = vld [vmem:[%s9084_s5 + $0x70] sm:$0xff]  }
 0x12b   : > { %1045 = vperm.xlu0 %6100, %v763_v28   ;;  %v6149_v28 = vld [vmem:[%s9084_s5 + $0x78] sm:$0xff]  }
 0x12c   : > { %5901 = vmatmul.mubr.msk.bf16.gmra.mxu1 %vm1253_vm2, %v6145_v14 }
 0x12d   : > { %5904 = vmatprep.mubr.msk.bf16.mxu1 %vm1253_vm2, %v6146_v19 }
 0x12e   : > { %1060 = vperm.xlu1 %6101, %v766_v29   ;;  %v6150_v29 = vld [vmem:[%s9084_s5 + $0x80] sm:$0xff]  }
 0x12f   : > { %1055 = vperm.xlu0 %6100, %v765_v30  }
 0x132   : > { %1070 = vperm.xlu1 %6101, %v768_v31  }
 0x133   : > { %1065 = vperm.xlu0 %6100, %v767_v32  }
 0x134   : > { %5905 = vmatmul.mubr.msk.bf16.gmra.mxu1 %vm1253_vm2, %v6147_v20 }
 0x135   : > { %5908 = vmatprep.mubr.msk.bf16.mxu1 %vm1253_vm2, %v6148_v27 }
 0x136   : > { %1080 = vperm.xlu1 %6101, %v770_v33  }
 0x137   : > { %1075 = vperm.xlu0 %6100, %v769_v34  }
 0x139   : > { %v7266_v36 = vpop.permute.xlu1 %785  ;;  %v7268_v37 = vpop.permute.xlu0 %775 }
 0x13b   : > { %1085 = vperm.xlu0 %6100, %v771_v35  }
 0x13c   : > { %5909 = vmatmul.mubr.msk.bf16.gmra.mxu1 %vm1253_vm2, %v6149_v28 }
 0x13d   : > { %v7270_v38 = vpop.permute.xlu1 %790  ;;  %5912 = vmatprep.mubr.msk.bf16.mxu1 %vm1253_vm2, %v6150_v29 }
 0x13e   : > { %v7272_v39 = vpop.permute.xlu0 %780 }
 0x141   : > { %v7274_v40 = vpop.permute.xlu1 %800 }
 0x142   : > { %v7276_v41 = vpop.permute.xlu0 %795 }
 0x145   : > { %v7278_v42 = vpop.permute.xlu1 %810 }
 0x146   : > { %v7280_v43 = vpop.permute.xlu0 %805 }
 0x149   : > { %v7284_v45 = vpop.permute.xlu1 %820 }
 0x14a   : > { %v7286_v46 = vpop.permute.xlu0 %815 }
 0x14d   : > { %v7296_v51 = vpop.permute.xlu1 %830 }
 0x14e   : > { %v7298_v52 = vpop.permute.xlu0 %825 }
 0x151   : > { %v7302_v53 = vpop.permute.xlu1 %840 }
 0x152   : > { %v7304_v54 = vpop.permute.xlu0 %835 }
 0x155   : > { %v7312_v57 = vpop.permute.xlu1 %850 }
 0x156   : > { %v7314_v58 = vpop.permute.xlu0 %845 }
 0x159   : > { %v7318_v59 = vpop.permute.xlu1 %860 }
 0x15a   : > { %v7320_v60 = vpop.permute.xlu0 %855 }
 0x15d   : > { %v7328_v63 = vpop.permute.xlu1 %870 }
 0x15e   : > { %v7330_v0 = vpop.permute.xlu0 %865 }
 0x161   : > { %v7336_v2 = vpop.permute.xlu1 %880 }
 0x162   : > { %v7334_v1 = vpop.permute.xlu0 %875 }
 0x165   : > { %v7348_v6 = vpop.permute.xlu1 %890 }
 0x166   : > { %v7344_v5 = vpop.permute.xlu0 %885 }
 0x169   : > { %v7361_v11 = vpop.permute.xlu1 %900 }
 0x16a   : > { %v7350_v7 = vpop.permute.xlu0 %895 }
 0x16d   : > { %v7372_v15 = vpop.permute.xlu1 %910 }
 0x16e   : > { %v7358_v10 = vpop.permute.xlu0 %905 }
 0x171   : > { %v7378_v17 = vpop.permute.xlu1 %920 }
 0x172   : > { %v7364_v12 = vpop.permute.xlu0 %915 }
 0x175   : > { %v7388_v21 = vpop.permute.xlu1 %930 }
 0x176   : > { %v7374_v16 = vpop.permute.xlu0 %925 }
 0x179   : > { %v941_v34 = vpop.permute.xlu1 %940 }
 0x17a   : > { %v936_v18 = vpop.permute.xlu0 %935 }
 0x17d   : > { %v951_v4 = vpop.permute.xlu1 %950 }
 0x17e   : > { %v946_v22 = vpop.permute.xlu0 %945 }
 0x182   : > { %v956_v56 = vpop.permute.xlu0 %955 }
 0x184   : > { %v5816_v23 = vpop.f32.mrf.mxu0  ;;  %v5848_v24 = vpop.f32.mrf.mxu1 }
 0x185   : > { %v1397_v25 = vadd.f32 %v5816_v23, %v7266_v36  ;;  %v1525_v26 = vadd.f32 %v5848_v24, %v946_v22 }
 0x186   : > { %v1388_v32 = vpop.f32.mrf.mxu0  ;;  %v1516_v33 = vpop.f32.mrf.mxu1 }
 0x187   : > { %v1645_v30 = vmax.f32 %v1397_v25, 0.0  ;;  %v1677_v31 = vmax.f32 %v1525_v26, 0.0  ;;  %v1389_v35 = vadd.f32 %v1388_v32, %v7268_v37  ;;  %v1517_v36 = vadd.f32 %v1516_v33, %v936_v18  ;;  %v6151_v37 = vld [vmem:[%s9084_s5 + $0x88] sm:$0xff]   ;;  %v961_v26 = vpop.permute.xlu1 %960 }
 0x188   : > { %v5817_v44 = vpop.f32.mrf.mxu0  ;;  %v5849_v47 = vpop.f32.mrf.mxu1  ;;  %5913 = vmatmul.mubr.msk.bf16.gmra.mxu1 %vm1253_vm2, %v6151_v37 }
 0x189   : > { %1839 = vadd.xlane.f32.xlu1 %v1677_v31  ;;  %1775 = vadd.xlane.f32.xlu0 %v1645_v30  ;;  %v1643_v48 = vmax.f32 %v1389_v35, 0.0  ;;  %v1675_v49 = vmax.f32 %v1517_v36, 0.0  ;;  %v1400_v50 = vadd.f32 %v5817_v44, %v7270_v38  ;;  %v1528_v9 = vadd.f32 %v5849_v47, %v951_v4 }
 0x18a   : > { %v1391_v55 = vpop.f32.mrf.mxu0  ;;  %v1519_v62 = vpop.f32.mrf.mxu1 }
 0x18b   : > { %v1392_v61 = vadd.f32 %v1391_v55, %v7272_v39  ;;  %v1646_v8 = vmax.f32 %v1400_v50, 0.0  ;;  %v966_v39 = vpop.permute.xlu0 %965  ;;  %v1678_v20 = vmax.f32 %v1528_v9, 0.0  ;;  %v1520_v22 = vadd.f32 %v1519_v62, %v941_v34  ;;  %v6153_v34 = vld [vmem:[%s9084_s5 + $0x98] sm:$0xff]   ;;  %v971_v44 = vpop.permute.xlu1 %970 }
 0x18c   : > { %v5820_v3 = vpop.f32.mrf.mxu0  ;;  %v5852_v38 = vpop.f32.mrf.mxu1 }
 0x18d   : > { %1835 = vadd.xlane.f32.xlu1 %v1675_v49  ;;  %1771 = vadd.xlane.f32.xlu0 %v1643_v48  ;;  %v1644_v13 = vmax.f32 %v1392_v61, 0.0  ;;  %v1413_v14 = vadd.f32 %v5820_v3, %v7280_v43  ;;  %v1541_v24 = vadd.f32 %v5852_v38, %v966_v39  ;;  %v6152_v43 = vld [vmem:[%s9084_s5 + $0x90] sm:$0xff]   ;;  %v1676_v29 = vmax.f32 %v1520_v22, 0.0  ;;  %v6154_v61 = vld [vmem:[%s9084_s5 + $0xa0] sm:$0xff]  }
 0x18e   : > { %v1404_v18 = vpop.f32.mrf.mxu0  ;;  %v1532_v27 = vpop.f32.mrf.mxu1  ;;  %5916 = vmatprep.mubr.msk.bf16.mxu1 %vm1253_vm2, %v6152_v43 }
 0x18f   : > { %v1649_v23 = vmax.f32 %v1413_v14, 0.0  ;;  %v1681_v30 = vmax.f32 %v1541_v24, 0.0  ;;  %v1405_v31 = vadd.f32 %v1404_v18, %v7276_v41  ;;  %v976_v47 = vpop.permute.xlu0 %975  ;;  %v1533_v49 = vadd.f32 %v1532_v27, %v956_v56  ;;  %v6155_v56 = vld [vmem:[%s9084_s5 + $0xa8] sm:$0xff]   ;;  %v981_v14 = vpop.permute.xlu1 %980 }
 0x190   : > { %v5821_v19 = vpop.f32.mrf.mxu0  ;;  %v5853_v35 = vpop.f32.mrf.mxu1  ;;  %5917 = vmatmul.mubr.msk.bf16.gmra.mxu1 %vm1253_vm2, %v6153_v34  ;;  %v6158_v34 = vld [vmem:[%s9084_s5 + $0xc0] sm:$0xff]  }
 0x191   : > { %1773 = vadd.xlane.f32.xlu1 %v1644_v13  ;;  %1777 = vadd.xlane.f32.xlu0 %v1646_v8  ;;  %v1416_v32 = vadd.f32 %v5821_v19, %v7278_v42  ;;  %v1647_v48 = vmax.f32 %v1405_v31, 0.0  ;;  %v1544_v50 = vadd.f32 %v5853_v35, %v971_v44  ;;  %v1679_v62 = vmax.f32 %v1533_v49, 0.0 }
 0x192   : > { %v1407_v25 = vpop.f32.mrf.mxu0  ;;  %v1535_v42 = vpop.f32.mrf.mxu1  ;;  %5920 = vmatprep.mubr.msk.bf16.mxu1 %vm1253_vm2, %v6154_v61 }
 0x193   : > { %v1650_v41 = vmax.f32 %v1416_v32, 0.0  ;;  %v1682_v37 = vmax.f32 %v1544_v50, 0.0  ;;  %v1408_v3 = vadd.f32 %v1407_v25, %v7274_v40  ;;  %v986_v13 = vpop.permute.xlu0 %985  ;;  %v1536_v38 = vadd.f32 %v1535_v42, %v961_v26  ;;  %v6157_v26 = vld [vmem:[%s9084_s5 + $0xb8] sm:$0xff]   ;;  %v991_v43 = vpop.permute.xlu1 %990 }
 0x194   : > { %v5824_v28 = vpop.f32.mrf.mxu0  ;;  %v5856_v8 = vpop.f32.mrf.mxu1 }
 0x195   : > { %1783 = vadd.xlane.f32.xlu1 %v1649_v23  ;;  %1841 = vadd.xlane.f32.xlu0 %v1678_v20  ;;  %v1429_v4 = vadd.f32 %v5824_v28, %v7298_v52  ;;  %v1648_v18 = vmax.f32 %v1408_v3, 0.0  ;;  %v1557_v40 = vadd.f32 %v5856_v8, %v986_v13  ;;  %v6156_v20 = vld [vmem:[%s9084_s5 + $0xb0] sm:$0xff]   ;;  %v1680_v22 = vmax.f32 %v1536_v38, 0.0  ;;  %v6161_v13 = vld [vmem:[%s9084_s5 + $0xd8] sm:$0xff]  }
 0x196   : > { %v1420_v33 = vpop.f32.mrf.mxu0  ;;  %v1548_v39 = vpop.f32.mrf.mxu1  ;;  %v6160_v3 = vld [vmem:[%s9084_s5 + $0xd0] sm:$0xff]  }
 0x197   : > { %v1653_v19 = vmax.f32 %v1429_v4, 0.0  ;;  %v1685_v23 = vmax.f32 %v1557_v40, 0.0  ;;  %v1421_v24 = vadd.f32 %v1420_v33, %v7286_v46  ;;  %v1549_v31 = vadd.f32 %v1548_v39, %v976_v47  ;;  %v6159_v47 = vld [vmem:[%s9084_s5 + $0xc8] sm:$0xff]   ;;  %v1001_v42 = vpop.permute.xlu1 %1000 }
 0x198   : > { %v5825_v36 = vpop.f32.mrf.mxu0  ;;  %5921 = vmatmul.mubr.msk.bf16.gmra.mxu1 %vm1253_vm2, %v6155_v56  ;;  %v5857_v27 = vpop.f32.mrf.mxu1 }
 0x199   : > { %1847 = vadd.xlane.f32.xlu1 %v1681_v30  ;;  %1837 = vadd.xlane.f32.xlu0 %v1676_v29  ;;  %v1432_v25 = vadd.f32 %v5825_v36, %v7296_v51  ;;  %v996_v29 = vpop.permute.xlu0 %995  ;;  %v1651_v30 = vmax.f32 %v1421_v24, 0.0  ;;  %v1560_v46 = vadd.f32 %v5857_v27, %v991_v43  ;;  %v1683_v35 = vmax.f32 %v1549_v31, 0.0  ;;  %v6163_v27 = vld [vmem:[%s9084_s5 + $0xe8] sm:$0xff]  }
 0x19a   : > { %v1423_v55 = vpop.f32.mrf.mxu0  ;;  %5924 = vmatprep.mubr.msk.bf16.mxu1 %vm1253_vm2, %v6156_v20  ;;  %v1551_v33 = vpop.f32.mrf.mxu1 }
 0x19b   : > { %v1654_v32 = vmax.f32 %v1432_v25, 0.0  ;;  %v1686_v36 = vmax.f32 %v1560_v46, 0.0  ;;  %v1424_v44 = vadd.f32 %v1423_v55, %v7284_v45  ;;  %v1011_v38 = vpop.permute.xlu1 %1010 }
 0x19c   : > { %v5828_v9 = vpop.f32.mrf.mxu0  ;;  %v5860_v49 = vpop.f32.mrf.mxu1 }
 0x19d   : > { %1779 = vadd.xlane.f32.xlu1 %v1647_v48  ;;  %1785 = vadd.xlane.f32.xlu0 %v1650_v41  ;;  %v1445_v48 = vadd.f32 %v5828_v9, %v7314_v58  ;;  %v1006_v50 = vpop.permute.xlu0 %1005  ;;  %v1652_v61 = vmax.f32 %v1424_v44, 0.0 }
 0x19e   : > { %v1436_v52 = vpop.f32.mrf.mxu0  ;;  %v1573_v45 = vadd.f32 %v5860_v49, %v1006_v50  ;;  %v1564_v55 = vpop.f32.mrf.mxu1 }
 0x19f   : > { %v1437_v8 = vadd.f32 %v1436_v52, %v7304_v54  ;;  %v1565_v39 = vadd.f32 %v1564_v55, %v996_v29 }
 0x1a0   : > { %v5829_v28 = vpop.f32.mrf.mxu0  ;;  %5925 = vmatmul.mubr.msk.bf16.gmra.mxu1 %vm1253_vm2, %v6157_v26  ;;  %v1689_v56 = vmax.f32 %v1573_v45, 0.0 }
 0x1a1   : > { %1843 = vadd.xlane.f32.xlu1 %v1679_v62  ;;  %1849 = vadd.xlane.f32.xlu0 %v1682_v37  ;;  %v1552_v62 = vadd.f32 %v1551_v33, %v981_v14  ;;  %v1657_v37 = vmax.f32 %v1445_v48, 0.0  ;;  %v1448_v9 = vadd.f32 %v5829_v28, %v7312_v57  ;;  %v5861_v14 = vpop.f32.mrf.mxu1  ;;  %v1655_v40 = vmax.f32 %v1437_v8, 0.0  ;;  %v6165_v48 = vld [vmem:[%s9084_s5 + $0xf8] sm:$0xff]  }
 0x1a2   : > { %v1439_v51 = vpop.f32.mrf.mxu0  ;;  %5928 = vmatprep.mubr.msk.bf16.mxu1 %vm1253_vm2, %v6158_v34  ;;  %v1576_v54 = vadd.f32 %v5861_v14, %v1011_v38 }
 0x1a3   : > { %v1684_v4 = vmax.f32 %v1552_v62, 0.0  ;;  %v1658_v20 = vmax.f32 %v1448_v9, 0.0  ;;  %v1567_v52 = vpop.f32.mrf.mxu1  ;;  %v1440_v25 = vadd.f32 %v1439_v51, %v7302_v53  ;;  %v6164_v51 = vld [vmem:[%s9084_s5 + $0xf0] sm:$0xff]  }
 0x1a4   : > { %v5832_v41 = vpop.f32.mrf.mxu0  ;;  %v1690_v24 = vmax.f32 %v1576_v54, 0.0 }
 0x1a5   : > { %1791 = vadd.xlane.f32.xlu1 %v1653_v19  ;;  %1781 = vadd.xlane.f32.xlu0 %v1648_v18  ;;  %v1016_v19 = vpop.permute.xlu0 %1015  ;;  %v1461_v26 = vadd.f32 %v5832_v41, %v7330_v0  ;;  %v5864_v28 = vpop.f32.mrf.mxu1  ;;  %v1656_v31 = vmax.f32 %v1440_v25, 0.0 }
 0x1a6   : > { %v1452_v58 = vpop.f32.mrf.mxu0 }
 0x1a7   : > { %v1661_v46 = vmax.f32 %v1461_v26, 0.0  ;;  %v1580_v33 = vpop.f32.mrf.mxu1 }
 0x1a8   : > { %5929 = vmatmul.mubr.msk.bf16.gmra.mxu1 %vm1253_vm2, %v6159_v47  ;;  %v5833_v18 = vpop.f32.mrf.mxu0 }
 0x1a9   : > { %1855 = vadd.xlane.f32.xlu1 %v1685_v23  ;;  %1845 = vadd.xlane.f32.xlu0 %v1680_v22  ;;  %v6162_v22 = vld [vmem:[%s9084_s5 + $0xe0] sm:$0xff]   ;;  %v1687_v23 = vmax.f32 %v1565_v39, 0.0  ;;  %v1026_v29 = vpop.permute.xlu0 %1025  ;;  %v1464_v44 = vadd.f32 %v5833_v18, %v7328_v63  ;;  %v5865_v47 = vpop.f32.mrf.mxu1 }
 0x1aa   : > { %5932 = vmatprep.mubr.msk.bf16.mxu1 %vm1253_vm2, %v6160_v3  ;;  %v1455_v57 = vpop.f32.mrf.mxu0  ;;  %v1589_v53 = vadd.f32 %v5864_v28, %v1026_v29 }
 0x1ab   : > { %v1662_v62 = vmax.f32 %v1464_v44, 0.0 }
 0x1ac   : > { %v5836_v43 = vpop.f32.mrf.mxu0 }
 0x1ad   : > { %1787 = vadd.xlane.f32.xlu1 %v1651_v30  ;;  %1793 = vadd.xlane.f32.xlu0 %v1654_v32  ;;  %v1021_v30 = vpop.permute.xlu1 %1020  ;;  %v1568_v32 = vadd.f32 %v1567_v52, %v1001_v42  ;;  %v1036_v50 = vpop.permute.xlu0 %1035  ;;  %v1477_v3 = vadd.f32 %v5836_v43, %v7344_v5 }
 0x1ae   : > { %v1468_v0 = vpop.f32.mrf.mxu0 }
 0x1af   : > { %v1688_v34 = vmax.f32 %v1568_v32, 0.0  ;;  %v1665_v14 = vmax.f32 %v1477_v3, 0.0 }
 0x1b0   : > { %5933 = vmatmul.mubr.msk.bf16.gmra.mxu1 %vm1253_vm2, %v6161_v13  ;;  %v5837_v49 = vpop.f32.mrf.mxu0 }
 0x1b1   : > { %1851 = vadd.xlane.f32.xlu1 %v1683_v35  ;;  %1857 = vadd.xlane.f32.xlu0 %v1686_v36  ;;  %v1693_v35 = vmax.f32 %v1589_v53, 0.0  ;;  %v1453_v36 = vadd.f32 %v1452_v58, %v7320_v60  ;;  %v1031_v41 = vpop.permute.xlu1 %1030  ;;  %v1456_v58 = vadd.f32 %v1455_v57, %v7318_v59  ;;  %v1046_v8 = vpop.permute.xlu0 %1045  ;;  %v1480_v59 = vadd.f32 %v5837_v49, %v7348_v6 }
 0x1b2   : > { %5936 = vmatprep.mubr.msk.bf16.mxu1 %vm1253_vm2, %v6162_v22  ;;  %v1592_v60 = vadd.f32 %v5865_v47, %v1031_v41  ;;  %v1471_v63 = vpop.f32.mrf.mxu0 }
 0x1b3   : > { %v1659_v42 = vmax.f32 %v1453_v36, 0.0  ;;  %v1660_v9 = vmax.f32 %v1456_v58, 0.0  ;;  %v1666_v22 = vmax.f32 %v1480_v59, 0.0 }
 0x1b4   : > { %v1694_v55 = vmax.f32 %v1592_v60, 0.0 }
 0x1b5   : > { %1799 = vadd.xlane.f32.xlu1 %v1657_v37  ;;  %1789 = vadd.xlane.f32.xlu0 %v1652_v61  ;;  %v1581_v61 = vadd.f32 %v1580_v33, %v1016_v19  ;;  %v1583_v37 = vpop.f32.mrf.mxu1  ;;  %v1041_v26 = vpop.permute.xlu1 %1040 }
 0x1b6   : > { %v1584_v13 = vadd.f32 %v1583_v37, %v1021_v30  ;;  %v1056_v33 = vpop.permute.xlu0 %1055 }
 0x1b7   : > { %v1691_v45 = vmax.f32 %v1581_v61, 0.0 }
 0x1b8   : > { %5937 = vmatmul.mubr.msk.bf16.gmra.mxu1 %vm1253_vm2, %v6163_v27 }
 0x1b9   : > { %1863 = vadd.xlane.f32.xlu1 %v1689_v56  ;;  %1853 = vadd.xlane.f32.xlu0 %v1684_v4  ;;  %v5868_v4 = vpop.f32.mrf.mxu1  ;;  %v5840_v56 = vpop.f32.mrf.mxu0 }
 0x1ba   : > { %5940 = vmatprep.mubr.msk.bf16.mxu1 %vm1253_vm2, %v6164_v51  ;;  %v1605_v18 = vadd.f32 %v5868_v4, %v1046_v8  ;;  %v1051_v44 = vpop.permute.xlu1 %1050 }
 0x1bb   : > { %v1596_v38 = vpop.f32.mrf.mxu1  ;;  %v1484_v19 = vpop.f32.mrf.mxu0 }
 0x1bc   : > { %v1697_v39 = vmax.f32 %v1605_v18, 0.0  ;;  %v1597_v57 = vadd.f32 %v1596_v38, %v1036_v50  ;;  %v1485_v32 = vadd.f32 %v1484_v19, %v7350_v7  ;;  %v1066_v50 = vpop.permute.xlu0 %1065 }
 0x1bd   : > { %1795 = vadd.xlane.f32.xlu1 %v1655_v40  ;;  %1801 = vadd.xlane.f32.xlu0 %v1658_v20  ;;  %v1692_v40 = vmax.f32 %v1584_v13, 0.0  ;;  %v1469_v20 = vadd.f32 %v1468_v0, %v7334_v1  ;;  %v5869_v5 = vpop.f32.mrf.mxu1  ;;  %v5841_v54 = vpop.f32.mrf.mxu0  ;;  %v1493_v1 = vadd.f32 %v5840_v56, %v7358_v10 }
 0x1be   : > { %v1695_v27 = vmax.f32 %v1597_v57, 0.0  ;;  %v1667_v0 = vmax.f32 %v1485_v32, 0.0  ;;  %v1061_v60 = vpop.permute.xlu1 %1060  ;;  %v1608_v37 = vadd.f32 %v5869_v5, %v1051_v44  ;;  %v1709_v57 = vld [vmem:[#allocation2 + $0x10] sm:$0xff]  ;;  %v1710_v32 = vld [vmem:[#allocation2 + $0x18] sm:$0xff] }
 0x1bf   : > { %v1663_v52 = vmax.f32 %v1469_v20, 0.0  ;;  %v1487_v25 = vpop.f32.mrf.mxu0 }
 0x1c0   : > { %5941 = vmatmul.mubr.msk.bf16.gmra.mxu1 %vm1253_vm2, %v6165_v48  ;;  %v1698_v58 = vmax.f32 %v1608_v37, 0.0 }
 0x1c1   : > { %1859 = vadd.xlane.f32.xlu1 %v1687_v23  ;;  %1865 = vadd.xlane.f32.xlu0 %v1690_v24  ;;  %v1472_v23 = vadd.f32 %v1471_v63, %v7336_v2  ;;  %v1599_v24 = vpop.f32.mrf.mxu1  ;;  %v5844_v29 = vpop.f32.mrf.mxu0  ;;  %v1496_v2 = vadd.f32 %v5841_v54, %v7372_v15  ;;  %v772_v54 = vld [vmem:[%s9083_s4 + $0x1f8] sm:$0xff] }
 0x1c2   : > { %v1600_v43 = vadd.f32 %v1599_v24, %v1041_v26  ;;  %v1509_v10 = vadd.f32 %v5844_v29, %v7374_v16  ;;  %v1071_v8 = vpop.permute.xlu1 %1070  ;;  %v2094_v26 = vld [vmem:[%s9085_s6] sm:$0xff] }
 0x1c3   : > { %v1664_v28 = vmax.f32 %v1472_v23, 0.0  ;;  %v5872_v6 = vpop.f32.mrf.mxu1  ;;  %v1500_v53 = vpop.f32.mrf.mxu0  ;;  %v1670_v51 = vmax.f32 %v1496_v2, 0.0 }
 0x1c4   : > { %v1696_v30 = vmax.f32 %v1600_v43, 0.0  ;;  %v1673_v7 = vmax.f32 %v1509_v10, 0.0  ;;  %v1501_v15 = vadd.f32 %v1500_v53, %v7364_v12  ;;  %v1621_v63 = vadd.f32 %v5872_v6, %v1066_v50 }
 0x1c5   : > { %1807 = vadd.xlane.f32.xlu1 %v1661_v46  ;;  %1797 = vadd.xlane.f32.xlu0 %v1656_v31  ;;  %v1669_v31 = vmax.f32 %v1493_v1, 0.0  ;;  %v1612_v46 = vpop.f32.mrf.mxu1  ;;  %v5845_v36 = vpop.f32.mrf.mxu0 }
 0x1c6   : > { %v1512_v47 = vadd.f32 %v5845_v36, %v7388_v21  ;;  %v1701_v3 = vmax.f32 %v1621_v63, 0.0  ;;  %v2103_v63 = vld [vmem:[%s9085_s6 + $0x48] sm:$0xff] }
 0x1c7   : > { %v1503_v41 = vpop.f32.mrf.mxu0 }
 0x1c8   : > { %v1674_v61 = vmax.f32 %v1512_v47, 0.0  ;;  %v1504_v16 = vadd.f32 %v1503_v41, %v7378_v17 }
 0x1c9   : > { %1871 = vadd.xlane.f32.xlu1 %v1693_v35  ;;  %1861 = vadd.xlane.f32.xlu0 %v1688_v34  ;;  %v1488_v34 = vadd.f32 %v1487_v25, %v7361_v11  ;;  %v5873_v35 = vpop.f32.mrf.mxu1  ;;  %v1671_v11 = vmax.f32 %v1501_v15, 0.0  ;;  %v1740_v15 = vld [vmem:[#allocation2 + $0x108] sm:$0xff] }
 0x1ca   : > { %v1672_v12 = vmax.f32 %v1504_v16, 0.0  ;;  %v1624_v13 = vadd.f32 %v5873_v35, %v1071_v8  ;;  %v1712_v8 = vld [vmem:[#allocation2 + $0x28] sm:$0xff] }
 0x1cb   : > { %v1668_v48 = vmax.f32 %v1488_v34, 0.0  ;;  %v1615_v49 = vpop.f32.mrf.mxu1  ;;  %v1742_v34 = vld [vmem:[#allocation2 + $0x118] sm:$0xff] }
 0x1cc   : > { %v1616_v4 = vadd.f32 %v1615_v49, %v1061_v60 }
 0x1cd   : > { %1803 = vadd.xlane.f32.xlu1 %v1659_v42  ;;  %1809 = vadd.xlane.f32.xlu0 %v1662_v62  ;;  %v1613_v42 = vadd.f32 %v1612_v46, %v1056_v33  ;;  %v5876_v62 = vpop.f32.mrf.mxu1 }
 0x1cf   : > { %v1628_v21 = vpop.f32.mrf.mxu1 }
 0x1d1   : > { %1867 = vadd.xlane.f32.xlu1 %v1691_v45  ;;  %1873 = vadd.xlane.f32.xlu0 %v1694_v55  ;;  %v1699_v45 = vmax.f32 %v1613_v42, 0.0  ;;  %v1076_v55 = vpop.permute.xlu0 %1075  ;;  %v2101_v42 = vld [vmem:[%s9085_s6 + $0x38] sm:$0xff] }
 0x1d2   : > { %v1629_v56 = vadd.f32 %v1628_v21, %v1076_v55 }
 0x1d4   : > { %v1703_v38 = vmax.f32 %v1629_v56, 0.0  ;;  %v1717_v56 = vld [vmem:[#allocation2 + $0x50] sm:$0xff] }
 0x1d5   : > { %1815 = vadd.xlane.f32.xlu1 %v1665_v14  ;;  %1805 = vadd.xlane.f32.xlu0 %v1660_v9  ;;  %v7494_v9 = vpop.f32.mrf.mxu1  ;;  %v1086_v17 = vpop.permute.xlu0 %1085  ;;  %v1700_v14 = vmax.f32 %v1616_v4, 0.0  ;;  %v2105_v4 = vld [vmem:[%s9085_s6 + $0x58] sm:$0xff] }
 0x1d6   : > { %v1637_v18 = vadd.f32 %v5876_v62, %v1086_v17 }
 0x1d7   : > { %v1631_v19 = vpop.f32.mrf.mxu1 }
 0x1d8   : > { %v1705_v20 = vmax.f32 %v1637_v18, 0.0 }
 0x1d9   : > { %1879 = vadd.xlane.f32.xlu1 %v1697_v39  ;;  %1869 = vadd.xlane.f32.xlu0 %v1692_v40  ;;  %v1081_v40 = vpop.permute.xlu1 %1080  ;;  %v1702_v39 = vmax.f32 %v1624_v13, 0.0 }
 0x1da   : > { %v1632_v59 = vadd.f32 %v1631_v19, %v1081_v40  ;;  %v1749_v19 = vld [vmem:[#allocation2 + $0x150] sm:$0xff]  ;;  %v1744_v40 = vld [vmem:[#allocation2 + $0x128] sm:$0xff] }
 0x1dc   : > { %v1704_v5 = vmax.f32 %v1632_v59, 0.0 }
 0x1dd   : > { %1811 = vadd.xlane.f32.xlu1 %v1663_v52  ;;  %1817 = vadd.xlane.f32.xlu0 %v1666_v22  ;;  %v1741_v52 = vld [vmem:[#allocation2 + $0x110] sm:$0xff] }
 0x1e1   : > { %1875 = vadd.xlane.f32.xlu1 %v1695_v27  ;;  %1813 = vadd.xlane.f32.xlu0 %v1664_v28  ;;  %v1739_v27 = vld [vmem:[#allocation2 + $0x100] sm:$0xff] }
 0x1e2   : > { %v1707_v28 = vld [vmem:[#allocation2] sm:$0xff] }
 0x1e5   : > { %1823 = vadd.xlane.f32.xlu1 %v1669_v31  ;;  %1877 = vadd.xlane.f32.xlu0 %v1696_v30  ;;  %v2096_v30 = vld [vmem:[%s9085_s6 + $0x10] sm:$0xff]  ;;  %v1708_v31 = vld [vmem:[#allocation2 + $0x8] sm:$0xff] }
 0x1e9   : > { %1819 = vadd.xlane.f32.xlu1 %v1667_v0  ;;  %1825 = vadd.xlane.f32.xlu0 %v1670_v51  ;;  %v2097_v0 = vld [vmem:[%s9085_s6 + $0x18] sm:$0xff]  ;;  %v1713_v51 = vld [vmem:[#allocation2 + $0x30] sm:$0xff] }
 0x1ed   : > { %1831 = vadd.xlane.f32.xlu1 %v1673_v7  ;;  %1821 = vadd.xlane.f32.xlu0 %v1668_v48  ;;  %v2099_v48 = vld [vmem:[%s9085_s6 + $0x28] sm:$0xff]  ;;  %v1745_v7 = vld [vmem:[#allocation2 + $0x130] sm:$0xff] }
 0x1f1   : > { %1827 = vadd.xlane.f32.xlu1 %v1671_v11  ;;  %1833 = vadd.xlane.f32.xlu0 %v1674_v61  ;;  %v1711_v11 = vld [vmem:[#allocation2 + $0x20] sm:$0xff]  ;;  %v1714_v61 = vld [vmem:[#allocation2 + $0x38] sm:$0xff] }
 0x1f5   : > { %1883 = vadd.xlane.f32.xlu1 %v1699_v45  ;;  %1829 = vadd.xlane.f32.xlu0 %v1672_v12  ;;  %v1743_v45 = vld [vmem:[#allocation2 + $0x120] sm:$0xff]  ;;  %v1746_v12 = vld [vmem:[#allocation2 + $0x138] sm:$0xff] }
 0x1f9   : > { %1887 = vadd.xlane.f32.xlu1 %v1701_v3  ;;  %1881 = vadd.xlane.f32.xlu0 %v1698_v58 }
 0x1fd   : > { %1891 = vadd.xlane.f32.xlu1 %v1703_v38  ;;  %1885 = vadd.xlane.f32.xlu0 %v1700_v14  ;;  %v2107_v38 = vld [vmem:[%s9085_s6 + $0x68] sm:$0xff] }
 0x201   : > { %1895 = vadd.xlane.f32.xlu1 %v1705_v20  ;;  %1889 = vadd.xlane.f32.xlu0 %v1702_v39 }
 0x205   : > { %1893 = vadd.xlane.f32.xlu0 %v1704_v5 }
 0x212   : > { %v1840_v22 = vpop.xlane.xlu1 %1839  ;;  %v1776_v23 = vpop.xlane.xlu0 %1775  ;;  %1090 = vperm.xlu1 %6101, %v772_v54   ;;  %v2109_v54 = vld [vmem:[%s9085_s6 + $0x78] sm:$0xff] }
 0x213   : > { %v1933_v24 = vadd.f32 %v1840_v22, %v1741_v52  ;;  %v1901_v25 = vadd.f32 %v1776_v23, %v1709_v57  ;;  %v1715_v52 = vld [vmem:[#allocation2 + $0x40] sm:$0xff]  ;;  %v1718_v57 = vld [vmem:[#allocation2 + $0x58] sm:$0xff] }
 0x215   : > { %1998 = vst.msk [vmem:[#allocation2 + $0x110] sm:$0xff] %vm1963_vm3, %v1933_v24  ;;  %1966 = vst.msk [vmem:[#allocation2 + $0x10] sm:$0xff] %vm1963_vm3, %v1901_v25 }
 0x216   : > { %v1836_v43 = vpop.xlane.xlu1 %1835  ;;  %2160 = vperm.xlu1 %6101, %v2094_v26   ;;  %v1772_v1 = vpop.xlane.xlu0 %1771  ;;  %v2111_v26 = vld [vmem:[%s9085_s6 + $0x88] sm:$0xff] }
 0x217   : > { %v1931_v6 = vadd.f32 %v1836_v43, %v1739_v27  ;;  %v1899_v29 = vadd.f32 %v1772_v1, %v1707_v28  ;;  %v1747_v27 = vld [vmem:[#allocation2 + $0x140] sm:$0xff]  ;;  %v1750_v28 = vld [vmem:[#allocation2 + $0x158] sm:$0xff] }
 0x219   : > { %1996 = vst.msk [vmem:[#allocation2 + $0x100] sm:$0xff] %vm1963_vm3, %v1931_v6  ;;  %1964 = vst.msk [vmem:[#allocation2] sm:$0xff] %vm1963_vm3, %v1899_v29 }
 0x21a   : > { %2170 = vperm.xlu1 %6101, %v2096_v30   ;;  %v1774_v2 = vpop.xlane.xlu1 %1773  ;;  %v1778_v46 = vpop.xlane.xlu0 %1777  ;;  %v2113_v30 = vld [vmem:[%s9085_s6 + $0x98] sm:$0xff] }
 0x21b   : > { %v1900_v53 = vadd.f32 %v1774_v2, %v1708_v31  ;;  %v1902_v33 = vadd.f32 %v1778_v46, %v1710_v32  ;;  %v1721_v31 = vld [vmem:[#allocation2 + $0x70] sm:$0xff]  ;;  %v1716_v32 = vld [vmem:[#allocation2 + $0x48] sm:$0xff] }
 0x21d   : > { %1965 = vst.msk [vmem:[#allocation2 + $0x8] sm:$0xff] %vm1963_vm3, %v1900_v53  ;;  %1967 = vst.msk [vmem:[#allocation2 + $0x18] sm:$0xff] %vm1963_vm3, %v1902_v33 }
 0x21e   : > { %2175 = vperm.xlu1 %6101, %v2097_v0   ;;  %v1784_v10 = vpop.xlane.xlu1 %1783  ;;  %v1842_v35 = vpop.xlane.xlu0 %1841  ;;  %v2115_v0 = vld [vmem:[%s9085_s6 + $0xa8] sm:$0xff] }
 0x21f   : > { %v1905_v36 = vadd.f32 %v1784_v10, %v1713_v51  ;;  %v1934_v44 = vadd.f32 %v1842_v35, %v1742_v34  ;;  %v1753_v51 = vld [vmem:[#allocation2 + $0x170] sm:$0xff]  ;;  %v1748_v34 = vld [vmem:[#allocation2 + $0x148] sm:$0xff] }
 0x221   : > { %1970 = vst.msk [vmem:[#allocation2 + $0x30] sm:$0xff] %vm1963_vm3, %v1905_v36  ;;  %1999 = vst.msk [vmem:[#allocation2 + $0x118] sm:$0xff] %vm1963_vm3, %v1934_v44 }
 0x222   : > { %2185 = vperm.xlu1 %6101, %v2099_v48   ;;  %v1848_v47 = vpop.xlane.xlu1 %1847  ;;  %v1838_v49 = vpop.xlane.xlu0 %1837  ;;  %v2117_v48 = vld [vmem:[%s9085_s6 + $0xb8] sm:$0xff] }
 0x223   : > { %v1937_v41 = vadd.f32 %v1848_v47, %v1745_v7  ;;  %v1932_v50 = vadd.f32 %v1838_v49, %v1740_v15  ;;  %v1719_v7 = vld [vmem:[#allocation2 + $0x60] sm:$0xff]  ;;  %v1722_v15 = vld [vmem:[#allocation2 + $0x78] sm:$0xff] }
 0x225   : > { %2002 = vst.msk [vmem:[#allocation2 + $0x130] sm:$0xff] %vm1963_vm3, %v1937_v41  ;;  %1997 = vst.msk [vmem:[#allocation2 + $0x108] sm:$0xff] %vm1963_vm3, %v1932_v50 }
 0x226   : > { %2195 = vperm.xlu1 %6101, %v2101_v42   ;;  %v1780_v16 = vpop.xlane.xlu1 %1779  ;;  %v1786_v62 = vpop.xlane.xlu0 %1785  ;;  %v2119_v42 = vld [vmem:[%s9085_s6 + $0xc8] sm:$0xff] }
 0x227   : > { %v1903_v60 = vadd.f32 %v1780_v16, %v1711_v11  ;;  %v1906_v37 = vadd.f32 %v1786_v62, %v1714_v61  ;;  %v1751_v11 = vld [vmem:[#allocation2 + $0x160] sm:$0xff]  ;;  %v1754_v61 = vld [vmem:[#allocation2 + $0x178] sm:$0xff] }
 0x229   : > { %1968 = vst.msk [vmem:[#allocation2 + $0x20] sm:$0xff] %vm1963_vm3, %v1903_v60  ;;  %1971 = vst.msk [vmem:[#allocation2 + $0x38] sm:$0xff] %vm1963_vm3, %v1906_v37 }
 0x22a   : > { %2205 = vperm.xlu1 %6101, %v2103_v63   ;;  %v1844_v55 = vpop.xlane.xlu1 %1843  ;;  %v1850_v21 = vpop.xlane.xlu0 %1849  ;;  %v2121_v63 = vld [vmem:[%s9085_s6 + $0xd8] sm:$0xff] }
 0x22b   : > { %v1935_v58 = vadd.f32 %v1844_v55, %v1743_v45  ;;  %v1938_v3 = vadd.f32 %v1850_v21, %v1746_v12  ;;  %v1725_v45 = vld [vmem:[#allocation2 + $0x90] sm:$0xff]  ;;  %v1720_v12 = vld [vmem:[#allocation2 + $0x68] sm:$0xff] }
 0x22d   : > { %2000 = vst.msk [vmem:[#allocation2 + $0x120] sm:$0xff] %vm1963_vm3, %v1935_v58  ;;  %2003 = vst.msk [vmem:[#allocation2 + $0x138] sm:$0xff] %vm1963_vm3, %v1938_v3 }
 0x22e   : > { %2215 = vperm.xlu1 %6101, %v2105_v4   ;;  %v1792_v17 = vpop.xlane.xlu1 %1791  ;;  %v1782_v13 = vpop.xlane.xlu0 %1781  ;;  %v2123_v4 = vld [vmem:[%s9085_s6 + $0xe8] sm:$0xff] }
 0x22f   : > { %v1909_v14 = vadd.f32 %v1792_v17, %v1717_v56  ;;  %v1904_v18 = vadd.f32 %v1782_v13, %v1712_v8  ;;  %v1757_v56 = vld [vmem:[#allocation2 + $0x190] sm:$0xff]  ;;  %v1752_v8 = vld [vmem:[#allocation2 + $0x168] sm:$0xff] }
 0x231   : > { %1974 = vst.msk [vmem:[#allocation2 + $0x50] sm:$0xff] %vm1963_vm3, %v1909_v14  ;;  %1969 = vst.msk [vmem:[#allocation2 + $0x28] sm:$0xff] %vm1963_vm3, %v1904_v18 }
 0x232   : > { %2225 = vperm.xlu1 %6101, %v2107_v38   ;;  %v1856_v39 = vpop.xlane.xlu1 %1855  ;;  %v1846_v20 = vpop.xlane.xlu0 %1845  ;;  %v2125_v38 = vld [vmem:[%s9085_s6 + $0xf8] sm:$0xff] }
 0x233   : > { %v1941_v59 = vadd.f32 %v1856_v39, %v1749_v19  ;;  %v1936_v5 = vadd.f32 %v1846_v20, %v1744_v40  ;;  %v1723_v19 = vld [vmem:[#allocation2 + $0x80] sm:$0xff]  ;;  %v1726_v40 = vld [vmem:[#allocation2 + $0x98] sm:$0xff] }
 0x235   : > { %2006 = vst.msk [vmem:[#allocation2 + $0x150] sm:$0xff] %vm1963_vm3, %v1941_v59  ;;  %2001 = vst.msk [vmem:[#allocation2 + $0x128] sm:$0xff] %vm1963_vm3, %v1936_v5 }
 0x236   : > { %2235 = vperm.xlu1 %6101, %v2109_v54   ;;  %v1788_v22 = vpop.xlane.xlu1 %1787  ;;  %v1794_v23 = vpop.xlane.xlu0 %1793  ;;  %v2127_v54 = vld [vmem:[%s9085_s6 + $0x108] sm:$0xff] }
 0x237   : > { %v1907_v24 = vadd.f32 %v1788_v22, %v1715_v52  ;;  %v1910_v25 = vadd.f32 %v1794_v23, %v1718_v57  ;;  %v1755_v52 = vld [vmem:[#allocation2 + $0x180] sm:$0xff]  ;;  %v1758_v57 = vld [vmem:[#allocation2 + $0x198] sm:$0xff] }
 0x239   : > { %1972 = vst.msk [vmem:[#allocation2 + $0x40] sm:$0xff] %vm1963_vm3, %v1907_v24  ;;  %1975 = vst.msk [vmem:[#allocation2 + $0x58] sm:$0xff] %vm1963_vm3, %v1910_v25 }
 0x23a   : > { %2245 = vperm.xlu1 %6101, %v2111_v26   ;;  %v1852_v43 = vpop.xlane.xlu1 %1851  ;;  %v1858_v1 = vpop.xlane.xlu0 %1857  ;;  %v2129_v26 = vld [vmem:[%s9085_s6 + $0x118] sm:$0xff] }
 0x23b   : > { %v1939_v6 = vadd.f32 %v1852_v43, %v1747_v27  ;;  %v1942_v29 = vadd.f32 %v1858_v1, %v1750_v28  ;;  %v1729_v27 = vld [vmem:[#allocation2 + $0xb0] sm:$0xff]  ;;  %v1724_v28 = vld [vmem:[#allocation2 + $0x88] sm:$0xff] }
 0x23d   : > { %2004 = vst.msk [vmem:[#allocation2 + $0x140] sm:$0xff] %vm1963_vm3, %v1939_v6  ;;  %2007 = vst.msk [vmem:[#allocation2 + $0x158] sm:$0xff] %vm1963_vm3, %v1942_v29 }
 0x23e   : > { %2255 = vperm.xlu1 %6101, %v2113_v30   ;;  %v1800_v2 = vpop.xlane.xlu1 %1799  ;;  %v1790_v46 = vpop.xlane.xlu0 %1789  ;;  %v2131_v30 = vld [vmem:[%s9085_s6 + $0x128] sm:$0xff] }
 0x23f   : > { %v1913_v53 = vadd.f32 %v1800_v2, %v1721_v31  ;;  %v1908_v33 = vadd.f32 %v1790_v46, %v1716_v32  ;;  %v1761_v31 = vld [vmem:[#allocation2 + $0x1b0] sm:$0xff]  ;;  %v1756_v32 = vld [vmem:[#allocation2 + $0x188] sm:$0xff] }
 0x241   : > { %1978 = vst.msk [vmem:[#allocation2 + $0x70] sm:$0xff] %vm1963_vm3, %v1913_v53  ;;  %1973 = vst.msk [vmem:[#allocation2 + $0x48] sm:$0xff] %vm1963_vm3, %v1908_v33 }
 0x242   : > { %2265 = vperm.xlu1 %6101, %v2115_v0   ;;  %v1864_v10 = vpop.xlane.xlu1 %1863  ;;  %v1854_v35 = vpop.xlane.xlu0 %1853  ;;  %v2133_v0 = vld [vmem:[%s9085_s6 + $0x138] sm:$0xff] }
 0x243   : > { %v1945_v36 = vadd.f32 %v1864_v10, %v1753_v51  ;;  %v1940_v44 = vadd.f32 %v1854_v35, %v1748_v34  ;;  %v1727_v51 = vld [vmem:[#allocation2 + $0xa0] sm:$0xff]  ;;  %v1730_v34 = vld [vmem:[#allocation2 + $0xb8] sm:$0xff] }
 0x245   : > { %2010 = vst.msk [vmem:[#allocation2 + $0x170] sm:$0xff] %vm1963_vm3, %v1945_v36  ;;  %2005 = vst.msk [vmem:[#allocation2 + $0x148] sm:$0xff] %vm1963_vm3, %v1940_v44 }
 0x246   : > { %2275 = vperm.xlu1 %6101, %v2117_v48   ;;  %v1796_v47 = vpop.xlane.xlu1 %1795  ;;  %v1802_v49 = vpop.xlane.xlu0 %1801  ;;  %v2135_v48 = vld [vmem:[%s9085_s6 + $0x148] sm:$0xff] }
 0x247   : > { %v1911_v41 = vadd.f32 %v1796_v47, %v1719_v7  ;;  %v1914_v50 = vadd.f32 %v1802_v49, %v1722_v15  ;;  %v1759_v7 = vld [vmem:[#allocation2 + $0x1a0] sm:$0xff]  ;;  %v1728_v15 = vld [vmem:[#allocation2 + $0xa8] sm:$0xff] }
 0x249   : > { %1976 = vst.msk [vmem:[#allocation2 + $0x60] sm:$0xff] %vm1963_vm3, %v1911_v41  ;;  %1979 = vst.msk [vmem:[#allocation2 + $0x78] sm:$0xff] %vm1963_vm3, %v1914_v50 }
 0x24a   : > { %2285 = vperm.xlu1 %6101, %v2119_v42   ;;  %v1860_v16 = vpop.xlane.xlu1 %1859  ;;  %v1866_v62 = vpop.xlane.xlu0 %1865  ;;  %v2137_v42 = vld [vmem:[%s9085_s6 + $0x158] sm:$0xff] }
 0x24b   : > { %v1943_v60 = vadd.f32 %v1860_v16, %v1751_v11  ;;  %v1946_v37 = vadd.f32 %v1866_v62, %v1754_v61  ;;  %v1733_v11 = vld [vmem:[#allocation2 + $0xd0] sm:$0xff]  ;;  %v1760_v61 = vld [vmem:[#allocation2 + $0x1a8] sm:$0xff] }
 0x24d   : > { %2008 = vst.msk [vmem:[#allocation2 + $0x160] sm:$0xff] %vm1963_vm3, %v1943_v60  ;;  %2011 = vst.msk [vmem:[#allocation2 + $0x178] sm:$0xff] %vm1963_vm3, %v1946_v37 }
 0x24e   : > { %2295 = vperm.xlu1 %6101, %v2121_v63   ;;  %v1808_v55 = vpop.xlane.xlu1 %1807  ;;  %v1798_v21 = vpop.xlane.xlu0 %1797  ;;  %v2139_v63 = vld [vmem:[%s9085_s6 + $0x168] sm:$0xff] }
 0x24f   : > { %v1917_v58 = vadd.f32 %v1808_v55, %v1725_v45  ;;  %v1912_v3 = vadd.f32 %v1798_v21, %v1720_v12  ;;  %v1731_v45 = vld [vmem:[#allocation2 + $0xc0] sm:$0xff]  ;;  %v1734_v12 = vld [vmem:[#allocation2 + $0xd8] sm:$0xff] }
 0x251   : > { %1982 = vst.msk [vmem:[#allocation2 + $0x90] sm:$0xff] %vm1963_vm3, %v1917_v58  ;;  %1977 = vst.msk [vmem:[#allocation2 + $0x68] sm:$0xff] %vm1963_vm3, %v1912_v3 }
 0x252   : > { %2305 = vperm.xlu1 %6101, %v2123_v4   ;;  %v1872_v17 = vpop.xlane.xlu1 %1871  ;;  %v1862_v13 = vpop.xlane.xlu0 %1861  ;;  %v2141_v4 = vld [vmem:[%s9085_s6 + $0x178] sm:$0xff] }
 0x253   : > { %v1949_v14 = vadd.f32 %v1872_v17, %v1757_v56  ;;  %v1944_v18 = vadd.f32 %v1862_v13, %v1752_v8  ;;  %v1737_v56 = vld [vmem:[#allocation2 + $0xf0] sm:$0xff]  ;;  %v1732_v8 = vld [vmem:[#allocation2 + $0xc8] sm:$0xff] }
 0x255   : > { %2014 = vst.msk [vmem:[#allocation2 + $0x190] sm:$0xff] %vm1963_vm3, %v1949_v14  ;;  %2009 = vst.msk [vmem:[#allocation2 + $0x168] sm:$0xff] %vm1963_vm3, %v1944_v18 }
 0x256   : > { %2315 = vperm.xlu1 %6101, %v2125_v38   ;;  %v1804_v39 = vpop.xlane.xlu1 %1803  ;;  %v1810_v20 = vpop.xlane.xlu0 %1809  ;;  %v2143_v38 = vld [vmem:[%s9085_s6 + $0x188] sm:$0xff] }
 0x257   : > { %v1915_v59 = vadd.f32 %v1804_v39, %v1723_v19  ;;  %v1918_v5 = vadd.f32 %v1810_v20, %v1726_v40  ;;  %v1735_v19 = vld [vmem:[#allocation2 + $0xe0] sm:$0xff]  ;;  %v1738_v40 = vld [vmem:[#allocation2 + $0xf8] sm:$0xff] }
 0x259   : > { %1980 = vst.msk [vmem:[#allocation2 + $0x80] sm:$0xff] %vm1963_vm3, %v1915_v59  ;;  %1983 = vst.msk [vmem:[#allocation2 + $0x98] sm:$0xff] %vm1963_vm3, %v1918_v5 }
 0x25a   : > { %2325 = vperm.xlu1 %6101, %v2127_v54   ;;  %v1868_v22 = vpop.xlane.xlu1 %1867  ;;  %v1874_v23 = vpop.xlane.xlu0 %1873  ;;  %v2145_v54 = vld [vmem:[%s9085_s6 + $0x198] sm:$0xff] }
 0x25b   : > { %v1947_v24 = vadd.f32 %v1868_v22, %v1755_v52  ;;  %v1950_v25 = vadd.f32 %v1874_v23, %v1758_v57  ;;  %v1763_v52 = vld [vmem:[#allocation2 + $0x1c0] sm:$0xff]  ;;  %v1736_v57 = vld [vmem:[#allocation2 + $0xe8] sm:$0xff] }
 0x25d   : > { %2012 = vst.msk [vmem:[#allocation2 + $0x180] sm:$0xff] %vm1963_vm3, %v1947_v24  ;;  %2015 = vst.msk [vmem:[#allocation2 + $0x198] sm:$0xff] %vm1963_vm3, %v1950_v25 }
 0x25e   : > { %2335 = vperm.xlu1 %6101, %v2129_v26   ;;  %v1816_v43 = vpop.xlane.xlu1 %1815  ;;  %v1806_v1 = vpop.xlane.xlu0 %1805  ;;  %v2147_v26 = vld [vmem:[%s9085_s6 + $0x1a8] sm:$0xff] }
 0x25f   : > { %v1921_v6 = vadd.f32 %v1816_v43, %v1729_v27  ;;  %v1916_v29 = vadd.f32 %v1806_v1, %v1724_v28  ;;  %v1765_v27 = vld [vmem:[#allocation2 + $0x1d0] sm:$0xff]  ;;  %v1762_v28 = vld [vmem:[#allocation2 + $0x1b8] sm:$0xff] }
 0x261   : > { %1986 = vst.msk [vmem:[#allocation2 + $0xb0] sm:$0xff] %vm1963_vm3, %v1921_v6  ;;  %1981 = vst.msk [vmem:[#allocation2 + $0x88] sm:$0xff] %vm1963_vm3, %v1916_v29 }
 0x262   : > { %2345 = vperm.xlu1 %6101, %v2131_v30   ;;  %v1880_v2 = vpop.xlane.xlu1 %1879  ;;  %v1870_v46 = vpop.xlane.xlu0 %1869  ;;  %v2149_v30 = vld [vmem:[%s9085_s6 + $0x1b8] sm:$0xff] }
 0x263   : > { %v1953_v53 = vadd.f32 %v1880_v2, %v1761_v31  ;;  %v1948_v33 = vadd.f32 %v1870_v46, %v1756_v32  ;;  %v1767_v31 = vld [vmem:[#allocation2 + $0x1e0] sm:$0xff]  ;;  %v1764_v32 = vld [vmem:[#allocation2 + $0x1c8] sm:$0xff] }
 0x265   : > { %2018 = vst.msk [vmem:[#allocation2 + $0x1b0] sm:$0xff] %vm1963_vm3, %v1953_v53  ;;  %2013 = vst.msk [vmem:[#allocation2 + $0x188] sm:$0xff] %vm1963_vm3, %v1948_v33 }
 0x266   : > { %2355 = vperm.xlu1 %6101, %v2133_v0   ;;  %v1812_v10 = vpop.xlane.xlu1 %1811  ;;  %v1818_v35 = vpop.xlane.xlu0 %1817  ;;  %v2151_v0 = vld [vmem:[%s9085_s6 + $0x1c8] sm:$0xff] }
 0x267   : > { %v1919_v36 = vadd.f32 %v1812_v10, %v1727_v51  ;;  %v1922_v44 = vadd.f32 %v1818_v35, %v1730_v34  ;;  %v1769_v51 = vld [vmem:[#allocation2 + $0x1f0] sm:$0xff]  ;;  %v1766_v34 = vld [vmem:[#allocation2 + $0x1d8] sm:$0xff] }
 0x269   : > { %1984 = vst.msk [vmem:[#allocation2 + $0xa0] sm:$0xff] %vm1963_vm3, %v1919_v36  ;;  %1987 = vst.msk [vmem:[#allocation2 + $0xb8] sm:$0xff] %vm1963_vm3, %v1922_v44 }
 0x26a   : > { %2365 = vperm.xlu1 %6101, %v2135_v48   ;;  %v1876_v47 = vpop.xlane.xlu1 %1875  ;;  %v1814_v49 = vpop.xlane.xlu0 %1813  ;;  %v2153_v48 = vld [vmem:[%s9085_s6 + $0x1d8] sm:$0xff] }
 0x26b   : > { %v1951_v41 = vadd.f32 %v1876_v47, %v1759_v7  ;;  %v1920_v50 = vadd.f32 %v1814_v49, %v1728_v15  ;;  %v1768_v7 = vld [vmem:[#allocation2 + $0x1e8] sm:$0xff] }
 0x26d   : > { %2016 = vst.msk [vmem:[#allocation2 + $0x1a0] sm:$0xff] %vm1963_vm3, %v1951_v41  ;;  %1985 = vst.msk [vmem:[#allocation2 + $0xa8] sm:$0xff] %vm1963_vm3, %v1920_v50  ;;  %v2155_v50 = vld [vmem:[%s9085_s6 + $0x1e8] sm:$0xff] }
 0x26e   : > { %2375 = vperm.xlu1 %6101, %v2137_v42   ;;  %v1824_v16 = vpop.xlane.xlu1 %1823  ;;  %v1878_v62 = vpop.xlane.xlu0 %1877 }
 0x26f   : > { %v1925_v60 = vadd.f32 %v1824_v16, %v1733_v11  ;;  %v1952_v37 = vadd.f32 %v1878_v62, %v1760_v61  ;;  %v7659_v11 = vpop.f32.mrf.mxu1  ;;  %v2095_v61 = vld [vmem:[%s9085_s6 + $0x8] sm:$0xff] }
 0x271   : > { %1990 = vst.msk [vmem:[#allocation2 + $0xd0] sm:$0xff] %vm1963_vm3, %v1925_v60  ;;  %2017 = vst.msk [vmem:[#allocation2 + $0x1a8] sm:$0xff] %vm1963_vm3, %v1952_v37  ;;  %v7664_v16 = vpop.f32.mrf.mxu1  ;;  %v2100_v60 = vld [vmem:[%s9085_s6 + $0x30] sm:$0xff] }
 0x272   : > { %2385 = vperm.xlu1 %6101, %v2139_v63   ;;  %v1820_v55 = vpop.xlane.xlu1 %1819  ;;  %v1826_v21 = vpop.xlane.xlu0 %1825  ;;  %v2102_v63 = vld [vmem:[%s9085_s6 + $0x40] sm:$0xff] }
 0x273   : > { %v1923_v58 = vadd.f32 %v1820_v55, %v1731_v45  ;;  %v1926_v3 = vadd.f32 %v1826_v21, %v1734_v12  ;;  %v7669_v62 = vpop.f32.mrf.mxu1  ;;  %v2104_v12 = vld [vmem:[%s9085_s6 + $0x50] sm:$0xff]  ;;  %v2106_v21 = vld [vmem:[%s9085_s6 + $0x60] sm:$0xff] }
 0x275   : > { %1988 = vst.msk [vmem:[#allocation2 + $0xc0] sm:$0xff] %vm1963_vm3, %v1923_v58  ;;  %1991 = vst.msk [vmem:[#allocation2 + $0xd8] sm:$0xff] %vm1963_vm3, %v1926_v3  ;;  %v7674_v37 = vpop.f32.mrf.mxu1  ;;  %v2108_v3 = vld [vmem:[%s9085_s6 + $0x70] sm:$0xff] }
 0x276   : > { %2395 = vperm.xlu1 %6101, %v2141_v4   ;;  %v1832_v17 = vpop.xlane.xlu1 %1831  ;;  %v1822_v13 = vpop.xlane.xlu0 %1821 }
 0x277   : > { %v1929_v14 = vadd.f32 %v1832_v17, %v1737_v56  ;;  %v1924_v18 = vadd.f32 %v1822_v13, %v1732_v8  ;;  %v7679_v45 = vpop.f32.mrf.mxu1  ;;  %v2110_v56 = vld [vmem:[%s9085_s6 + $0x80] sm:$0xff]  ;;  %v2112_v17 = vld [vmem:[%s9085_s6 + $0x90] sm:$0xff] }
 0x279   : > { %1994 = vst.msk [vmem:[#allocation2 + $0xf0] sm:$0xff] %vm1963_vm3, %v1929_v14  ;;  %1989 = vst.msk [vmem:[#allocation2 + $0xc8] sm:$0xff] %vm1963_vm3, %v1924_v18  ;;  %v7684_v55 = vpop.f32.mrf.mxu1  ;;  %v2114_v14 = vld [vmem:[%s9085_s6 + $0xa0] sm:$0xff] }
 0x27a   : > { %2405 = vperm.xlu1 %6101, %v2143_v38   ;;  %v1828_v39 = vpop.xlane.xlu1 %1827  ;;  %v1834_v20 = vpop.xlane.xlu0 %1833  ;;  %v2116_v38 = vld [vmem:[%s9085_s6 + $0xb0] sm:$0xff] }
 0x27b   : > { %v1927_v59 = vadd.f32 %v1828_v39, %v1735_v19  ;;  %v1930_v5 = vadd.f32 %v1834_v20, %v1738_v40  ;;  %v7689_v58 = vpop.f32.mrf.mxu1  ;;  %v2118_v40 = vld [vmem:[%s9085_s6 + $0xc0] sm:$0xff]  ;;  %v2120_v20 = vld [vmem:[%s9085_s6 + $0xd0] sm:$0xff] }
 0x27d   : > { %1992 = vst.msk [vmem:[#allocation2 + $0xe0] sm:$0xff] %vm1963_vm3, %v1927_v59  ;;  %1995 = vst.msk [vmem:[#allocation2 + $0xf8] sm:$0xff] %vm1963_vm3, %v1930_v5  ;;  %v7694_v4 = vpop.f32.mrf.mxu1  ;;  %v2122_v5 = vld [vmem:[%s9085_s6 + $0xe0] sm:$0xff] }
 0x27e   : > { %2415 = vperm.xlu1 %6101, %v2145_v54   ;;  %v1884_v22 = vpop.xlane.xlu1 %1883  ;;  %v1830_v23 = vpop.xlane.xlu0 %1829 }
 0x27f   : > { %v1955_v24 = vadd.f32 %v1884_v22, %v1763_v52  ;;  %v1928_v25 = vadd.f32 %v1830_v23, %v1736_v57  ;;  %v7699_v8 = vpop.f32.mrf.mxu1  ;;  %v2124_v52 = vld [vmem:[%s9085_s6 + $0xf0] sm:$0xff]  ;;  %v2126_v22 = vld [vmem:[%s9085_s6 + $0x100] sm:$0xff] }
 0x281   : > { %2020 = vst.msk [vmem:[#allocation2 + $0x1c0] sm:$0xff] %vm1963_vm3, %v1955_v24  ;;  %1993 = vst.msk [vmem:[#allocation2 + $0xe8] sm:$0xff] %vm1963_vm3, %v1928_v25  ;;  %v7704_v13 = vpop.f32.mrf.mxu1  ;;  %v2128_v24 = vld [vmem:[%s9085_s6 + $0x110] sm:$0xff] }
 0x282   : > { %2425 = vperm.xlu1 %6101, %v2147_v26   ;;  %v1888_v43 = vpop.xlane.xlu1 %1887  ;;  %v1882_v1 = vpop.xlane.xlu0 %1881  ;;  %v2130_v26 = vld [vmem:[%s9085_s6 + $0x120] sm:$0xff] }
 0x283   : > { %v1957_v6 = vadd.f32 %v1888_v43, %v1765_v27  ;;  %v1954_v29 = vadd.f32 %v1882_v1, %v1762_v28  ;;  %v7709_v18 = vpop.f32.mrf.mxu1  ;;  %v3410_v27 = vld [vmem:[%s395_s27] sm:$0xf] }
 0x284   : > { %v3411_v43 = vpack.c.bf16 %v3410_v27, %v3410_v27  ;;  %v2154_v27 = vld [vmem:[%s9085_s6 + $0x1e0] sm:$0xff] }
 0x285   : > { %2022 = vst.msk [vmem:[#allocation2 + $0x1d0] sm:$0xff] %vm1963_vm3, %v1957_v6  ;;  %2019 = vst.msk [vmem:[#allocation2 + $0x1b8] sm:$0xff] %vm1963_vm3, %v1954_v29  ;;  %v7714_v19 = vpop.f32.mrf.mxu1  ;;  %v2132_v6 = vld [vmem:[%s9085_s6 + $0x130] sm:$0xff]  ;;  %v6166_v29 = vld [vmem:[%s9086_s7] sm:$0xff]  }
 0x286   : > { %2435 = vperm.xlu1 %6101, %v2149_v30   ;;  %v1892_v2 = vpop.xlane.xlu1 %1891  ;;  %v1886_v46 = vpop.xlane.xlu0 %1885  ;;  %6015 = vmatprep.subr.msk.bf16.mxu0 %vm1350_vm1, %v3411_v43  ;;  %v4117_v1 = vsel %vm1350_vm1, %v3411_v43, 0 }
 0x287   : > { %v1959_v53 = vadd.f32 %v1892_v2, %v1767_v31  ;;  %v1956_v33 = vadd.f32 %v1886_v46, %v1764_v32  ;;  %v7719_v39 = vpop.f32.mrf.mxu1  ;;  %5945 = vmatpush3.bf16.msra.mxu0 %v4117_v1  ;;  %v6167_v31 = vld [vmem:[%s9086_s7 + $0x8] sm:$0xff]   ;;  %5946 = vmatprep.mubr.msk.bf16.mxu0 %vm1253_vm2, %v6166_v29  ;;  %v2134_v32 = vld [vmem:[%s9085_s6 + $0x140] sm:$0xff] }
 0x289   : > { %2024 = vst.msk [vmem:[#allocation2 + $0x1e0] sm:$0xff] %vm1963_vm3, %v1959_v53  ;;  %2021 = vst.msk [vmem:[#allocation2 + $0x1c8] sm:$0xff] %vm1963_vm3, %v1956_v33  ;;  %v7724_v59 = vpop.f32.mrf.mxu1  ;;  %v2136_v53 = vld [vmem:[%s9085_s6 + $0x150] sm:$0xff] }
 0x28a   : > { %2445 = vperm.xlu1 %6101, %v2151_v0   ;;  %v1896_v10 = vpop.xlane.xlu1 %1895  ;;  %v1890_v35 = vpop.xlane.xlu0 %1889  ;;  %5947 = vmatmul.mubr.msk.bf16.vlgmr.msra.gmra.mxu0 %vm1253_vm2, %v6167_v31  ;;  %v6168_v33 = vld [vmem:[%s9086_s7 + $0x10] sm:$0xff]  }
 0x28b   : > { %v1961_v36 = vadd.f32 %v1896_v10, %v1769_v51  ;;  %v1958_v44 = vadd.f32 %v1890_v35, %v1766_v34  ;;  %v7729_v54 = vpop.f32.mrf.mxu1  ;;  %v6169_v51 = vld [vmem:[%s9086_s7 + $0x18] sm:$0xff]   ;;  %5950 = vmatprep.mubr.msk.bf16.mxu0 %vm1253_vm2, %v6168_v33  ;;  %v2138_v10 = vld [vmem:[%s9085_s6 + $0x160] sm:$0xff]  ;;  %v2156_v31 = vld [vmem:[%s9085_s6 + $0x1f0] sm:$0xff] }
 0x28c   : > { %v6179_v33 = vld [vmem:[%s9086_s7 + $0x68] sm:$0xff]  }
 0x28d   : > { %2026 = vst.msk [vmem:[#allocation2 + $0x1f0] sm:$0xff] %vm1963_vm3, %v1961_v36  ;;  %2023 = vst.msk [vmem:[#allocation2 + $0x1d8] sm:$0xff] %vm1963_vm3, %v1958_v44  ;;  %v7734_v57 = vpop.f32.mrf.mxu1  ;;  %v2140_v36 = vld [vmem:[%s9085_s6 + $0x170] sm:$0xff]  ;;  %v6170_v44 = vld [vmem:[%s9086_s7 + $0x20] sm:$0xff]  }
 0x28e   : > { %2455 = vperm.xlu1 %6101, %v2153_v48   ;;  %v1091_v15 = vpop.permute.xlu1 %1090  ;;  %v1894_v47 = vpop.xlane.xlu0 %1893 }
 0x28f   : > { %v1640_v49 = vadd.f32 %v7494_v9, %v1091_v15  ;;  %v1960_v41 = vadd.f32 %v1894_v47, %v1768_v7  ;;  %v2098_v9 = vld [vmem:[%s9085_s6 + $0x20] sm:$0xff]  ;;  %v7739_v23 = vpop.f32.mrf.mxu1  ;;  %v6171_v7 = vld [vmem:[%s9086_s7 + $0x28] sm:$0xff]  }
 0x290   : > { %v2142_v47 = vld [vmem:[%s9085_s6 + $0x180] sm:$0xff] }
 0x291   : > { %v1706_v42 = vmax.f32 %v1640_v49, 0.0  ;;  %2025 = vst.msk [vmem:[#allocation2 + $0x1e8] sm:$0xff] %vm1963_vm3, %v1960_v41  ;;  %v7744_v25 = vpop.f32.mrf.mxu1 }
 0x292   : > { %2465 = vperm.xlu1 %6101, %v2155_v50   ;;  %v7773_v46 = vpop.permute.xlu1 %2160  ;;  %5951 = vmatmul.mubr.msk.bf16.gmra.mxu0 %vm1253_vm2, %v6169_v51  ;;  %v2144_v50 = vld [vmem:[%s9085_s6 + $0x190] sm:$0xff] }
 0x293   : > { %1897 = vadd.xlane.f32.xlu0 %v1706_v42  ;;  %v7751_v28 = vpop.f32.mrf.mxu1  ;;  %5954 = vmatprep.mubr.msk.bf16.mxu0 %vm1253_vm2, %v6170_v44  ;;  %v6172_v42 = vld [vmem:[%s9086_s7 + $0x30] sm:$0xff]  }
 0x294   : > { %v6180_v44 = vld [vmem:[%s9086_s7 + $0x70] sm:$0xff]  }
 0x295   : > { %v7761_v30 = vpop.f32.mrf.mxu1 }
 0x296   : > { %v7788_v34 = vpop.permute.xlu1 %2170 }
 0x297   : > { %v7771_v2 = vpop.f32.mrf.mxu1 }
 0x299   : > { %v7781_v0 = vpop.f32.mrf.mxu1 }
 0x29a   : > { %v7806_v15 = vpop.permute.xlu1 %2175  ;;  %5955 = vmatmul.mubr.msk.bf16.gmra.mxu0 %vm1253_vm2, %v6171_v7 }
 0x29b   : > { %v7793_v35 = vpop.f32.mrf.mxu1  ;;  %5958 = vmatprep.mubr.msk.bf16.mxu0 %vm1253_vm2, %v6172_v42 }
 0x29d   : > { %v7801_v48 = vpop.f32.mrf.mxu1 }
 0x29e   : > { %v7815_v41 = vpop.permute.xlu1 %2185 }
 0x29f   : > { %v7813_v49 = vpop.f32.mrf.mxu1 }
 0x2a9   : > { %2165 = vperm.xlu0 %6100, %v2095_v61   ;;  %v7823_v61 = vpop.f32.mrf.mxu1 }
 0x2ad   : > { %2180 = vperm.xlu0 %6100, %v2098_v9   ;;  %v6173_v9 = vld [vmem:[%s9086_s7 + $0x38] sm:$0xff]  }
 0x2ae   : > { %5959 = vmatmul.mubr.msk.bf16.gmra.mxu0 %vm1253_vm2, %v6173_v9 }
 0x2b1   : > { %2190 = vperm.xlu0 %6100, %v2100_v60   ;;  %v2146_v60 = vld [vmem:[%s9085_s6 + $0x1a0] sm:$0xff] }
 0x2b5   : > { %2200 = vperm.xlu0 %6100, %v2102_v63   ;;  %v7833_v63 = vpop.f32.mrf.mxu1 }
 0x2b9   : > { %2210 = vperm.xlu0 %6100, %v2104_v12   ;;  %v7835_v12 = vpop.permute.xlu1 %2195 }
 0x2bd   : > { %2220 = vperm.xlu0 %6100, %v2106_v21   ;;  %v2148_v21 = vld [vmem:[%s9085_s6 + $0x1b0] sm:$0xff] }
 0x2c1   : > { %2230 = vperm.xlu0 %6100, %v2108_v3   ;;  %v6174_v3 = vld [vmem:[%s9086_s7 + $0x40] sm:$0xff]  }
 0x2c2   : > { %5962 = vmatprep.mubr.msk.bf16.mxu0 %vm1253_vm2, %v6174_v3 }
 0x2c5   : > { %2240 = vperm.xlu0 %6100, %v2110_v56   ;;  %v7843_v56 = vpop.f32.mrf.mxu1 }
 0x2c9   : > { %2250 = vperm.xlu0 %6100, %v2112_v17   ;;  %v6175_v17 = vld [vmem:[%s9086_s7 + $0x48] sm:$0xff]  }
 0x2ca   : > { %5963 = vmatmul.mubr.msk.bf16.gmra.mxu0 %vm1253_vm2, %v6175_v17 }
 0x2cd   : > { %2260 = vperm.xlu0 %6100, %v2114_v14   ;;  %v7850_v14 = vpop.permute.xlu1 %2205 }
 0x2d1   : > { %2270 = vperm.xlu0 %6100, %v2116_v38   ;;  %v2150_v38 = vld [vmem:[%s9085_s6 + $0x1c0] sm:$0xff] }
 0x2d5   : > { %2280 = vperm.xlu0 %6100, %v2118_v40   ;;  %v7855_v40 = vpop.f32.mrf.mxu1 }
 0x2d9   : > { %2290 = vperm.xlu0 %6100, %v2120_v20   ;;  %v2152_v20 = vld [vmem:[%s9085_s6 + $0x1d0] sm:$0xff] }
 0x2dd   : > { %2300 = vperm.xlu0 %6100, %v2122_v5   ;;  %v6176_v5 = vld [vmem:[%s9086_s7 + $0x50] sm:$0xff]  }
 0x2de   : > { %5966 = vmatprep.mubr.msk.bf16.mxu0 %vm1253_vm2, %v6176_v5 }
 0x2e1   : > { %2310 = vperm.xlu0 %6100, %v2124_v52   ;;  %v7863_v52 = vpop.f32.mrf.mxu1 }
 0x2e3   : > { %v7875_v43 = vpop.f32.mrf.mxu1 }
 0x2e5   : > { %2320 = vperm.xlu0 %6100, %v2126_v22   ;;  %v6177_v22 = vld [vmem:[%s9086_s7 + $0x58] sm:$0xff]  }
 0x2e6   : > { %5967 = vmatmul.mubr.msk.bf16.gmra.mxu0 %vm1253_vm2, %v6177_v22 }
 0x2e9   : > { %2330 = vperm.xlu0 %6100, %v2128_v24   ;;  %v7868_v24 = vpop.permute.xlu1 %2215 }
 0x2ed   : > { %2340 = vperm.xlu0 %6100, %v2130_v26   ;;  %v1770_v26 = vld [vmem:[#allocation2 + $0x1f8] sm:$0xff]  ;;  %v7877_v29 = vpop.permute.xlu1 %2225 }
 0x2f1   : > { %2350 = vperm.xlu0 %6100, %v2132_v6  }
 0x2f5   : > { %2360 = vperm.xlu0 %6100, %v2134_v32   ;;  %v6178_v32 = vld [vmem:[%s9086_s7 + $0x60] sm:$0xff]  }
 0x2f6   : > { %5970 = vmatprep.mubr.msk.bf16.mxu0 %vm1253_vm2, %v6178_v32 }
 0x2f7   : > { %5971 = vmatmul.mubr.msk.bf16.gmra.mxu0 %vm1253_vm2, %v6179_v33 }
 0x2f8   : > { %5974 = vmatprep.mubr.msk.bf16.mxu0 %vm1253_vm2, %v6180_v44 }
 0x2f9   : > { %2370 = vperm.xlu0 %6100, %v2136_v53   ;;  %v7885_v53 = vpop.f32.mrf.mxu1 }
 0x2fb   : > { %v7893_v51 = vpop.f32.mrf.mxu1 }
 0x2fd   : > { %2380 = vperm.xlu0 %6100, %v2138_v10   ;;  %v7895_v10 = vpop.permute.xlu1 %2235 }
 0x301   : > { %2390 = vperm.xlu0 %6100, %v2140_v36  }
 0x305   : > { %2400 = vperm.xlu0 %6100, %v2142_v47   ;;  %v6181_v47 = vld [vmem:[%s9086_s7 + $0x78] sm:$0xff]  }
 0x306   : > { %5975 = vmatmul.mubr.msk.bf16.gmra.mxu0 %vm1253_vm2, %v6181_v47 }
 0x309   : > { %2410 = vperm.xlu0 %6100, %v2144_v50   ;;  %v7905_v50 = vpop.f32.mrf.mxu1 }
 0x30b   : > { %v7911_v3 = vpop.f32.mrf.mxu1 }
 0x30d   : > { %2420 = vperm.xlu0 %6100, %v2146_v60   ;;  %v7921_v5 = vpop.f32.mrf.mxu1 }
 0x311   : > { %2430 = vperm.xlu0 %6100, %v2148_v21   ;;  %v7909_v21 = vpop.permute.xlu1 %2245 }
 0x315   : > { %2440 = vperm.xlu0 %6100, %v2150_v38   ;;  %v6182_v38 = vld [vmem:[%s9086_s7 + $0x80] sm:$0xff]  }
 0x316   : > { %5978 = vmatprep.mubr.msk.bf16.mxu0 %vm1253_vm2, %v6182_v38 }
 0x319   : > { %2450 = vperm.xlu0 %6100, %v2152_v20  }
 0x31c   : > { %v1898_v1 = vpop.xlane.xlu0 %1897 }
 0x31d   : > { %v1962_v6 = vadd.f32 %v1898_v1, %v1770_v26  ;;  %2460 = vperm.xlu0 %6100, %v2154_v27   ;;  %v7923_v26 = vpop.permute.xlu1 %2255 }
 0x31f   : > { %2027 = vst.msk [vmem:[#allocation2 + $0x1f8] sm:$0xff] %vm1963_vm3, %v1962_v6  ;;  %v7927_v6 = vpop.f32.mrf.mxu1 }
 0x321   : > { %2470 = vperm.xlu0 %6100, %v2156_v31   ;;  %v7930_v33 = vpop.permute.xlu1 %2265  ;;  %v7935_v44 = vpop.f32.mrf.mxu1 }
 0x324   : > { %v2166_v36 = vpop.permute.xlu0 %2165 }
 0x325   : > { %v2775_v7 = vadd.f32 %v7674_v37, %v2166_v36  ;;  %v6184_v36 = vld [vmem:[%s9086_s7 + $0x90] sm:$0xff]  }
 0x327   : > { %v3027_v42 = vmax.f32 %v2775_v7, 0.0 }
 0x328   : > { %v2181_v9 = vpop.permute.xlu0 %2180 }
 0x329   : > { %v2788_v60 = vadd.f32 %v7684_v55, %v2181_v9  ;;  %3156 = vadd.xlane.f32.xlu1 %v3027_v42  ;;  %v6183_v55 = vld [vmem:[%s9086_s7 + $0x88] sm:$0xff]   ;;  %v7945_v9 = vpop.f32.mrf.mxu1 }
 0x32a   : > { %5979 = vmatmul.mubr.msk.bf16.gmra.mxu0 %vm1253_vm2, %v6183_v55  ;;  %v2780_v55 = vadd.f32 %v7659_v11, %v7788_v34  ;;  %v2783_v34 = vadd.f32 %v7669_v62, %v7806_v15  ;;  %v6189_v15 = vld [vmem:[%s9086_s7 + $0xb8] sm:$0xff]  }
 0x32b   : > { %v3030_v37 = vmax.f32 %v2788_v60, 0.0  ;;  %5982 = vmatprep.mubr.msk.bf16.mxu0 %vm1253_vm2, %v6184_v36 }
 0x32c   : > { %v2191_v17 = vpop.permute.xlu0 %2190  ;;  %v3028_v11 = vmax.f32 %v2780_v55, 0.0 }
 0x32d   : > { %v2796_v20 = vadd.f32 %v7679_v45, %v2191_v17  ;;  %3162 = vadd.xlane.f32.xlu1 %v3030_v37  ;;  %v7947_v37 = vpop.permute.xlu1 %2275 }
 0x32f   : > { %v3032_v22 = vmax.f32 %v2796_v20, 0.0 }
 0x330   : > { %v2201_v27 = vpop.permute.xlu0 %2200 }
 0x331   : > { %v2804_v1 = vadd.f32 %v7704_v13, %v2201_v27  ;;  %3166 = vadd.xlane.f32.xlu1 %v3032_v22  ;;  %v6185_v13 = vld [vmem:[%s9086_s7 + $0x98] sm:$0xff]   ;;  %v7955_v22 = vpop.f32.mrf.mxu1 }
 0x332   : > { %5983 = vmatmul.mubr.msk.bf16.gmra.mxu0 %vm1253_vm2, %v6185_v13  ;;  %v6188_v13 = vld [vmem:[%s9086_s7 + $0xb0] sm:$0xff]  }
 0x333   : > { %v3034_v45 = vmax.f32 %v2804_v1, 0.0  ;;  %v7965_v1 = vpop.permute.xlu1 %2285 }
 0x334   : > { %v2211_v31 = vpop.permute.xlu0 %2210 }
 0x335   : > { %v2812_v32 = vadd.f32 %v7699_v8, %v2211_v31  ;;  %3170 = vadd.xlane.f32.xlu1 %v3034_v45  ;;  %v2772_v8 = vadd.f32 %v7664_v16, %v7773_v46  ;;  %v6187_v46 = vld [vmem:[%s9086_s7 + $0xa8] sm:$0xff]   ;;  %v7967_v45 = vpop.f32.mrf.mxu1 }
 0x337   : > { %v3036_v7 = vmax.f32 %v2812_v32, 0.0  ;;  %v3026_v20 = vmax.f32 %v2772_v8, 0.0 }
 0x338   : > { %v2221_v47 = vpop.permute.xlu0 %2220 }
 0x339   : > { %v2820_v42 = vadd.f32 %v7724_v59, %v2221_v47  ;;  %3174 = vadd.xlane.f32.xlu1 %v3036_v7  ;;  %v6186_v59 = vld [vmem:[%s9086_s7 + $0xa0] sm:$0xff]   ;;  %v3029_v7 = vmax.f32 %v2783_v34, 0.0  ;;  %v7975_v47 = vpop.f32.mrf.mxu1 }
 0x33a   : > { %5986 = vmatprep.mubr.msk.bf16.mxu0 %vm1253_vm2, %v6186_v59  ;;  %v2807_v59 = vadd.f32 %v7714_v19, %v7850_v14  ;;  %v2815_v14 = vadd.f32 %v7709_v18, %v7868_v24  ;;  %v6193_v24 = vld [vmem:[%s9086_s7 + $0xd8] sm:$0xff]  }
 0x33b   : > { %v3038_v60 = vmax.f32 %v2820_v42, 0.0  ;;  %5987 = vmatmul.mubr.msk.bf16.gmra.mxu0 %vm1253_vm2, %v6187_v46  ;;  %v7980_v42 = vpop.permute.xlu1 %2295 }
 0x33c   : > { %v2231_v17 = vpop.permute.xlu0 %2230  ;;  %5990 = vmatprep.mubr.msk.bf16.mxu0 %vm1253_vm2, %v6188_v13  ;;  %v3035_v19 = vmax.f32 %v2807_v59, 0.0 }
 0x33d   : > { %v2828_v38 = vadd.f32 %v7719_v39, %v2231_v17  ;;  %3178 = vadd.xlane.f32.xlu1 %v3038_v60  ;;  %v7987_v60 = vpop.f32.mrf.mxu1 }
 0x33f   : > { %v3040_v16 = vmax.f32 %v2828_v38, 0.0  ;;  %v7997_v46 = vpop.f32.mrf.mxu1 }
 0x340   : > { %3154 = vadd.xlane.f32.xlu0 %v3026_v20  ;;  %v2241_v27 = vpop.permute.xlu0 %2240 }
 0x341   : > { %v2836_v39 = vadd.f32 %v7744_v25, %v2241_v27  ;;  %3182 = vadd.xlane.f32.xlu1 %v3040_v16  ;;  %v2791_v25 = vadd.f32 %v7694_v4, %v7815_v41  ;;  %v2799_v41 = vadd.f32 %v7689_v58, %v7835_v12  ;;  %v6190_v16 = vld [vmem:[%s9086_s7 + $0xc0] sm:$0xff]   ;;  %v6191_v12 = vld [vmem:[%s9086_s7 + $0xc8] sm:$0xff]  }
 0x343   : > { %v3042_v31 = vmax.f32 %v2836_v39, 0.0  ;;  %5991 = vmatmul.mubr.msk.bf16.gmra.mxu0 %vm1253_vm2, %v6189_v15  ;;  %v3031_v4 = vmax.f32 %v2791_v25, 0.0  ;;  %v3033_v55 = vmax.f32 %v2799_v41, 0.0  ;;  %v8007_v39 = vpop.f32.mrf.mxu1 }
 0x344   : > { %3158 = vadd.xlane.f32.xlu0 %v3028_v11  ;;  %v2251_v32 = vpop.permute.xlu0 %2250  ;;  %5994 = vmatprep.mubr.msk.bf16.mxu0 %vm1253_vm2, %v6190_v16 }
 0x345   : > { %v2844_v36 = vadd.f32 %v7739_v23, %v2251_v32  ;;  %3186 = vadd.xlane.f32.xlu1 %v3042_v31  ;;  %v8017_v25 = vpop.f32.mrf.mxu1 }
 0x347   : > { %v3044_v62 = vmax.f32 %v2844_v36, 0.0  ;;  %v3037_v36 = vmax.f32 %v2815_v14, 0.0  ;;  %v8029_v15 = vpop.f32.mrf.mxu1 }
 0x348   : > { %3160 = vadd.xlane.f32.xlu0 %v3029_v7  ;;  %v2261_v23 = vpop.permute.xlu0 %2260  ;;  %v6192_v7 = vld [vmem:[%s9086_s7 + $0xd0] sm:$0xff]  }
 0x349   : > { %v2852_v8 = vadd.f32 %v7781_v0, %v2261_v23  ;;  %3190 = vadd.xlane.f32.xlu1 %v3044_v62  ;;  %v7992_v0 = vpop.permute.xlu1 %2305 }
 0x34b   : > { %v3046_v17 = vmax.f32 %v2852_v8, 0.0  ;;  %5995 = vmatmul.mubr.msk.bf16.gmra.mxu0 %vm1253_vm2, %v6191_v12 }
 0x34c   : > { %3164 = vadd.xlane.f32.xlu0 %v3031_v4  ;;  %v2271_v38 = vpop.permute.xlu0 %2270  ;;  %5998 = vmatprep.mubr.msk.bf16.mxu0 %vm1253_vm2, %v6192_v7 }
 0x34d   : > { %v2860_v20 = vadd.f32 %v7771_v2, %v2271_v38  ;;  %3194 = vadd.xlane.f32.xlu1 %v3046_v17  ;;  %v8009_v34 = vpop.permute.xlu1 %2315  ;;  %v6194_v17 = vld [vmem:[%s9086_s7 + $0xe0] sm:$0xff]   ;;  %v8037_v38 = vpop.f32.mrf.mxu1 }
 0x34f   : > { %v3048_v58 = vmax.f32 %v2860_v20, 0.0  ;;  %v8049_v59 = vpop.f32.mrf.mxu1 }
 0x350   : > { %3168 = vadd.xlane.f32.xlu0 %v3033_v55  ;;  %v2281_v2 = vpop.permute.xlu0 %2280 }
 0x351   : > { %v2868_v27 = vadd.f32 %v7823_v61, %v2281_v2  ;;  %3198 = vadd.xlane.f32.xlu1 %v3048_v58  ;;  %v2823_v61 = vadd.f32 %v7734_v57, %v7877_v29  ;;  %v2831_v29 = vadd.f32 %v7729_v54, %v7895_v10  ;;  %v8027_v62 = vpop.permute.xlu1 %2325  ;;  %v6195_v10 = vld [vmem:[%s9086_s7 + $0xe8] sm:$0xff]   ;;  %v2963_v14 = vpop.f32.mrf.mxu1 }
 0x353   : > { %v3050_v11 = vmax.f32 %v2868_v27, 0.0  ;;  %5999 = vmatmul.mubr.msk.bf16.gmra.mxu0 %vm1253_vm2, %v6193_v24  ;;  %v3039_v57 = vmax.f32 %v2823_v61, 0.0  ;;  %v3041_v41 = vmax.f32 %v2831_v29, 0.0  ;;  %v2855_v27 = vadd.f32 %v7801_v48, %v7930_v33 }
 0x354   : > { %3172 = vadd.xlane.f32.xlu0 %v3035_v19  ;;  %v2291_v31 = vpop.permute.xlu0 %2290  ;;  %6002 = vmatprep.mubr.msk.bf16.mxu0 %vm1253_vm2, %v6194_v17  ;;  %v6196_v19 = vld [vmem:[%s9086_s7 + $0xf0] sm:$0xff]   ;;  %v2863_v33 = vadd.f32 %v7793_v35, %v7947_v37 }
 0x355   : > { %v2876_v32 = vadd.f32 %v7813_v49, %v2291_v31  ;;  %3202 = vadd.xlane.f32.xlu1 %v3050_v11  ;;  %v8042_v20 = vpop.permute.xlu1 %2335  ;;  %v3047_v48 = vmax.f32 %v2855_v27, 0.0  ;;  %v8067_v31 = vpop.f32.mrf.mxu1 }
 0x357   : > { %v3052_v18 = vmax.f32 %v2876_v32, 0.0  ;;  %v8074_v24 = vpop.f32.mrf.mxu1 }
 0x358   : > { %3176 = vadd.xlane.f32.xlu0 %v3037_v36  ;;  %v2301_v13 = vpop.permute.xlu0 %2300 }
 0x359   : > { %v2884_v49 = vadd.f32 %v7863_v52, %v2301_v13  ;;  %3206 = vadd.xlane.f32.xlu1 %v3052_v18  ;;  %v2839_v52 = vadd.f32 %v7761_v30, %v7909_v21  ;;  %v2847_v21 = vadd.f32 %v7751_v28, %v7923_v26  ;;  %v6197_v26 = vld [vmem:[%s9086_s7 + $0xf8] sm:$0xff]   ;;  %v3049_v18 = vmax.f32 %v2863_v33, 0.0 }
 0x35b   : > { %v3054_v23 = vmax.f32 %v2884_v49, 0.0  ;;  %6003 = vmatmul.mubr.msk.bf16.gmra.mxu0 %vm1253_vm2, %v6195_v10  ;;  %v3043_v30 = vmax.f32 %v2839_v52, 0.0  ;;  %v3045_v2 = vmax.f32 %v2847_v21, 0.0 }
 0x35c   : > { %3180 = vadd.xlane.f32.xlu0 %v3039_v57  ;;  %v2311_v8 = vpop.permute.xlu0 %2310  ;;  %6006 = vmatprep.mubr.msk.bf16.mxu0 %vm1253_vm2, %v6196_v19  ;;  %v2879_v57 = vadd.f32 %v7833_v63, %v7980_v42  ;;  %v2895_v42 = vadd.f32 %v7875_v43, %v8009_v34  ;;  %v2911_v34 = vadd.f32 %v7911_v3, %v8042_v20 }
 0x35d   : > { %v2892_v4 = vadd.f32 %v7855_v40, %v2311_v8  ;;  %3210 = vadd.xlane.f32.xlu1 %v3054_v23  ;;  %v5934_v23 = vpop.f32.mrf.mxu1 }
 0x35f   : > { %v3056_v54 = vmax.f32 %v2892_v4, 0.0 }
 0x360   : > { %3184 = vadd.xlane.f32.xlu0 %v3041_v41  ;;  %v2321_v40 = vpop.permute.xlu0 %2320  ;;  %v2979_v41 = vpop.f32.mrf.mxu1 }
 0x361   : > { %v2900_v55 = vadd.f32 %v7905_v50, %v2321_v40  ;;  %3214 = vadd.xlane.f32.xlu1 %v3056_v54  ;;  %v8054_v50 = vpop.permute.xlu1 %2345 }
 0x362   : > { %v8085_v10 = vpop.f32.mrf.mxu1 }
 0x363   : > { %v3058_v16 = vmax.f32 %v2900_v55, 0.0  ;;  %6007 = vmatmul.mubr.msk.bf16.gmra.mxu0 %vm1253_vm2, %v6197_v26 }
 0x364   : > { %3188 = vadd.xlane.f32.xlu0 %v3043_v30  ;;  %v2331_v58 = vpop.permute.xlu0 %2330  ;;  %v8090_v21 = vpop.f32.mrf.mxu1 }
 0x365   : > { %v2908_v12 = vadd.f32 %v7893_v51, %v2331_v58  ;;  %3218 = vadd.xlane.f32.xlu1 %v3058_v16  ;;  %v8069_v36 = vpop.permute.xlu1 %2355 }
 0x366   : > { %v2927_v3 = vadd.f32 %v7945_v9, %v8069_v36 }
 0x367   : > { %v3060_v28 = vmax.f32 %v2908_v12, 0.0  ;;  %v5938_v12 = vpop.f32.mrf.mxu1 }
 0x368   : > { %3192 = vadd.xlane.f32.xlu0 %v3045_v2  ;;  %v2341_v11 = vpop.permute.xlu0 %2340 }
 0x369   : > { %v2916_v51 = vadd.f32 %v7935_v44, %v2341_v11  ;;  %3222 = vadd.xlane.f32.xlu1 %v3060_v28  ;;  %v2871_v44 = vadd.f32 %v7843_v56, %v7965_v1  ;;  %v2366_v29 = vpop.permute.xlu1 %2365  ;;  %v3053_v56 = vmax.f32 %v2879_v57, 0.0  ;;  %v2887_v1 = vadd.f32 %v7885_v53, %v7992_v0  ;;  %v2995_v28 = vpop.f32.mrf.mxu1 }
 0x36a   : > { %v3057_v53 = vmax.f32 %v2895_v42, 0.0  ;;  %v2903_v0 = vadd.f32 %v7921_v5, %v8027_v62  ;;  %v3061_v5 = vmax.f32 %v2911_v34, 0.0  ;;  %v2919_v62 = vadd.f32 %v7955_v22, %v8054_v50 }
 0x36b   : > { %v3062_v32 = vmax.f32 %v2916_v51, 0.0  ;;  %v3051_v37 = vmax.f32 %v2871_v44, 0.0  ;;  %v3055_v63 = vmax.f32 %v2887_v1, 0.0  ;;  %v2935_v22 = vadd.f32 %v7997_v46, %v2366_v29 }
 0x36c   : > { %3196 = vadd.xlane.f32.xlu0 %v3047_v48  ;;  %v2351_v61 = vpop.permute.xlu0 %2350  ;;  %v3059_v43 = vmax.f32 %v2903_v0, 0.0  ;;  %v3063_v51 = vmax.f32 %v2919_v62, 0.0  ;;  %v8099_v48 = vpop.f32.mrf.mxu1 }
 0x36d   : > { %v2924_v7 = vadd.f32 %v7927_v6, %v2351_v61  ;;  %3226 = vadd.xlane.f32.xlu1 %v3062_v32  ;;  %v3065_v61 = vmax.f32 %v2927_v3, 0.0 }
 0x36e   : > { %v2998_v50 = vpop.f32.mrf.mxu1 }
 0x36f   : > { %v3064_v13 = vmax.f32 %v2924_v7, 0.0 }
 0x370   : > { %3200 = vadd.xlane.f32.xlu0 %v3049_v18  ;;  %v2361_v49 = vpop.permute.xlu0 %2360 }
 0x371   : > { %v2932_v35 = vadd.f32 %v7975_v47, %v2361_v49  ;;  %3230 = vadd.xlane.f32.xlu1 %v3064_v13  ;;  %v2376_v47 = vpop.permute.xlu1 %2375  ;;  %v3067_v49 = vmax.f32 %v2935_v22, 0.0 }
 0x372   : > { %v2943_v9 = vadd.f32 %v7987_v60, %v2376_v47 }
 0x373   : > { %v3066_v6 = vmax.f32 %v2932_v35, 0.0  ;;  %v5942_v35 = vpop.f32.mrf.mxu1 }
 0x374   : > { %3204 = vadd.xlane.f32.xlu0 %v3051_v37  ;;  %v2371_v8 = vpop.permute.xlu0 %2370 }
 0x375   : > { %v2940_v4 = vadd.f32 %v7967_v45, %v2371_v8  ;;  %3234 = vadd.xlane.f32.xlu1 %v3066_v6  ;;  %v2386_v30 = vpop.permute.xlu1 %2385  ;;  %v3011_v8 = vpop.f32.mrf.mxu1 }
 0x376   : > { %v2951_v6 = vadd.f32 %v8037_v38, %v2386_v30 }
 0x377   : > { %v3068_v52 = vmax.f32 %v2940_v4, 0.0 }
 0x378   : > { %3208 = vadd.xlane.f32.xlu0 %v3053_v56  ;;  %v2381_v17 = vpop.permute.xlu0 %2380  ;;  %v3071_v1 = vmax.f32 %v2951_v6, 0.0  ;;  %v3092_v6 = vld [vmem:[#allocation2 + $0x210] sm:$0xff] }
 0x379   : > { %v2948_v54 = vadd.f32 %v8017_v25, %v2381_v17  ;;  %3238 = vadd.xlane.f32.xlu1 %v3068_v52 }
 0x37b   : > { %v3070_v45 = vmax.f32 %v2948_v54, 0.0 }
 0x37c   : > { %3212 = vadd.xlane.f32.xlu0 %v3055_v63  ;;  %v2391_v40 = vpop.permute.xlu0 %2390 }
 0x37d   : > { %v2956_v55 = vadd.f32 %v8007_v39, %v2391_v40  ;;  %3242 = vadd.xlane.f32.xlu1 %v3070_v45  ;;  %v2396_v39 = vpop.permute.xlu1 %2395 }
 0x37f   : > { %v3072_v25 = vmax.f32 %v2956_v55, 0.0 }
 0x380   : > { %3216 = vadd.xlane.f32.xlu0 %v3057_v53  ;;  %v2401_v16 = vpop.permute.xlu0 %2400 }
 0x381   : > { %v2964_v58 = vadd.f32 %v2963_v14, %v2401_v16  ;;  %3246 = vadd.xlane.f32.xlu1 %v3072_v25  ;;  %v2406_v20 = vpop.permute.xlu1 %2405 }
 0x382   : > { %v2967_v63 = vadd.f32 %v8074_v24, %v2406_v20  ;;  %v3479_v20 = vld [vmem:[%s9110_s26 + $0x18] sm:$0xff] }
 0x383   : > { %v3074_v2 = vmax.f32 %v2964_v58, 0.0  ;;  %v8109_v58 = vpop.f32.mrf.mxu1 }
 0x384   : > { %3220 = vadd.xlane.f32.xlu0 %v3059_v43  ;;  %v2411_v27 = vpop.permute.xlu0 %2410  ;;  %v3075_v42 = vmax.f32 %v2967_v63, 0.0  ;;  %v3091_v43 = vld [vmem:[#allocation2 + $0x208] sm:$0xff] }
 0x385   : > { %v2972_v19 = vadd.f32 %v8049_v59, %v2411_v27  ;;  %3250 = vadd.xlane.f32.xlu1 %v3074_v2  ;;  %v2416_v18 = vpop.permute.xlu1 %2415  ;;  %v3014_v2 = vpop.f32.mrf.mxu1  ;;  %v3094_v27 = vld [vmem:[#allocation2 + $0x220] sm:$0xff] }
 0x386   : > { %v2975_v45 = vadd.f32 %v8067_v31, %v2416_v18  ;;  %v2157_v31 = vld [vmem:[%s9085_s6 + $0x1f8] sm:$0xff]  ;;  %v3102_v18 = vld [vmem:[#allocation2 + $0x260] sm:$0xff] }
 0x387   : > { %v3076_v26 = vmax.f32 %v2972_v19, 0.0 }
 0x388   : > { %3224 = vadd.xlane.f32.xlu0 %v3061_v5  ;;  %v2421_v14 = vpop.permute.xlu0 %2420  ;;  %v3077_v55 = vmax.f32 %v2975_v45, 0.0  ;;  %v3110_v45 = vld [vmem:[#allocation2 + $0x2a0] sm:$0xff] }
 0x389   : > { %v2980_v11 = vadd.f32 %v2979_v41, %v2421_v14  ;;  %3254 = vadd.xlane.f32.xlu1 %v3076_v26  ;;  %v2426_v46 = vpop.permute.xlu1 %2425  ;;  %v2959_v41 = vadd.f32 %v8029_v15, %v2396_v39  ;;  %v3478_v26 = vld [vmem:[%s9110_s26 + $0x10] sm:$0xff] }
 0x38a   : > { %v2983_v15 = vadd.f32 %v8090_v21, %v2426_v46  ;;  %v3096_v14 = vld [vmem:[#allocation2 + $0x230] sm:$0xff]  ;;  %v3487_v46 = vld [vmem:[%s9110_s26 + $0x58] sm:$0xff] }
 0x38b   : > { %v3078_v33 = vmax.f32 %v2980_v11, 0.0  ;;  %v3073_v54 = vmax.f32 %v2959_v41, 0.0  ;;  %v3093_v41 = vld [vmem:[#allocation2 + $0x218] sm:$0xff] }
 0x38c   : > { %3228 = vadd.xlane.f32.xlu0 %v3063_v51  ;;  %v2431_v59 = vpop.permute.xlu0 %2430  ;;  %v3079_v0 = vmax.f32 %v2983_v15, 0.0 }
 0x38d   : > { %v2988_v32 = vadd.f32 %v5934_v23, %v2431_v59  ;;  %3258 = vadd.xlane.f32.xlu1 %v3078_v33  ;;  %v3069_v23 = vmax.f32 %v2943_v9, 0.0  ;;  %v2436_v52 = vpop.permute.xlu1 %2435  ;;  %v3485_v9 = vld [vmem:[%s9110_s26 + $0x48] sm:$0xff] }
 0x38e   : > { %v2991_v30 = vadd.f32 %v8085_v10, %v2436_v52  ;;  %v3476_v10 = vld [vmem:[%s9110_s26] sm:$0xff]  ;;  %v3108_v52 = vld [vmem:[#allocation2 + $0x290] sm:$0xff] }
 0x38f   : > { %v3080_v7 = vmax.f32 %v2988_v32, 0.0  ;;  %v3481_v32 = vld [vmem:[%s9110_s26 + $0x28] sm:$0xff] }
 0x390   : > { %3232 = vadd.xlane.f32.xlu0 %v3065_v61  ;;  %v2441_v44 = vpop.permute.xlu0 %2440  ;;  %v3081_v25 = vmax.f32 %v2991_v30, 0.0  ;;  %v3100_v61 = vld [vmem:[#allocation2 + $0x250] sm:$0xff]  ;;  %v3493_v30 = vld [vmem:[%s9110_s26 + $0x88] sm:$0xff] }
 0x391   : > { %v2996_v13 = vadd.f32 %v2995_v28, %v2441_v44  ;;  %3262 = vadd.xlane.f32.xlu1 %v3080_v7  ;;  %v2446_v40 = vpop.permute.xlu1 %2445  ;;  %v3483_v7 = vld [vmem:[%s9110_s26 + $0x38] sm:$0xff] }
 0x392   : > { %v2999_v16 = vadd.f32 %v2998_v50, %v2446_v40 }
 0x393   : > { %v3082_v36 = vmax.f32 %v2996_v13, 0.0 }
 0x394   : > { %3236 = vadd.xlane.f32.xlu0 %v3067_v49  ;;  %v2451_v37 = vpop.permute.xlu0 %2450  ;;  %v3083_v34 = vmax.f32 %v2999_v16, 0.0  ;;  %v3090_v49 = vld [vmem:[#allocation2 + $0x200] sm:$0xff] }
 0x395   : > { %v3004_v57 = vadd.f32 %v5938_v12, %v2451_v37  ;;  %3266 = vadd.xlane.f32.xlu1 %v3082_v36  ;;  %v2456_v53 = vpop.permute.xlu1 %2455  ;;  %v3104_v36 = vld [vmem:[#allocation2 + $0x270] sm:$0xff] }
 0x396   : > { %v3007_v21 = vadd.f32 %v8099_v48, %v2456_v53  ;;  %v3098_v48 = vld [vmem:[#allocation2 + $0x240] sm:$0xff] }
 0x397   : > { %v3084_v29 = vmax.f32 %v3004_v57, 0.0 }
 0x398   : > { %3240 = vadd.xlane.f32.xlu0 %v3069_v23  ;;  %v2461_v4 = vpop.permute.xlu0 %2460  ;;  %v3085_v19 = vmax.f32 %v3007_v21, 0.0  ;;  %v3495_v21 = vld [vmem:[%s9110_s26 + $0x98] sm:$0xff] }
 0x399   : > { %v3012_v56 = vadd.f32 %v3011_v8, %v2461_v4  ;;  %3270 = vadd.xlane.f32.xlu1 %v3084_v29  ;;  %v2466_v24 = vpop.permute.xlu1 %2465  ;;  %v3106_v29 = vld [vmem:[#allocation2 + $0x280] sm:$0xff] }
 0x39a   : > { %v3015_v5 = vadd.f32 %v3014_v2, %v2466_v24 }
 0x39b   : > { %v3086_v60 = vmax.f32 %v3012_v56, 0.0 }
 0x39c   : > { %3244 = vadd.xlane.f32.xlu0 %v3071_v1  ;;  %v2471_v47 = vpop.permute.xlu0 %2470  ;;  %v3087_v11 = vmax.f32 %v3015_v5, 0.0  ;;  %v3497_v5 = vld [vmem:[%s9110_s26 + $0xa8] sm:$0xff] }
 0x39d   : > { %v3020_v17 = vadd.f32 %v5942_v35, %v2471_v47  ;;  %3274 = vadd.xlane.f32.xlu1 %v3086_v60  ;;  %v3489_v60 = vld [vmem:[%s9110_s26 + $0x68] sm:$0xff] }
 0x39f   : > { %v3088_v38 = vmax.f32 %v3020_v17, 0.0 }
 0x3a0   : > { %3248 = vadd.xlane.f32.xlu0 %v3073_v54 }
 0x3a1   : > { %3278 = vadd.xlane.f32.xlu1 %v3088_v38  ;;  %v3095_v38 = vld [vmem:[#allocation2 + $0x228] sm:$0xff] }
 0x3a4   : > { %3252 = vadd.xlane.f32.xlu0 %v3075_v42  ;;  %v3491_v42 = vld [vmem:[%s9110_s26 + $0x78] sm:$0xff] }
 0x3a8   : > { %3256 = vadd.xlane.f32.xlu0 %v3077_v55 }
 0x3ac   : > { %3260 = vadd.xlane.f32.xlu0 %v3079_v0  ;;  %v3097_v0 = vld [vmem:[#allocation2 + $0x238] sm:$0xff] }
 0x3b0   : > { %3264 = vadd.xlane.f32.xlu0 %v3081_v25  ;;  %v3112_v25 = vld [vmem:[#allocation2 + $0x2b0] sm:$0xff] }
 0x3b2   : > { %v3157_v12 = vpop.xlane.xlu1 %3156  ;;  %2475 = vperm.xlu1 %6101, %v2157_v31  }
 0x3b3   : > { %v3283_v39 = vadd.f32 %v3157_v12, %v3091_v43  ;;  %v3114_v12 = vld [vmem:[#allocation2 + $0x2c0] sm:$0xff] }
 0x3b4   : > { %3268 = vadd.xlane.f32.xlu0 %v3083_v34  ;;  %v3099_v34 = vld [vmem:[#allocation2 + $0x248] sm:$0xff] }
 0x3b5   : > { %3347 = vst.msk [vmem:[#allocation2 + $0x208] sm:$0xff] %vm1963_vm3, %v3283_v39 }
 0x3b6   : > { %v3163_v62 = vpop.xlane.xlu1 %3162  ;;  %3542 = vperm.xlu1 %6101, %v3476_v10  }
 0x3b7   : > { %v3286_v28 = vadd.f32 %v3163_v62, %v3094_v27  ;;  %v3116_v62 = vld [vmem:[#allocation2 + $0x2d0] sm:$0xff] }
 0x3b8   : > { %3272 = vadd.xlane.f32.xlu0 %v3085_v19  ;;  %v3101_v19 = vld [vmem:[#allocation2 + $0x258] sm:$0xff] }
 0x3b9   : > { %3350 = vst.msk [vmem:[#allocation2 + $0x220] sm:$0xff] %vm1963_vm3, %v3286_v28 }
 0x3ba   : > { %v3167_v51 = vpop.xlane.xlu1 %3166  ;;  %3552 = vperm.xlu1 %6101, %v3478_v26  }
 0x3bb   : > { %v3288_v3 = vadd.f32 %v3167_v51, %v3096_v14  ;;  %v3103_v51 = vld [vmem:[#allocation2 + $0x268] sm:$0xff] }
 0x3bc   : > { %3276 = vadd.xlane.f32.xlu0 %v3087_v11 }
 0x3bd   : > { %3352 = vst.msk [vmem:[#allocation2 + $0x230] sm:$0xff] %vm1963_vm3, %v3288_v3  ;;  %v3499_v3 = vld [vmem:[%s9110_s26 + $0xb8] sm:$0xff] }
 0x3be   : > { %v3171_v33 = vpop.xlane.xlu1 %3170  ;;  %3557 = vperm.xlu1 %6101, %v3479_v20   ;;  %v3118_v20 = vld [vmem:[#allocation2 + $0x2e0] sm:$0xff] }
 0x3bf   : > { %v3290_v59 = vadd.f32 %v3171_v33, %v3098_v48 }
 0x3c1   : > { %3354 = vst.msk [vmem:[#allocation2 + $0x240] sm:$0xff] %vm1963_vm3, %v3290_v59 }
 0x3c2   : > { %v3175_v22 = vpop.xlane.xlu1 %3174  ;;  %3567 = vperm.xlu1 %6101, %v3481_v32  }
 0x3c3   : > { %v3292_v50 = vadd.f32 %v3175_v22, %v3100_v61  ;;  %v3105_v61 = vld [vmem:[#allocation2 + $0x278] sm:$0xff]  ;;  %v3501_v22 = vld [vmem:[%s9110_s26 + $0xc8] sm:$0xff] }
 0x3c5   : > { %3356 = vst.msk [vmem:[#allocation2 + $0x250] sm:$0xff] %vm1963_vm3, %v3292_v50  ;;  %v3120_v50 = vld [vmem:[#allocation2 + $0x2f0] sm:$0xff] }
 0x3c6   : > { %v3179_v44 = vpop.xlane.xlu1 %3178  ;;  %3577 = vperm.xlu1 %6101, %v3483_v7  }
 0x3c7   : > { %v3294_v13 = vadd.f32 %v3179_v44, %v3102_v18 }
 0x3c9   : > { %3358 = vst.msk [vmem:[#allocation2 + $0x260] sm:$0xff] %vm1963_vm3, %v3294_v13  ;;  %v3155_v35 = vpop.xlane.xlu0 %3154 }
 0x3ca   : > { %v3282_v37 = vadd.f32 %v3155_v35, %v3090_v49  ;;  %v3183_v57 = vpop.xlane.xlu1 %3182  ;;  %3587 = vperm.xlu1 %6101, %v3485_v9   ;;  %v3107_v49 = vld [vmem:[#allocation2 + $0x288] sm:$0xff]  ;;  %v3503_v9 = vld [vmem:[%s9110_s26 + $0xd8] sm:$0xff] }
 0x3cb   : > { %v3296_v23 = vadd.f32 %v3183_v57, %v3104_v36  ;;  %v3122_v36 = vld [vmem:[#allocation2 + $0x300] sm:$0xff] }
 0x3cc   : > { %3346 = vst.msk [vmem:[#allocation2 + $0x200] sm:$0xff] %vm1963_vm3, %v3282_v37 }
 0x3cd   : > { %3360 = vst.msk [vmem:[#allocation2 + $0x270] sm:$0xff] %vm1963_vm3, %v3296_v23  ;;  %v3159_v8 = vpop.xlane.xlu0 %3158 }
 0x3ce   : > { %v3284_v4 = vadd.f32 %v3159_v8, %v3092_v6  ;;  %v3187_v56 = vpop.xlane.xlu1 %3186  ;;  %3597 = vperm.xlu1 %6101, %v3487_v46   ;;  %v3109_v6 = vld [vmem:[#allocation2 + $0x298] sm:$0xff]  ;;  %v3505_v46 = vld [vmem:[%s9110_s26 + $0xe8] sm:$0xff] }
 0x3cf   : > { %v3298_v1 = vadd.f32 %v3187_v56, %v3106_v29  ;;  %v3124_v29 = vld [vmem:[#allocation2 + $0x310] sm:$0xff] }
 0x3d0   : > { %3348 = vst.msk [vmem:[#allocation2 + $0x210] sm:$0xff] %vm1963_vm3, %v3284_v4 }
 0x3d1   : > { %3362 = vst.msk [vmem:[#allocation2 + $0x280] sm:$0xff] %vm1963_vm3, %v3298_v1  ;;  %v3161_v47 = vpop.xlane.xlu0 %3160 }
 0x3d2   : > { %v3285_v17 = vadd.f32 %v3161_v47, %v3093_v41  ;;  %v3191_v54 = vpop.xlane.xlu1 %3190  ;;  %3607 = vperm.xlu1 %6101, %v3489_v60   ;;  %v3111_v41 = vld [vmem:[#allocation2 + $0x2a8] sm:$0xff]  ;;  %v3507_v60 = vld [vmem:[%s9110_s26 + $0xf8] sm:$0xff] }
 0x3d3   : > { %v3300_v63 = vadd.f32 %v3191_v54, %v3108_v52  ;;  %v3126_v52 = vld [vmem:[#allocation2 + $0x320] sm:$0xff] }
 0x3d4   : > { %3349 = vst.msk [vmem:[#allocation2 + $0x218] sm:$0xff] %vm1963_vm3, %v3285_v17 }
 0x3d5   : > { %3364 = vst.msk [vmem:[#allocation2 + $0x290] sm:$0xff] %vm1963_vm3, %v3300_v63  ;;  %v3165_v40 = vpop.xlane.xlu0 %3164 }
 0x3d6   : > { %v3287_v55 = vadd.f32 %v3165_v40, %v3095_v38  ;;  %v3195_v15 = vpop.xlane.xlu1 %3194  ;;  %3617 = vperm.xlu1 %6101, %v3491_v42   ;;  %v3113_v38 = vld [vmem:[#allocation2 + $0x2b8] sm:$0xff]  ;;  %v3509_v42 = vld [vmem:[%s9110_s26 + $0x108] sm:$0xff] }
 0x3d7   : > { %v3302_v53 = vadd.f32 %v3195_v15, %v3110_v45  ;;  %v3128_v45 = vld [vmem:[#allocation2 + $0x330] sm:$0xff] }
 0x3d8   : > { %3351 = vst.msk [vmem:[#allocation2 + $0x228] sm:$0xff] %vm1963_vm3, %v3287_v55 }
 0x3d9   : > { %3366 = vst.msk [vmem:[#allocation2 + $0x2a0] sm:$0xff] %vm1963_vm3, %v3302_v53  ;;  %v3169_v16 = vpop.xlane.xlu0 %3168 }
 0x3da   : > { %v3289_v24 = vadd.f32 %v3169_v16, %v3097_v0  ;;  %v3199_v31 = vpop.xlane.xlu1 %3198  ;;  %3627 = vperm.xlu1 %6101, %v3493_v30   ;;  %v3115_v0 = vld [vmem:[#allocation2 + $0x2c8] sm:$0xff]  ;;  %v3511_v30 = vld [vmem:[%s9110_s26 + $0x118] sm:$0xff] }
 0x3db   : > { %v3304_v43 = vadd.f32 %v3199_v31, %v3112_v25  ;;  %v3130_v25 = vld [vmem:[#allocation2 + $0x340] sm:$0xff] }
 0x3dc   : > { %3353 = vst.msk [vmem:[#allocation2 + $0x238] sm:$0xff] %vm1963_vm3, %v3289_v24 }
 0x3dd   : > { %3368 = vst.msk [vmem:[#allocation2 + $0x2b0] sm:$0xff] %vm1963_vm3, %v3304_v43  ;;  %v3173_v2 = vpop.xlane.xlu0 %3172 }
 0x3de   : > { %v3291_v39 = vadd.f32 %v3173_v2, %v3099_v34  ;;  %v3203_v10 = vpop.xlane.xlu1 %3202  ;;  %3637 = vperm.xlu1 %6101, %v3495_v21   ;;  %v3117_v34 = vld [vmem:[#allocation2 + $0x2d8] sm:$0xff]  ;;  %v3513_v21 = vld [vmem:[%s9110_s26 + $0x128] sm:$0xff] }
 0x3df   : > { %v3306_v27 = vadd.f32 %v3203_v10, %v3114_v12  ;;  %v3132_v12 = vld [vmem:[#allocation2 + $0x350] sm:$0xff] }
 0x3e0   : > { %3355 = vst.msk [vmem:[#allocation2 + $0x248] sm:$0xff] %vm1963_vm3, %v3291_v39 }
 0x3e1   : > { %3370 = vst.msk [vmem:[#allocation2 + $0x2c0] sm:$0xff] %vm1963_vm3, %v3306_v27  ;;  %v3177_v28 = vpop.xlane.xlu0 %3176 }
 0x3e2   : > { %v3293_v26 = vadd.f32 %v3177_v28, %v3101_v19  ;;  %v3207_v14 = vpop.xlane.xlu1 %3206  ;;  %3647 = vperm.xlu1 %6101, %v3497_v5   ;;  %v3119_v19 = vld [vmem:[#allocation2 + $0x2e8] sm:$0xff]  ;;  %v3515_v5 = vld [vmem:[%s9110_s26 + $0x138] sm:$0xff] }
 0x3e3   : > { %v3308_v11 = vadd.f32 %v3207_v14, %v3116_v62  ;;  %v3134_v62 = vld [vmem:[#allocation2 + $0x360] sm:$0xff] }
 0x3e4   : > { %3357 = vst.msk [vmem:[#allocation2 + $0x258] sm:$0xff] %vm1963_vm3, %v3293_v26 }
 0x3e5   : > { %3372 = vst.msk [vmem:[#allocation2 + $0x2d0] sm:$0xff] %vm1963_vm3, %v3308_v11  ;;  %v3181_v48 = vpop.xlane.xlu0 %3180 }
 0x3e6   : > { %v3295_v33 = vadd.f32 %v3181_v48, %v3103_v51  ;;  %v3211_v59 = vpop.xlane.xlu1 %3210  ;;  %3657 = vperm.xlu1 %6101, %v3499_v3   ;;  %v3121_v51 = vld [vmem:[#allocation2 + $0x2f8] sm:$0xff]  ;;  %v3517_v3 = vld [vmem:[%s9110_s26 + $0x148] sm:$0xff] }
 0x3e7   : > { %v3310_v32 = vadd.f32 %v3211_v59, %v3118_v20  ;;  %v3136_v20 = vld [vmem:[#allocation2 + $0x370] sm:$0xff] }
 0x3e8   : > { %3359 = vst.msk [vmem:[#allocation2 + $0x268] sm:$0xff] %vm1963_vm3, %v3295_v33 }
 0x3e9   : > { %3374 = vst.msk [vmem:[#allocation2 + $0x2e0] sm:$0xff] %vm1963_vm3, %v3310_v32  ;;  %v3185_v7 = vpop.xlane.xlu0 %3184 }
 0x3ea   : > { %v3297_v18 = vadd.f32 %v3185_v7, %v3105_v61  ;;  %v3215_v44 = vpop.xlane.xlu1 %3214  ;;  %3667 = vperm.xlu1 %6101, %v3501_v22   ;;  %v3123_v61 = vld [vmem:[#allocation2 + $0x308] sm:$0xff]  ;;  %v3519_v22 = vld [vmem:[%s9110_s26 + $0x158] sm:$0xff] }
 0x3eb   : > { %v3312_v13 = vadd.f32 %v3215_v44, %v3120_v50  ;;  %v3138_v50 = vld [vmem:[#allocation2 + $0x380] sm:$0xff] }
 0x3ec   : > { %3361 = vst.msk [vmem:[#allocation2 + $0x278] sm:$0xff] %vm1963_vm3, %v3297_v18 }
 0x3ed   : > { %3376 = vst.msk [vmem:[#allocation2 + $0x2f0] sm:$0xff] %vm1963_vm3, %v3312_v13  ;;  %v3189_v35 = vpop.xlane.xlu0 %3188 }
 0x3ee   : > { %v3299_v37 = vadd.f32 %v3189_v35, %v3107_v49  ;;  %v3219_v57 = vpop.xlane.xlu1 %3218  ;;  %3677 = vperm.xlu1 %6101, %v3503_v9   ;;  %v3125_v49 = vld [vmem:[#allocation2 + $0x318] sm:$0xff]  ;;  %v3521_v9 = vld [vmem:[%s9110_s26 + $0x168] sm:$0xff] }
 0x3ef   : > { %v3314_v23 = vadd.f32 %v3219_v57, %v3122_v36  ;;  %v3140_v36 = vld [vmem:[#allocation2 + $0x390] sm:$0xff] }
 0x3f0   : > { %3363 = vst.msk [vmem:[#allocation2 + $0x288] sm:$0xff] %vm1963_vm3, %v3299_v37 }
 0x3f1   : > { %3378 = vst.msk [vmem:[#allocation2 + $0x300] sm:$0xff] %vm1963_vm3, %v3314_v23  ;;  %v3193_v8 = vpop.xlane.xlu0 %3192 }
 0x3f2   : > { %v3301_v4 = vadd.f32 %v3193_v8, %v3109_v6  ;;  %v3223_v56 = vpop.xlane.xlu1 %3222  ;;  %3687 = vperm.xlu1 %6101, %v3505_v46   ;;  %v3127_v6 = vld [vmem:[#allocation2 + $0x328] sm:$0xff]  ;;  %v3523_v46 = vld [vmem:[%s9110_s26 + $0x178] sm:$0xff] }
 0x3f3   : > { %v3316_v1 = vadd.f32 %v3223_v56, %v3124_v29  ;;  %v3142_v29 = vld [vmem:[#allocation2 + $0x3a0] sm:$0xff] }
 0x3f4   : > { %3365 = vst.msk [vmem:[#allocation2 + $0x298] sm:$0xff] %vm1963_vm3, %v3301_v4 }
 0x3f5   : > { %3380 = vst.msk [vmem:[#allocation2 + $0x310] sm:$0xff] %vm1963_vm3, %v3316_v1  ;;  %v3197_v47 = vpop.xlane.xlu0 %3196 }
 0x3f6   : > { %v3303_v17 = vadd.f32 %v3197_v47, %v3111_v41  ;;  %v3227_v54 = vpop.xlane.xlu1 %3226  ;;  %3697 = vperm.xlu1 %6101, %v3507_v60   ;;  %v3129_v41 = vld [vmem:[#allocation2 + $0x338] sm:$0xff]  ;;  %v3525_v60 = vld [vmem:[%s9110_s26 + $0x188] sm:$0xff] }
 0x3f7   : > { %v3318_v63 = vadd.f32 %v3227_v54, %v3126_v52  ;;  %v3144_v52 = vld [vmem:[#allocation2 + $0x3b0] sm:$0xff] }
 0x3f8   : > { %3367 = vst.msk [vmem:[#allocation2 + $0x2a8] sm:$0xff] %vm1963_vm3, %v3303_v17 }
 0x3f9   : > { %3382 = vst.msk [vmem:[#allocation2 + $0x320] sm:$0xff] %vm1963_vm3, %v3318_v63  ;;  %v3201_v40 = vpop.xlane.xlu0 %3200 }
 0x3fa   : > { %v3305_v55 = vadd.f32 %v3201_v40, %v3113_v38  ;;  %v3231_v15 = vpop.xlane.xlu1 %3230  ;;  %3707 = vperm.xlu1 %6101, %v3509_v42   ;;  %v3131_v38 = vld [vmem:[#allocation2 + $0x348] sm:$0xff]  ;;  %v3527_v42 = vld [vmem:[%s9110_s26 + $0x198] sm:$0xff] }
 0x3fb   : > { %v3320_v53 = vadd.f32 %v3231_v15, %v3128_v45  ;;  %v3146_v45 = vld [vmem:[#allocation2 + $0x3c0] sm:$0xff] }
 0x3fc   : > { %3369 = vst.msk [vmem:[#allocation2 + $0x2b8] sm:$0xff] %vm1963_vm3, %v3305_v55 }
 0x3fd   : > { %3384 = vst.msk [vmem:[#allocation2 + $0x330] sm:$0xff] %vm1963_vm3, %v3320_v53  ;;  %v3205_v16 = vpop.xlane.xlu0 %3204 }
 0x3fe   : > { %v3307_v24 = vadd.f32 %v3205_v16, %v3115_v0  ;;  %v3235_v31 = vpop.xlane.xlu1 %3234  ;;  %3717 = vperm.xlu1 %6101, %v3511_v30   ;;  %v3133_v0 = vld [vmem:[#allocation2 + $0x358] sm:$0xff]  ;;  %v3529_v30 = vld [vmem:[%s9110_s26 + $0x1a8] sm:$0xff] }
 0x3ff   : > { %v3322_v43 = vadd.f32 %v3235_v31, %v3130_v25  ;;  %v3148_v25 = vld [vmem:[#allocation2 + $0x3d0] sm:$0xff] }
 0x400   : > { %3371 = vst.msk [vmem:[#allocation2 + $0x2c8] sm:$0xff] %vm1963_vm3, %v3307_v24 }
 0x401   : > { %3386 = vst.msk [vmem:[#allocation2 + $0x340] sm:$0xff] %vm1963_vm3, %v3322_v43  ;;  %v3209_v2 = vpop.xlane.xlu0 %3208 }
 0x402   : > { %v3309_v39 = vadd.f32 %v3209_v2, %v3117_v34  ;;  %v3239_v10 = vpop.xlane.xlu1 %3238  ;;  %3727 = vperm.xlu1 %6101, %v3513_v21   ;;  %v3135_v34 = vld [vmem:[#allocation2 + $0x368] sm:$0xff]  ;;  %v3531_v21 = vld [vmem:[%s9110_s26 + $0x1b8] sm:$0xff] }
 0x403   : > { %v3324_v27 = vadd.f32 %v3239_v10, %v3132_v12  ;;  %v3150_v12 = vld [vmem:[#allocation2 + $0x3e0] sm:$0xff] }
 0x404   : > { %3373 = vst.msk [vmem:[#allocation2 + $0x2d8] sm:$0xff] %vm1963_vm3, %v3309_v39 }
 0x405   : > { %3388 = vst.msk [vmem:[#allocation2 + $0x350] sm:$0xff] %vm1963_vm3, %v3324_v27  ;;  %v3213_v28 = vpop.xlane.xlu0 %3212 }
 0x406   : > { %v3311_v26 = vadd.f32 %v3213_v28, %v3119_v19  ;;  %v3243_v14 = vpop.xlane.xlu1 %3242  ;;  %3737 = vperm.xlu1 %6101, %v3515_v5   ;;  %v3137_v19 = vld [vmem:[#allocation2 + $0x378] sm:$0xff]  ;;  %v3533_v5 = vld [vmem:[%s9110_s26 + $0x1c8] sm:$0xff] }
 0x407   : > { %v3326_v11 = vadd.f32 %v3243_v14, %v3134_v62  ;;  %v3152_v62 = vld [vmem:[#allocation2 + $0x3f0] sm:$0xff] }
 0x408   : > { %3375 = vst.msk [vmem:[#allocation2 + $0x2e8] sm:$0xff] %vm1963_vm3, %v3311_v26 }
 0x409   : > { %3390 = vst.msk [vmem:[#allocation2 + $0x360] sm:$0xff] %vm1963_vm3, %v3326_v11  ;;  %v3217_v48 = vpop.xlane.xlu0 %3216 }
 0x40a   : > { %v3313_v33 = vadd.f32 %v3217_v48, %v3121_v51  ;;  %v3247_v59 = vpop.xlane.xlu1 %3246  ;;  %3747 = vperm.xlu1 %6101, %v3517_v3   ;;  %v3139_v51 = vld [vmem:[#allocation2 + $0x388] sm:$0xff]  ;;  %v3535_v3 = vld [vmem:[%s9110_s26 + $0x1d8] sm:$0xff] }
 0x40b   : > { %v3328_v32 = vadd.f32 %v3247_v59, %v3136_v20 }
 0x40c   : > { %3377 = vst.msk [vmem:[#allocation2 + $0x2f8] sm:$0xff] %vm1963_vm3, %v3313_v33 }
 0x40d   : > { %3392 = vst.msk [vmem:[#allocation2 + $0x370] sm:$0xff] %vm1963_vm3, %v3328_v32  ;;  %v3221_v7 = vpop.xlane.xlu0 %3220  ;;  %v3141_v32 = vld [vmem:[#allocation2 + $0x398] sm:$0xff] }
 0x40e   : > { %v3315_v18 = vadd.f32 %v3221_v7, %v3123_v61  ;;  %v3251_v44 = vpop.xlane.xlu1 %3250  ;;  %3757 = vperm.xlu1 %6101, %v3519_v22   ;;  %v3537_v61 = vld [vmem:[%s9110_s26 + $0x1e8] sm:$0xff] }
 0x40f   : > { %v3330_v13 = vadd.f32 %v3251_v44, %v3138_v50  ;;  %v3539_v44 = vld [vmem:[%s9110_s26 + $0x1f8] sm:$0xff] }
 0x410   : > { %3379 = vst.msk [vmem:[#allocation2 + $0x308] sm:$0xff] %vm1963_vm3, %v3315_v18  ;;  %v3143_v18 = vld [vmem:[#allocation2 + $0x3a8] sm:$0xff] }
 0x411   : > { %3394 = vst.msk [vmem:[#allocation2 + $0x380] sm:$0xff] %vm1963_vm3, %v3330_v13  ;;  %v3225_v35 = vpop.xlane.xlu0 %3224 }
 0x412   : > { %v3317_v37 = vadd.f32 %v3225_v35, %v3125_v49  ;;  %v3255_v57 = vpop.xlane.xlu1 %3254  ;;  %3767 = vperm.xlu1 %6101, %v3521_v9   ;;  %v3145_v49 = vld [vmem:[#allocation2 + $0x3b8] sm:$0xff]  ;;  %v3147_v35 = vld [vmem:[#allocation2 + $0x3c8] sm:$0xff] }
 0x413   : > { %v3332_v23 = vadd.f32 %v3255_v57, %v3140_v36 }
 0x414   : > { %3381 = vst.msk [vmem:[#allocation2 + $0x318] sm:$0xff] %vm1963_vm3, %v3317_v37 }
 0x415   : > { %3396 = vst.msk [vmem:[#allocation2 + $0x390] sm:$0xff] %vm1963_vm3, %v3332_v23  ;;  %v3229_v8 = vpop.xlane.xlu0 %3228  ;;  %v3149_v23 = vld [vmem:[#allocation2 + $0x3d8] sm:$0xff] }
 0x416   : > { %v3319_v4 = vadd.f32 %v3229_v8, %v3127_v6  ;;  %v3259_v56 = vpop.xlane.xlu1 %3258  ;;  %3777 = vperm.xlu1 %6101, %v3523_v46   ;;  %v3151_v8 = vld [vmem:[#allocation2 + $0x3e8] sm:$0xff] }
 0x417   : > { %v3334_v1 = vadd.f32 %v3259_v56, %v3142_v29  ;;  %v8276_v29 = vpop.f32.mrf.mxu0 }
 0x418   : > { %3383 = vst.msk [vmem:[#allocation2 + $0x328] sm:$0xff] %vm1963_vm3, %v3319_v4 }
 0x419   : > { %3398 = vst.msk [vmem:[#allocation2 + $0x3a0] sm:$0xff] %vm1963_vm3, %v3334_v1  ;;  %v3233_v47 = vpop.xlane.xlu0 %3232  ;;  %v3477_v1 = vld [vmem:[%s9110_s26 + $0x8] sm:$0xff] }
 0x41a   : > { %v3321_v17 = vadd.f32 %v3233_v47, %v3129_v41  ;;  %v3263_v54 = vpop.xlane.xlu1 %3262  ;;  %3787 = vperm.xlu1 %6101, %v3525_v60   ;;  %v8282_v41 = vpop.f32.mrf.mxu0  ;;  %v3480_v60 = vld [vmem:[%s9110_s26 + $0x20] sm:$0xff]  ;;  %v3482_v47 = vld [vmem:[%s9110_s26 + $0x30] sm:$0xff] }
 0x41b   : > { %v3336_v63 = vadd.f32 %v3263_v54, %v3144_v52  ;;  %v3484_v54 = vld [vmem:[%s9110_s26 + $0x40] sm:$0xff] }
 0x41c   : > { %3385 = vst.msk [vmem:[#allocation2 + $0x338] sm:$0xff] %vm1963_vm3, %v3321_v17  ;;  %v8288_v52 = vpop.f32.mrf.mxu0 }
 0x41d   : > { %3400 = vst.msk [vmem:[#allocation2 + $0x3b0] sm:$0xff] %vm1963_vm3, %v3336_v63  ;;  %v3237_v40 = vpop.xlane.xlu0 %3236 }
 0x41e   : > { %v3323_v55 = vadd.f32 %v3237_v40, %v3131_v38  ;;  %v3267_v15 = vpop.xlane.xlu1 %3266  ;;  %3797 = vperm.xlu1 %6101, %v3527_v42   ;;  %v8293_v17 = vpop.f32.mrf.mxu0  ;;  %v3486_v38 = vld [vmem:[%s9110_s26 + $0x50] sm:$0xff] }
 0x41f   : > { %v3338_v53 = vadd.f32 %v3267_v15, %v3146_v45  ;;  %v3488_v45 = vld [vmem:[%s9110_s26 + $0x60] sm:$0xff] }
 0x420   : > { %3387 = vst.msk [vmem:[#allocation2 + $0x348] sm:$0xff] %vm1963_vm3, %v3323_v55  ;;  %v8298_v63 = vpop.f32.mrf.mxu0  ;;  %v3490_v55 = vld [vmem:[%s9110_s26 + $0x70] sm:$0xff] }
 0x421   : > { %3402 = vst.msk [vmem:[#allocation2 + $0x3c0] sm:$0xff] %vm1963_vm3, %v3338_v53  ;;  %v3241_v16 = vpop.xlane.xlu0 %3240  ;;  %v3492_v53 = vld [vmem:[%s9110_s26 + $0x80] sm:$0xff] }
 0x422   : > { %v3325_v24 = vadd.f32 %v3241_v16, %v3133_v0  ;;  %v3271_v31 = vpop.xlane.xlu1 %3270  ;;  %3807 = vperm.xlu1 %6101, %v3529_v30   ;;  %v8303_v42 = vpop.f32.mrf.mxu0  ;;  %v3494_v30 = vld [vmem:[%s9110_s26 + $0x90] sm:$0xff]  ;;  %v3496_v16 = vld [vmem:[%s9110_s26 + $0xa0] sm:$0xff] }
 0x423   : > { %v3340_v43 = vadd.f32 %v3271_v31, %v3148_v25  ;;  %v3498_v31 = vld [vmem:[%s9110_s26 + $0xb0] sm:$0xff] }
 0x424   : > { %3389 = vst.msk [vmem:[#allocation2 + $0x358] sm:$0xff] %vm1963_vm3, %v3325_v24  ;;  %v8308_v40 = vpop.f32.mrf.mxu0 }
 0x425   : > { %3404 = vst.msk [vmem:[#allocation2 + $0x3d0] sm:$0xff] %vm1963_vm3, %v3340_v43  ;;  %v3245_v2 = vpop.xlane.xlu0 %3244 }
 0x426   : > { %v3327_v39 = vadd.f32 %v3245_v2, %v3135_v34  ;;  %v3275_v10 = vpop.xlane.xlu1 %3274  ;;  %3817 = vperm.xlu1 %6101, %v3531_v21   ;;  %v8313_v15 = vpop.f32.mrf.mxu0  ;;  %v3500_v34 = vld [vmem:[%s9110_s26 + $0xc0] sm:$0xff] }
 0x427   : > { %v3342_v27 = vadd.f32 %v3275_v10, %v3150_v12  ;;  %v3502_v12 = vld [vmem:[%s9110_s26 + $0xd0] sm:$0xff] }
 0x428   : > { %3391 = vst.msk [vmem:[#allocation2 + $0x368] sm:$0xff] %vm1963_vm3, %v3327_v39  ;;  %v8318_v0 = vpop.f32.mrf.mxu0  ;;  %v3504_v39 = vld [vmem:[%s9110_s26 + $0xe0] sm:$0xff] }
 0x429   : > { %3406 = vst.msk [vmem:[#allocation2 + $0x3e0] sm:$0xff] %vm1963_vm3, %v3342_v27  ;;  %v3249_v28 = vpop.xlane.xlu0 %3248  ;;  %v3506_v27 = vld [vmem:[%s9110_s26 + $0xf0] sm:$0xff] }
 0x42a   : > { %v3329_v26 = vadd.f32 %v3249_v28, %v3137_v19  ;;  %3827 = vperm.xlu1 %6101, %v3533_v5   ;;  %v3279_v14 = vpop.xlane.xlu1 %3278  ;;  %v8323_v25 = vpop.f32.mrf.mxu0  ;;  %v3508_v5 = vld [vmem:[%s9110_s26 + $0x100] sm:$0xff]  ;;  %v3510_v28 = vld [vmem:[%s9110_s26 + $0x110] sm:$0xff] }
 0x42b   : > { %v3344_v11 = vadd.f32 %v3279_v14, %v3152_v62  ;;  %v3512_v14 = vld [vmem:[%s9110_s26 + $0x120] sm:$0xff] }
 0x42c   : > { %3393 = vst.msk [vmem:[#allocation2 + $0x378] sm:$0xff] %vm1963_vm3, %v3329_v26  ;;  %v8328_v24 = vpop.f32.mrf.mxu0 }
 0x42d   : > { %3408 = vst.msk [vmem:[#allocation2 + $0x3f0] sm:$0xff] %vm1963_vm3, %v3344_v11  ;;  %v3253_v20 = vpop.xlane.xlu0 %3252 }
 0x42e   : > { %v3331_v48 = vadd.f32 %v3253_v20, %v3139_v51  ;;  %3837 = vperm.xlu1 %6101, %v3535_v3   ;;  %v2476_v33 = vpop.permute.xlu1 %2475  ;;  %v8333_v43 = vpop.f32.mrf.mxu0  ;;  %v3514_v3 = vld [vmem:[%s9110_s26 + $0x130] sm:$0xff] }
 0x42f   : > { %v3023_v59 = vadd.f32 %v8109_v58, %v2476_v33 }
 0x430   : > { %3395 = vst.msk [vmem:[#allocation2 + $0x388] sm:$0xff] %vm1963_vm3, %v3331_v48  ;;  %v8338_v21 = vpop.f32.mrf.mxu0  ;;  %v3516_v48 = vld [vmem:[%s9110_s26 + $0x140] sm:$0xff] }
 0x431   : > { %v3089_v22 = vmax.f32 %v3023_v59, 0.0  ;;  %v3257_v50 = vpop.xlane.xlu0 %3256 }
 0x432   : > { %v3333_v7 = vadd.f32 %v3257_v50, %v3141_v32  ;;  %3847 = vperm.xlu1 %6101, %v3537_v61   ;;  %v8343_v2 = vpop.f32.mrf.mxu0  ;;  %v8370_v51 = vpop.permute.xlu1 %3542  ;;  %v3518_v32 = vld [vmem:[%s9110_s26 + $0x150] sm:$0xff]  ;;  %v3520_v50 = vld [vmem:[%s9110_s26 + $0x160] sm:$0xff] }
 0x433   : > { %3280 = vadd.xlane.f32.xlu0 %v3089_v22 }
 0x434   : > { %3397 = vst.msk [vmem:[#allocation2 + $0x398] sm:$0xff] %vm1963_vm3, %v3333_v7  ;;  %v8348_v10 = vpop.f32.mrf.mxu0 }
 0x435   : > { %v3261_v58 = vpop.xlane.xlu0 %3260 }
 0x436   : > { %v3335_v13 = vadd.f32 %v3261_v58, %v3143_v18  ;;  %3857 = vperm.xlu1 %6101, %v3539_v44   ;;  %v8353_v19 = vpop.f32.mrf.mxu0  ;;  %v8382_v59 = vpop.permute.xlu1 %3552  ;;  %v3522_v18 = vld [vmem:[%s9110_s26 + $0x170] sm:$0xff] }
 0x438   : > { %3399 = vst.msk [vmem:[#allocation2 + $0x3a8] sm:$0xff] %vm1963_vm3, %v3335_v13  ;;  %v8358_v62 = vpop.f32.mrf.mxu0  ;;  %v3524_v13 = vld [vmem:[%s9110_s26 + $0x180] sm:$0xff] }
 0x439   : > { %v3265_v9 = vpop.xlane.xlu0 %3264 }
 0x43a   : > { %v3337_v36 = vadd.f32 %v3265_v9, %v3145_v49  ;;  %v8363_v26 = vpop.f32.mrf.mxu0  ;;  %v8389_v22 = vpop.permute.xlu1 %3557 }
 0x43c   : > { %3401 = vst.msk [vmem:[#allocation2 + $0x3b8] sm:$0xff] %vm1963_vm3, %v3337_v36  ;;  %v8368_v11 = vpop.f32.mrf.mxu0  ;;  %v3526_v36 = vld [vmem:[%s9110_s26 + $0x190] sm:$0xff] }
 0x43d   : > { %v3269_v37 = vpop.xlane.xlu0 %3268 }
 0x43e   : > { %v3339_v57 = vadd.f32 %v3269_v37, %v3147_v35  ;;  %v8375_v20 = vpop.f32.mrf.mxu0  ;;  %v8401_v58 = vpop.permute.xlu1 %3567  ;;  %v3528_v37 = vld [vmem:[%s9110_s26 + $0x1a0] sm:$0xff] }
 0x440   : > { %3403 = vst.msk [vmem:[#allocation2 + $0x3c8] sm:$0xff] %vm1963_vm3, %v3339_v57  ;;  %v8380_v33 = vpop.f32.mrf.mxu0 }
 0x441   : > { %v3273_v6 = vpop.xlane.xlu0 %3272 }
 0x442   : > { %v3341_v46 = vadd.f32 %v3273_v6, %v3149_v23  ;;  %v8387_v61 = vpop.f32.mrf.mxu0  ;;  %v8408_v9 = vpop.permute.xlu1 %3577  ;;  %v3530_v6 = vld [vmem:[%s9110_s26 + $0x1b0] sm:$0xff] }
 0x444   : > { %3405 = vst.msk [vmem:[#allocation2 + $0x3d8] sm:$0xff] %vm1963_vm3, %v3341_v46  ;;  %v8394_v7 = vpop.f32.mrf.mxu0 }
 0x445   : > { %v3277_v4 = vpop.xlane.xlu0 %3276 }
 0x446   : > { %v3343_v56 = vadd.f32 %v3277_v4, %v3151_v8  ;;  %v8399_v44 = vpop.f32.mrf.mxu0  ;;  %v8420_v23 = vpop.permute.xlu1 %3587  ;;  %v3532_v4 = vld [vmem:[%s9110_s26 + $0x1c0] sm:$0xff] }
 0x448   : > { %3407 = vst.msk [vmem:[#allocation2 + $0x3e8] sm:$0xff] %vm1963_vm3, %v3343_v56  ;;  %v8406_v49 = vpop.f32.mrf.mxu0 }
 0x449   : > { %3547 = vperm.xlu0 %6100, %v3477_v1   ;;  %v3534_v1 = vld [vmem:[%s9110_s26 + $0x1d0] sm:$0xff] }
 0x44a   : > { %v8413_v35 = vpop.f32.mrf.mxu0  ;;  %v8427_v8 = vpop.permute.xlu1 %3597 }
 0x44c   : > { %v8418_v57 = vpop.f32.mrf.mxu0 }
 0x44d   : > { %3562 = vperm.xlu0 %6100, %v3480_v60  }
 0x44e   : > { %v8425_v46 = vpop.f32.mrf.mxu0 }
 0x450   : > { %v8432_v56 = vpop.f32.mrf.mxu0 }
 0x451   : > { %3572 = vperm.xlu0 %6100, %v3482_v47   ;;  %v8439_v47 = vpop.permute.xlu1 %3607 }
 0x452   : > { %v8437_v60 = vpop.f32.mrf.mxu0 }
 0x455   : > { %3582 = vperm.xlu0 %6100, %v3484_v54   ;;  %v3153_v54 = vld [vmem:[#allocation2 + $0x3f8] sm:$0xff] }
 0x459   : > { %3592 = vperm.xlu0 %6100, %v3486_v38   ;;  %v3536_v38 = vld [vmem:[%s9110_s26 + $0x1e0] sm:$0xff] }
 0x45d   : > { %3602 = vperm.xlu0 %6100, %v3488_v45   ;;  %v8444_v45 = vpop.f32.mrf.mxu0 }
 0x461   : > { %3612 = vperm.xlu0 %6100, %v3490_v55  }
 0x465   : > { %3622 = vperm.xlu0 %6100, %v3492_v53  }
 0x469   : > { %3632 = vperm.xlu0 %6100, %v3494_v30   ;;  %v8446_v30 = vpop.permute.xlu1 %3617 }
 0x46d   : > { %3642 = vperm.xlu0 %6100, %v3496_v16   ;;  %v3538_v16 = vld [vmem:[%s9110_s26 + $0x1f0] sm:$0xff] }
 0x471   : > { %3652 = vperm.xlu0 %6100, %v3498_v31   ;;  %v8451_v31 = vpop.f32.mrf.mxu0 }
 0x475   : > { %3662 = vperm.xlu0 %6100, %v3500_v34   ;;  %v8454_v34 = vpop.f32.mrf.mxu0 }
 0x479   : > { %3672 = vperm.xlu0 %6100, %v3502_v12   ;;  %v8456_v12 = vpop.permute.xlu1 %3627 }
 0x47d   : > { %3682 = vperm.xlu0 %6100, %v3504_v39  }
 0x481   : > { %3692 = vperm.xlu0 %6100, %v3506_v27  }
 0x485   : > { %3702 = vperm.xlu0 %6100, %v3508_v5   ;;  %v8459_v5 = vpop.f32.mrf.mxu0 }
 0x489   : > { %3712 = vperm.xlu0 %6100, %v3510_v28  }
 0x48d   : > { %3722 = vperm.xlu0 %6100, %v3512_v14  }
 0x491   : > { %3732 = vperm.xlu0 %6100, %v3514_v3  }
 0x495   : > { %3742 = vperm.xlu0 %6100, %v3516_v48   ;;  %v8462_v48 = vpop.permute.xlu1 %3637 }
 0x499   : > { %3752 = vperm.xlu0 %6100, %v3518_v32   ;;  %v8464_v32 = vpop.f32.mrf.mxu0 }
 0x49d   : > { %3762 = vperm.xlu0 %6100, %v3520_v50  }
 0x4a1   : > { %3772 = vperm.xlu0 %6100, %v3522_v18  }
 0x4a5   : > { %3782 = vperm.xlu0 %6100, %v3524_v13  }
 0x4a9   : > { %3792 = vperm.xlu0 %6100, %v3526_v36   ;;  %v8467_v36 = vpop.f32.mrf.mxu0 }
 0x4ad   : > { %3802 = vperm.xlu0 %6100, %v3528_v37  }
 0x4b1   : > { %3812 = vperm.xlu0 %6100, %v3530_v6  }
 0x4b5   : > { %3822 = vperm.xlu0 %6100, %v3532_v4  }
 0x4b9   : > { %3832 = vperm.xlu0 %6100, %v3534_v1  }
 0x4bc   : > { %v3281_v55 = vpop.xlane.xlu0 %3280 }
 0x4bd   : > { %v3345_v53 = vadd.f32 %v3281_v55, %v3153_v54  ;;  %3842 = vperm.xlu0 %6100, %v3536_v38  }
 0x4bf   : > { %3409 = vst.msk [vmem:[#allocation2 + $0x3f8] sm:$0xff] %vm1963_vm3, %v3345_v53 }
 0x4c1   : > { %3852 = vperm.xlu0 %6100, %v3538_v16  }
 0x4c4   : > { %v3548_v39 = vpop.permute.xlu0 %3547 }
 0x4c5   : > { %v4157_v27 = vadd.f32 %v8293_v17, %v3548_v39  ;;  %v8469_v17 = vpop.permute.xlu1 %3647 }
 0x4c7   : > { %v4409_v28 = vmax.f32 %v4157_v27, 0.0 }
 0x4c8   : > { %v3563_v14 = vpop.permute.xlu0 %3562 }
 0x4c9   : > { %v4170_v3 = vadd.f32 %v8303_v42, %v3563_v14  ;;  %4538 = vadd.xlane.f32.xlu1 %v4409_v28  ;;  %v8472_v42 = vpop.f32.mrf.mxu0  ;;  %v8475_v55 = vpop.permute.xlu1 %3657 }
 0x4cb   : > { %v4412_v50 = vmax.f32 %v4170_v3, 0.0 }
 0x4cc   : > { %v3573_v18 = vpop.permute.xlu0 %3572 }
 0x4cd   : > { %v4178_v13 = vadd.f32 %v8298_v63, %v3573_v18  ;;  %4544 = vadd.xlane.f32.xlu1 %v4412_v50  ;;  %v8477_v63 = vpop.f32.mrf.mxu0  ;;  %v8484_v14 = vpop.permute.xlu1 %3667  ;;  %v4162_v18 = vadd.f32 %v8276_v29, %v8382_v59 }
 0x4cf   : > { %v4414_v37 = vmax.f32 %v4178_v13, 0.0  ;;  %v8482_v27 = vpop.f32.mrf.mxu0 }
 0x4d0   : > { %v3583_v6 = vpop.permute.xlu0 %3582 }
 0x4d1   : > { %v4186_v4 = vadd.f32 %v8323_v25, %v3583_v6  ;;  %4548 = vadd.xlane.f32.xlu1 %v4414_v37  ;;  %v4154_v25 = vadd.f32 %v8282_v41, %v8370_v51  ;;  %v8489_v13 = vpop.f32.mrf.mxu0  ;;  %v4410_v51 = vmax.f32 %v4162_v18, 0.0  ;;  %v4165_v6 = vadd.f32 %v8288_v52, %v8389_v22 }
 0x4d3   : > { %v4416_v1 = vmax.f32 %v4186_v4, 0.0  ;;  %v4408_v50 = vmax.f32 %v4154_v25, 0.0  ;;  %v8494_v4 = vpop.permute.xlu1 %3677  ;;  %v4411_v59 = vmax.f32 %v4165_v6, 0.0  ;;  %v4181_v25 = vadd.f32 %v8308_v40, %v8408_v9 }
 0x4d4   : > { %v3593_v54 = vpop.permute.xlu0 %3592 }
 0x4d5   : > { %v4194_v38 = vadd.f32 %v8318_v0, %v3593_v54  ;;  %4552 = vadd.xlane.f32.xlu1 %v4416_v1 }
 0x4d7   : > { %v4418_v53 = vmax.f32 %v4194_v38, 0.0  ;;  %v4173_v38 = vadd.f32 %v8313_v15, %v8401_v58  ;;  %v4415_v58 = vmax.f32 %v4181_v25, 0.0 }
 0x4d8   : > { %v3603_v16 = vpop.permute.xlu0 %3602 }
 0x4d9   : > { %v4202_v39 = vadd.f32 %v8343_v2, %v3603_v16  ;;  %4556 = vadd.xlane.f32.xlu1 %v4418_v53  ;;  %v8503_v16 = vpop.permute.xlu1 %3687 }
 0x4db   : > { %v4420_v28 = vmax.f32 %v4202_v39, 0.0  ;;  %v4413_v39 = vmax.f32 %v4173_v38, 0.0 }
 0x4dc   : > { %v3613_v3 = vpop.permute.xlu0 %3612 }
 0x4dd   : > { %v4210_v0 = vadd.f32 %v8338_v21, %v3613_v3  ;;  %4560 = vadd.xlane.f32.xlu1 %v4420_v28  ;;  %v8496_v21 = vpop.f32.mrf.mxu0 }
 0x4df   : > { %v4422_v2 = vmax.f32 %v4210_v0, 0.0  ;;  %v4189_v0 = vadd.f32 %v8333_v43, %v8420_v23 }
 0x4e0   : > { %4536 = vadd.xlane.f32.xlu0 %v4408_v50  ;;  %v3623_v37 = vpop.permute.xlu0 %3622  ;;  %v8513_v50 = vpop.permute.xlu1 %3697 }
 0x4e1   : > { %v4218_v41 = vadd.f32 %v8363_v26, %v3623_v37  ;;  %4564 = vadd.xlane.f32.xlu1 %v4422_v2  ;;  %v8501_v26 = vpop.f32.mrf.mxu0  ;;  %v4417_v9 = vmax.f32 %v4189_v0, 0.0  ;;  %v4197_v37 = vadd.f32 %v8328_v24, %v8427_v8  ;;  %v4237_v0 = vadd.f32 %v8399_v44, %v8469_v17 }
 0x4e3   : > { %v4424_v1 = vmax.f32 %v4218_v41, 0.0  ;;  %v4419_v6 = vmax.f32 %v4197_v37, 0.0 }
 0x4e4   : > { %4540 = vadd.xlane.f32.xlu0 %v4410_v51  ;;  %v3633_v54 = vpop.permute.xlu0 %3632  ;;  %v8522_v51 = vpop.permute.xlu1 %3707 }
 0x4e5   : > { %v4226_v29 = vadd.f32 %v8358_v62, %v3633_v54  ;;  %4568 = vadd.xlane.f32.xlu1 %v4424_v1  ;;  %v8508_v62 = vpop.f32.mrf.mxu0  ;;  %v4205_v1 = vadd.f32 %v8353_v19, %v8439_v47 }
 0x4e7   : > { %v4426_v53 = vmax.f32 %v4226_v29, 0.0  ;;  %v4421_v8 = vmax.f32 %v4205_v1, 0.0 }
 0x4e8   : > { %4542 = vadd.xlane.f32.xlu0 %v4411_v59  ;;  %v3643_v52 = vpop.permute.xlu0 %3642  ;;  %v4213_v59 = vadd.f32 %v8348_v10, %v8446_v30  ;;  %v8532_v38 = vpop.permute.xlu1 %3717 }
 0x4e9   : > { %v4234_v22 = vadd.f32 %v8387_v61, %v3643_v52  ;;  %4572 = vadd.xlane.f32.xlu1 %v4426_v53  ;;  %v8515_v61 = vpop.f32.mrf.mxu0 }
 0x4ea   : > { %v4423_v47 = vmax.f32 %v4213_v59, 0.0  ;;  %v4269_v59 = vadd.f32 %v8451_v31, %v8503_v16 }
 0x4eb   : > { %v4428_v28 = vmax.f32 %v4234_v22, 0.0  ;;  %v4221_v22 = vadd.f32 %v8375_v20, %v8456_v12 }
 0x4ec   : > { %4546 = vadd.xlane.f32.xlu0 %v4413_v39  ;;  %v3653_v3 = vpop.permute.xlu0 %3652  ;;  %v8541_v25 = vpop.permute.xlu1 %3727 }
 0x4ed   : > { %v4242_v15 = vadd.f32 %v8380_v33, %v3653_v3  ;;  %4576 = vadd.xlane.f32.xlu1 %v4428_v28  ;;  %v8520_v33 = vpop.f32.mrf.mxu0  ;;  %v4425_v28 = vmax.f32 %v4221_v22, 0.0  ;;  %v4229_v3 = vadd.f32 %v8368_v11, %v8462_v48  ;;  %v4429_v48 = vmax.f32 %v4237_v0, 0.0 }
 0x4ef   : > { %v4430_v18 = vmax.f32 %v4242_v15, 0.0  ;;  %v4427_v12 = vmax.f32 %v4229_v3, 0.0 }
 0x4f0   : > { %4550 = vadd.xlane.f32.xlu0 %v4415_v58  ;;  %v3663_v2 = vpop.permute.xlu0 %3662 }
 0x4f1   : > { %v4250_v40 = vadd.f32 %v8413_v35, %v3663_v2  ;;  %4580 = vadd.xlane.f32.xlu1 %v4430_v18  ;;  %v8527_v35 = vpop.f32.mrf.mxu0  ;;  %v8551_v18 = vpop.permute.xlu1 %3737 }
 0x4f3   : > { %v4432_v41 = vmax.f32 %v4250_v40, 0.0 }
 0x4f4   : > { %4554 = vadd.xlane.f32.xlu0 %v4417_v9  ;;  %v3673_v43 = vpop.permute.xlu0 %3672  ;;  %v4245_v9 = vadd.f32 %v8394_v7, %v8475_v55 }
 0x4f5   : > { %v4258_v23 = vadd.f32 %v8406_v49, %v3673_v43  ;;  %4584 = vadd.xlane.f32.xlu1 %v4432_v41  ;;  %v8534_v49 = vpop.f32.mrf.mxu0  ;;  %v8558_v41 = vpop.permute.xlu1 %3747 }
 0x4f6   : > { %v4431_v43 = vmax.f32 %v4245_v9, 0.0 }
 0x4f7   : > { %v4434_v54 = vmax.f32 %v4258_v23, 0.0  ;;  %v4253_v23 = vadd.f32 %v8425_v46, %v8484_v14 }
 0x4f8   : > { %4558 = vadd.xlane.f32.xlu0 %v4419_v6  ;;  %v3683_v29 = vpop.permute.xlu0 %3682 }
 0x4f9   : > { %v4266_v24 = vadd.f32 %v8437_v60, %v3683_v29  ;;  %4588 = vadd.xlane.f32.xlu1 %v4434_v54  ;;  %v8539_v60 = vpop.f32.mrf.mxu0  ;;  %v4433_v55 = vmax.f32 %v4253_v23, 0.0  ;;  %v4261_v54 = vadd.f32 %v8418_v57, %v8494_v4  ;;  %v8568_v29 = vpop.permute.xlu1 %3757  ;;  %v4437_v4 = vmax.f32 %v4269_v59, 0.0 }
 0x4fb   : > { %v4436_v53 = vmax.f32 %v4266_v24, 0.0  ;;  %v4435_v14 = vmax.f32 %v4261_v54, 0.0 }
 0x4fc   : > { %4562 = vadd.xlane.f32.xlu0 %v4421_v8  ;;  %v3693_v52 = vpop.permute.xlu0 %3692 }
 0x4fd   : > { %v4274_v19 = vadd.f32 %v8432_v56, %v3693_v52  ;;  %4592 = vadd.xlane.f32.xlu1 %v4436_v53  ;;  %v8546_v56 = vpop.f32.mrf.mxu0  ;;  %v8573_v52 = vpop.permute.xlu1 %3767 }
 0x4ff   : > { %v4438_v39 = vmax.f32 %v4274_v19, 0.0 }
 0x500   : > { %4566 = vadd.xlane.f32.xlu0 %v4423_v47  ;;  %v3703_v10 = vpop.permute.xlu0 %3702  ;;  %v4277_v47 = vadd.f32 %v8444_v45, %v8513_v50  ;;  %v4293_v50 = vadd.f32 %v8464_v32, %v8532_v38  ;;  %v4309_v32 = vadd.f32 %v8482_v27, %v8551_v18  ;;  %v4325_v18 = vadd.f32 %v8508_v62, %v8568_v29 }
 0x501   : > { %v4282_v30 = vadd.f32 %v8459_v5, %v3703_v10  ;;  %4596 = vadd.xlane.f32.xlu1 %v4438_v39  ;;  %v4345_v5 = vpop.f32.mrf.mxu0  ;;  %v4285_v10 = vadd.f32 %v8467_v36, %v8522_v51  ;;  %v4301_v51 = vadd.f32 %v8489_v13, %v8541_v25  ;;  %v4317_v13 = vadd.f32 %v8515_v61, %v8558_v41 }
 0x502   : > { %v4439_v16 = vmax.f32 %v4277_v47, 0.0  ;;  %v4443_v36 = vmax.f32 %v4293_v50, 0.0  ;;  %v4333_v61 = vadd.f32 %v8539_v60, %v8573_v52 }
 0x503   : > { %v4440_v15 = vmax.f32 %v4282_v30, 0.0  ;;  %v8556_v37 = vpop.f32.mrf.mxu0  ;;  %v3778_v30 = vpop.permute.xlu1 %3777  ;;  %v4441_v45 = vmax.f32 %v4285_v10, 0.0  ;;  %v4449_v27 = vmax.f32 %v4317_v13, 0.0 }
 0x504   : > { %4570 = vadd.xlane.f32.xlu0 %v4425_v28  ;;  %v3713_v58 = vpop.permute.xlu0 %3712  ;;  %v4341_v62 = vadd.f32 %v8534_v49, %v3778_v30 }
 0x505   : > { %v4290_v20 = vadd.f32 %v8454_v34, %v3713_v58  ;;  %4600 = vadd.xlane.f32.xlu1 %v4440_v15 }
 0x507   : > { %v4442_v2 = vmax.f32 %v4290_v20, 0.0 }
 0x508   : > { %4574 = vadd.xlane.f32.xlu0 %v4427_v12  ;;  %v3723_v40 = vpop.permute.xlu0 %3722 }
 0x509   : > { %v4298_v11 = vadd.f32 %v8477_v63, %v3723_v40  ;;  %4604 = vadd.xlane.f32.xlu1 %v4442_v2  ;;  %v8563_v63 = vpop.f32.mrf.mxu0 }
 0x50b   : > { %v4444_v34 = vmax.f32 %v4298_v11, 0.0 }
 0x50c   : > { %4578 = vadd.xlane.f32.xlu0 %v4429_v48  ;;  %v3733_v44 = vpop.permute.xlu0 %3732  ;;  %v4445_v48 = vmax.f32 %v4301_v51, 0.0  ;;  %v4478_v51 = vld [vmem:[#allocation2 + $0x430] sm:$0xff] }
 0x50d   : > { %v4306_v17 = vadd.f32 %v8472_v42, %v3733_v44  ;;  %4608 = vadd.xlane.f32.xlu1 %v4444_v34  ;;  %v6000_v42 = vpop.f32.mrf.mxu0 }
 0x50f   : > { %v4446_v6 = vmax.f32 %v4306_v17, 0.0  ;;  %v4361_v53 = vpop.f32.mrf.mxu0  ;;  %v4447_v17 = vmax.f32 %v4309_v32, 0.0 }
 0x510   : > { %4582 = vadd.xlane.f32.xlu0 %v4431_v43  ;;  %v3743_v1 = vpop.permute.xlu0 %3742 }
 0x511   : > { %v4314_v7 = vadd.f32 %v8501_v26, %v3743_v1  ;;  %4612 = vadd.xlane.f32.xlu1 %v4446_v6  ;;  %v8578_v22 = vpop.f32.mrf.mxu0 }
 0x513   : > { %v4448_v24 = vmax.f32 %v4314_v7, 0.0  ;;  %v8583_v28 = vpop.f32.mrf.mxu0 }
 0x514   : > { %4586 = vadd.xlane.f32.xlu0 %v4433_v55  ;;  %v3753_v8 = vpop.permute.xlu0 %3752 }
 0x515   : > { %v4322_v46 = vadd.f32 %v8496_v21, %v3753_v8  ;;  %4616 = vadd.xlane.f32.xlu1 %v4448_v24  ;;  %v6004_v58 = vpop.f32.mrf.mxu0  ;;  %v4451_v24 = vmax.f32 %v4325_v18, 0.0 }
 0x517   : > { %v4450_v26 = vmax.f32 %v4322_v46, 0.0  ;;  %v4377_v2 = vpop.f32.mrf.mxu0 }
 0x518   : > { %4590 = vadd.xlane.f32.xlu0 %v4435_v14  ;;  %v3763_v19 = vpop.permute.xlu0 %3762 }
 0x519   : > { %v4330_v57 = vadd.f32 %v8527_v35, %v3763_v19  ;;  %4620 = vadd.xlane.f32.xlu1 %v4450_v26  ;;  %v8592_v9 = vpop.f32.mrf.mxu0 }
 0x51b   : > { %v4452_v21 = vmax.f32 %v4330_v57, 0.0  ;;  %v4380_v25 = vpop.f32.mrf.mxu0 }
 0x51c   : > { %4594 = vadd.xlane.f32.xlu0 %v4437_v4  ;;  %v3773_v39 = vpop.permute.xlu0 %3772  ;;  %v4455_v4 = vmax.f32 %v4341_v62, 0.0  ;;  %v4477_v62 = vld [vmem:[#allocation2 + $0x428] sm:$0xff] }
 0x51d   : > { %v4338_v31 = vadd.f32 %v8520_v33, %v3773_v39  ;;  %4624 = vadd.xlane.f32.xlu1 %v4452_v21  ;;  %v3788_v33 = vpop.permute.xlu1 %3787  ;;  %v6008_v55 = vpop.f32.mrf.mxu0 }
 0x51e   : > { %v4349_v47 = vadd.f32 %v8563_v63, %v3788_v33 }
 0x51f   : > { %v4454_v35 = vmax.f32 %v4338_v31, 0.0  ;;  %v4393_v46 = vpop.f32.mrf.mxu0 }
 0x520   : > { %4598 = vadd.xlane.f32.xlu0 %v4439_v16  ;;  %v3783_v3 = vpop.permute.xlu0 %3782  ;;  %v4457_v52 = vmax.f32 %v4349_v47, 0.0  ;;  %v4479_v47 = vld [vmem:[#allocation2 + $0x438] sm:$0xff] }
 0x521   : > { %v4346_v15 = vadd.f32 %v4345_v5, %v3783_v3  ;;  %4628 = vadd.xlane.f32.xlu1 %v4454_v35  ;;  %v3798_v38 = vpop.permute.xlu1 %3797 }
 0x522   : > { %v4357_v21 = vadd.f32 %v8556_v37, %v3798_v38 }
 0x523   : > { %v4456_v20 = vmax.f32 %v4346_v15, 0.0  ;;  %v6009_v15 = vpop.f32.mrf.mxu0 }
 0x524   : > { %4602 = vadd.xlane.f32.xlu0 %v4441_v45  ;;  %v3793_v12 = vpop.permute.xlu0 %3792  ;;  %v4459_v31 = vmax.f32 %v4357_v21, 0.0  ;;  %v4473_v45 = vld [vmem:[#allocation2 + $0x408] sm:$0xff] }
 0x525   : > { %v4354_v0 = vadd.f32 %v8546_v56, %v3793_v12  ;;  %4632 = vadd.xlane.f32.xlu1 %v4456_v20  ;;  %v3808_v23 = vpop.permute.xlu1 %3807  ;;  %v4396_v20 = vpop.f32.mrf.mxu0 }
 0x526   : > { %v4365_v49 = vadd.f32 %v8583_v28, %v3808_v23  ;;  %v4476_v28 = vld [vmem:[#allocation2 + $0x420] sm:$0xff]  ;;  %v4486_v23 = vld [vmem:[#allocation2 + $0x470] sm:$0xff] }
 0x527   : > { %v4458_v40 = vmax.f32 %v4354_v0, 0.0 }
 0x528   : > { %4606 = vadd.xlane.f32.xlu0 %v4443_v36  ;;  %v3803_v5 = vpop.permute.xlu0 %3802  ;;  %v4461_v10 = vmax.f32 %v4365_v49, 0.0  ;;  %v4481_v49 = vld [vmem:[#allocation2 + $0x448] sm:$0xff] }
 0x529   : > { %v4362_v11 = vadd.f32 %v4361_v53, %v3803_v5  ;;  %4636 = vadd.xlane.f32.xlu1 %v4458_v40  ;;  %v3818_v41 = vpop.permute.xlu1 %3817  ;;  %v4453_v53 = vmax.f32 %v4333_v61, 0.0 }
 0x52a   : > { %v4373_v30 = vadd.f32 %v8578_v22, %v3818_v41  ;;  %v4475_v41 = vld [vmem:[#allocation2 + $0x418] sm:$0xff] }
 0x52b   : > { %v4460_v34 = vmax.f32 %v4362_v11, 0.0 }
 0x52c   : > { %4610 = vadd.xlane.f32.xlu0 %v4445_v48  ;;  %v3813_v56 = vpop.permute.xlu0 %3812  ;;  %v4463_v35 = vmax.f32 %v4373_v30, 0.0  ;;  %v4480_v48 = vld [vmem:[#allocation2 + $0x440] sm:$0xff] }
 0x52d   : > { %v4370_v44 = vadd.f32 %v6000_v42, %v3813_v56  ;;  %4640 = vadd.xlane.f32.xlu1 %v4460_v34  ;;  %v3828_v26 = vpop.permute.xlu1 %3827  ;;  %v4482_v34 = vld [vmem:[#allocation2 + $0x450] sm:$0xff] }
 0x52e   : > { %v4381_v3 = vadd.f32 %v4380_v25, %v3828_v26 }
 0x52f   : > { %v4462_v43 = vmax.f32 %v4370_v44, 0.0 }
 0x530   : > { %4614 = vadd.xlane.f32.xlu0 %v4447_v17  ;;  %v3823_v6 = vpop.permute.xlu0 %3822  ;;  %v4465_v50 = vmax.f32 %v4381_v3, 0.0  ;;  %v4484_v17 = vld [vmem:[#allocation2 + $0x460] sm:$0xff] }
 0x531   : > { %v4378_v1 = vadd.f32 %v4377_v2, %v3823_v6  ;;  %4644 = vadd.xlane.f32.xlu1 %v4462_v43  ;;  %v3838_v39 = vpop.permute.xlu1 %3837  ;;  %v4472_v43 = vld [vmem:[#allocation2 + $0x400] sm:$0xff] }
 0x532   : > { %v4389_v37 = vadd.f32 %v8592_v9, %v3838_v39 }
 0x533   : > { %v4464_v7 = vmax.f32 %v4378_v1, 0.0 }
 0x534   : > { %4618 = vadd.xlane.f32.xlu0 %v4449_v27  ;;  %v3833_v54 = vpop.permute.xlu0 %3832  ;;  %v4467_v12 = vmax.f32 %v4389_v37, 0.0 }
 0x535   : > { %v4386_v42 = vadd.f32 %v6004_v58, %v3833_v54  ;;  %4648 = vadd.xlane.f32.xlu1 %v4464_v7  ;;  %v3848_v16 = vpop.permute.xlu1 %3847  ;;  %v4474_v7 = vld [vmem:[#allocation2 + $0x410] sm:$0xff] }
 0x536   : > { %v4397_v0 = vadd.f32 %v4396_v20, %v3848_v16  ;;  %v4496_v16 = vld [vmem:[#allocation2 + $0x4c0] sm:$0xff]  ;;  %v4485_v20 = vld [vmem:[#allocation2 + $0x468] sm:$0xff] }
 0x537   : > { %v4466_v8 = vmax.f32 %v4386_v42, 0.0 }
 0x538   : > { %4622 = vadd.xlane.f32.xlu0 %v4451_v24  ;;  %v3843_v14 = vpop.permute.xlu0 %3842  ;;  %v4469_v2 = vmax.f32 %v4397_v0, 0.0 }
 0x539   : > { %v4394_v59 = vadd.f32 %v4393_v46, %v3843_v14  ;;  %4652 = vadd.xlane.f32.xlu1 %v4466_v8  ;;  %v3858_v63 = vpop.permute.xlu1 %3857  ;;  %v4490_v8 = vld [vmem:[#allocation2 + $0x490] sm:$0xff] }
 0x53a   : > { %v4405_v40 = vadd.f32 %v6009_v15, %v3858_v63  ;;  %v4483_v63 = vld [vmem:[#allocation2 + $0x458] sm:$0xff]  ;;  %v4498_v15 = vld [vmem:[#allocation2 + $0x4d0] sm:$0xff] }
 0x53b   : > { %v4468_v29 = vmax.f32 %v4394_v59, 0.0 }
 0x53c   : > { %4626 = vadd.xlane.f32.xlu0 %v4453_v53  ;;  %v3853_v19 = vpop.permute.xlu0 %3852  ;;  %v4471_v32 = vmax.f32 %v4405_v40, 0.0 }
 0x53d   : > { %v4402_v57 = vadd.f32 %v6008_v55, %v3853_v19  ;;  %4656 = vadd.xlane.f32.xlu1 %v4468_v29  ;;  %v4488_v55 = vld [vmem:[#allocation2 + $0x480] sm:$0xff] }
 0x53e   : > { %v4492_v29 = vld [vmem:[#allocation2 + $0x4a0] sm:$0xff] }
 0x53f   : > { %v4470_v60 = vmax.f32 %v4402_v57, 0.0 }
 0x540   : > { %4630 = vadd.xlane.f32.xlu0 %v4455_v4 }
 0x541   : > { %4660 = vadd.xlane.f32.xlu1 %v4470_v60  ;;  %v4494_v60 = vld [vmem:[#allocation2 + $0x4b0] sm:$0xff] }
 0x544   : > { %4634 = vadd.xlane.f32.xlu0 %v4457_v52 }
 0x548   : > { %4638 = vadd.xlane.f32.xlu0 %v4459_v31 }
 0x54c   : > { %4642 = vadd.xlane.f32.xlu0 %v4461_v10 }
 0x550   : > { %4646 = vadd.xlane.f32.xlu0 %v4463_v35 }
 0x552   : > { %v4539_v58 = vpop.xlane.xlu1 %4538 }
 0x553   : > { %v4665_v33 = vadd.f32 %v4539_v58, %v4473_v45 }
 0x554   : > { %4650 = vadd.xlane.f32.xlu0 %v4465_v50 }
 0x555   : > { %4729 = vst.msk [vmem:[#allocation2 + $0x408] sm:$0xff] %vm1963_vm3, %v4665_v33  ;;  %v4500_v33 = vld [vmem:[#allocation2 + $0x4e0] sm:$0xff] }
 0x556   : > { %v4545_v22 = vpop.xlane.xlu1 %4544 }
 0x557   : > { %v4668_v36 = vadd.f32 %v4545_v22, %v4476_v28 }
 0x558   : > { %4654 = vadd.xlane.f32.xlu0 %v4467_v12 }
 0x559   : > { %4732 = vst.msk [vmem:[#allocation2 + $0x420] sm:$0xff] %vm1963_vm3, %v4668_v36  ;;  %v4487_v36 = vld [vmem:[#allocation2 + $0x478] sm:$0xff] }
 0x55a   : > { %v4549_v5 = vpop.xlane.xlu1 %4548 }
 0x55b   : > { %v4670_v11 = vadd.f32 %v4549_v5, %v4478_v51  ;;  %v4502_v51 = vld [vmem:[#allocation2 + $0x4f0] sm:$0xff] }
 0x55c   : > { %4658 = vadd.xlane.f32.xlu0 %v4469_v2 }
 0x55d   : > { %4734 = vst.msk [vmem:[#allocation2 + $0x430] sm:$0xff] %vm1963_vm3, %v4670_v11 }
 0x55e   : > { %v4553_v38 = vpop.xlane.xlu1 %4552 }
 0x55f   : > { %v4672_v9 = vadd.f32 %v4553_v38, %v4480_v48  ;;  %v4489_v48 = vld [vmem:[#allocation2 + $0x488] sm:$0xff] }
 0x560   : > { %4662 = vadd.xlane.f32.xlu0 %v4471_v32  ;;  %v4504_v32 = vld [vmem:[#allocation2 + $0x500] sm:$0xff] }
 0x561   : > { %4736 = vst.msk [vmem:[#allocation2 + $0x440] sm:$0xff] %vm1963_vm3, %v4672_v9 }
 0x562   : > { %v4557_v56 = vpop.xlane.xlu1 %4556 }
 0x563   : > { %v4674_v44 = vadd.f32 %v4557_v56, %v4482_v34 }
 0x565   : > { %4738 = vst.msk [vmem:[#allocation2 + $0x450] sm:$0xff] %vm1963_vm3, %v4674_v44  ;;  %v4491_v44 = vld [vmem:[#allocation2 + $0x498] sm:$0xff] }
 0x566   : > { %v4561_v13 = vpop.xlane.xlu1 %4560 }
 0x567   : > { %v4676_v25 = vadd.f32 %v4561_v13, %v4484_v17  ;;  %v4506_v17 = vld [vmem:[#allocation2 + $0x510] sm:$0xff] }
 0x569   : > { %4740 = vst.msk [vmem:[#allocation2 + $0x460] sm:$0xff] %vm1963_vm3, %v4676_v25  ;;  %v4537_v6 = vpop.xlane.xlu0 %4536 }
 0x56a   : > { %v4664_v1 = vadd.f32 %v4537_v6, %v4472_v43  ;;  %v4565_v27 = vpop.xlane.xlu1 %4564  ;;  %v4493_v6 = vld [vmem:[#allocation2 + $0x4a8] sm:$0xff] }
 0x56b   : > { %v4678_v18 = vadd.f32 %v4565_v27, %v4486_v23 }
 0x56c   : > { %4728 = vst.msk [vmem:[#allocation2 + $0x400] sm:$0xff] %vm1963_vm3, %v4664_v1  ;;  %v4508_v1 = vld [vmem:[#allocation2 + $0x520] sm:$0xff] }
 0x56d   : > { %4742 = vst.msk [vmem:[#allocation2 + $0x470] sm:$0xff] %vm1963_vm3, %v4678_v18  ;;  %v4541_v54 = vpop.xlane.xlu0 %4540 }
 0x56e   : > { %v4666_v42 = vadd.f32 %v4541_v54, %v4474_v7  ;;  %v4569_v24 = vpop.xlane.xlu1 %4568  ;;  %v4495_v54 = vld [vmem:[#allocation2 + $0x4b8] sm:$0xff] }
 0x56f   : > { %v4680_v61 = vadd.f32 %v4569_v24, %v4488_v55 }
 0x570   : > { %4730 = vst.msk [vmem:[#allocation2 + $0x410] sm:$0xff] %vm1963_vm3, %v4666_v42  ;;  %v4510_v42 = vld [vmem:[#allocation2 + $0x530] sm:$0xff] }
 0x571   : > { %4744 = vst.msk [vmem:[#allocation2 + $0x480] sm:$0xff] %vm1963_vm3, %v4680_v61  ;;  %v4543_v46 = vpop.xlane.xlu0 %4542 }
 0x572   : > { %v4667_v14 = vadd.f32 %v4543_v46, %v4475_v41  ;;  %v4573_v59 = vpop.xlane.xlu1 %4572  ;;  %v4497_v46 = vld [vmem:[#allocation2 + $0x4c8] sm:$0xff] }
 0x573   : > { %v4682_v53 = vadd.f32 %v4573_v59, %v4490_v8 }
 0x574   : > { %4731 = vst.msk [vmem:[#allocation2 + $0x418] sm:$0xff] %vm1963_vm3, %v4667_v14  ;;  %v4512_v14 = vld [vmem:[#allocation2 + $0x540] sm:$0xff] }
 0x575   : > { %4746 = vst.msk [vmem:[#allocation2 + $0x490] sm:$0xff] %vm1963_vm3, %v4682_v53  ;;  %v4547_v26 = vpop.xlane.xlu0 %4546 }
 0x576   : > { %v4669_v19 = vadd.f32 %v4547_v26, %v4477_v62  ;;  %v4577_v57 = vpop.xlane.xlu1 %4576  ;;  %v4499_v26 = vld [vmem:[#allocation2 + $0x4d8] sm:$0xff] }
 0x577   : > { %v4684_v4 = vadd.f32 %v4577_v57, %v4492_v29 }
 0x578   : > { %4733 = vst.msk [vmem:[#allocation2 + $0x428] sm:$0xff] %vm1963_vm3, %v4669_v19  ;;  %v4514_v19 = vld [vmem:[#allocation2 + $0x550] sm:$0xff] }
 0x579   : > { %4748 = vst.msk [vmem:[#allocation2 + $0x4a0] sm:$0xff] %vm1963_vm3, %v4684_v4  ;;  %v4551_v52 = vpop.xlane.xlu0 %4550 }
 0x57a   : > { %v4671_v21 = vadd.f32 %v4551_v52, %v4479_v47  ;;  %v4581_v39 = vpop.xlane.xlu1 %4580  ;;  %v4501_v52 = vld [vmem:[#allocation2 + $0x4e8] sm:$0xff] }
 0x57b   : > { %v4686_v31 = vadd.f32 %v4581_v39, %v4494_v60 }
 0x57c   : > { %4735 = vst.msk [vmem:[#allocation2 + $0x438] sm:$0xff] %vm1963_vm3, %v4671_v21  ;;  %v4516_v21 = vld [vmem:[#allocation2 + $0x560] sm:$0xff] }
 0x57d   : > { %4750 = vst.msk [vmem:[#allocation2 + $0x4b0] sm:$0xff] %vm1963_vm3, %v4686_v31  ;;  %v4555_v10 = vpop.xlane.xlu0 %4554 }
 0x57e   : > { %v4673_v30 = vadd.f32 %v4555_v10, %v4481_v49  ;;  %v4585_v35 = vpop.xlane.xlu1 %4584  ;;  %v4503_v10 = vld [vmem:[#allocation2 + $0x4f8] sm:$0xff] }
 0x57f   : > { %v4688_v3 = vadd.f32 %v4585_v35, %v4496_v16 }
 0x580   : > { %4737 = vst.msk [vmem:[#allocation2 + $0x448] sm:$0xff] %vm1963_vm3, %v4673_v30  ;;  %v4518_v30 = vld [vmem:[#allocation2 + $0x570] sm:$0xff] }
 0x581   : > { %4752 = vst.msk [vmem:[#allocation2 + $0x4c0] sm:$0xff] %vm1963_vm3, %v4688_v3  ;;  %v4559_v45 = vpop.xlane.xlu0 %4558 }
 0x582   : > { %v4675_v50 = vadd.f32 %v4559_v45, %v4483_v63  ;;  %v4589_v37 = vpop.xlane.xlu1 %4588  ;;  %v4505_v45 = vld [vmem:[#allocation2 + $0x508] sm:$0xff] }
 0x583   : > { %v4690_v58 = vadd.f32 %v4589_v37, %v4498_v15 }
 0x584   : > { %4739 = vst.msk [vmem:[#allocation2 + $0x458] sm:$0xff] %vm1963_vm3, %v4675_v50  ;;  %v4520_v50 = vld [vmem:[#allocation2 + $0x580] sm:$0xff] }
 0x585   : > { %4754 = vst.msk [vmem:[#allocation2 + $0x4d0] sm:$0xff] %vm1963_vm3, %v4690_v58  ;;  %v4563_v28 = vpop.xlane.xlu0 %4562 }
 0x586   : > { %v4677_v12 = vadd.f32 %v4563_v28, %v4485_v20  ;;  %v4593_v0 = vpop.xlane.xlu1 %4592  ;;  %v4507_v28 = vld [vmem:[#allocation2 + $0x518] sm:$0xff] }
 0x587   : > { %v4692_v22 = vadd.f32 %v4593_v0, %v4500_v33 }
 0x588   : > { %4741 = vst.msk [vmem:[#allocation2 + $0x468] sm:$0xff] %vm1963_vm3, %v4677_v12  ;;  %v4522_v12 = vld [vmem:[#allocation2 + $0x590] sm:$0xff] }
 0x589   : > { %4756 = vst.msk [vmem:[#allocation2 + $0x4e0] sm:$0xff] %vm1963_vm3, %v4692_v22  ;;  %v4567_v2 = vpop.xlane.xlu0 %4566 }
 0x58a   : > { %v4679_v40 = vadd.f32 %v4567_v2, %v4487_v36  ;;  %v4597_v5 = vpop.xlane.xlu1 %4596  ;;  %v4509_v2 = vld [vmem:[#allocation2 + $0x528] sm:$0xff] }
 0x58b   : > { %v4694_v11 = vadd.f32 %v4597_v5, %v4502_v51 }
 0x58c   : > { %4743 = vst.msk [vmem:[#allocation2 + $0x478] sm:$0xff] %vm1963_vm3, %v4679_v40  ;;  %v4524_v40 = vld [vmem:[#allocation2 + $0x5a0] sm:$0xff] }
 0x58d   : > { %4758 = vst.msk [vmem:[#allocation2 + $0x4f0] sm:$0xff] %vm1963_vm3, %v4694_v11  ;;  %v4571_v38 = vpop.xlane.xlu0 %4570 }
 0x58e   : > { %v4681_v9 = vadd.f32 %v4571_v38, %v4489_v48  ;;  %v4601_v34 = vpop.xlane.xlu1 %4600  ;;  %v4511_v38 = vld [vmem:[#allocation2 + $0x538] sm:$0xff] }
 0x58f   : > { %v4696_v56 = vadd.f32 %v4601_v34, %v4504_v32 }
 0x590   : > { %4745 = vst.msk [vmem:[#allocation2 + $0x488] sm:$0xff] %vm1963_vm3, %v4681_v9  ;;  %v4526_v9 = vld [vmem:[#allocation2 + $0x5b0] sm:$0xff] }
 0x591   : > { %4760 = vst.msk [vmem:[#allocation2 + $0x500] sm:$0xff] %vm1963_vm3, %v4696_v56  ;;  %v4575_v13 = vpop.xlane.xlu0 %4574 }
 0x592   : > { %v4683_v25 = vadd.f32 %v4575_v13, %v4491_v44  ;;  %v4605_v43 = vpop.xlane.xlu1 %4604  ;;  %v4513_v13 = vld [vmem:[#allocation2 + $0x548] sm:$0xff] }
 0x593   : > { %v4698_v23 = vadd.f32 %v4605_v43, %v4506_v17 }
 0x594   : > { %4747 = vst.msk [vmem:[#allocation2 + $0x498] sm:$0xff] %vm1963_vm3, %v4683_v25  ;;  %v4528_v25 = vld [vmem:[#allocation2 + $0x5c0] sm:$0xff] }
 0x595   : > { %4762 = vst.msk [vmem:[#allocation2 + $0x510] sm:$0xff] %vm1963_vm3, %v4698_v23  ;;  %v4579_v27 = vpop.xlane.xlu0 %4578 }
 0x596   : > { %v4685_v18 = vadd.f32 %v4579_v27, %v4493_v6  ;;  %v4609_v7 = vpop.xlane.xlu1 %4608  ;;  %v4515_v27 = vld [vmem:[#allocation2 + $0x558] sm:$0xff] }
 0x597   : > { %v4700_v55 = vadd.f32 %v4609_v7, %v4508_v1 }
 0x598   : > { %4749 = vst.msk [vmem:[#allocation2 + $0x4a8] sm:$0xff] %vm1963_vm3, %v4685_v18  ;;  %v4530_v18 = vld [vmem:[#allocation2 + $0x5d0] sm:$0xff] }
 0x599   : > { %4764 = vst.msk [vmem:[#allocation2 + $0x520] sm:$0xff] %vm1963_vm3, %v4700_v55  ;;  %v4583_v24 = vpop.xlane.xlu0 %4582 }
 0x59a   : > { %v4687_v61 = vadd.f32 %v4583_v24, %v4495_v54  ;;  %v4613_v41 = vpop.xlane.xlu1 %4612  ;;  %v4517_v24 = vld [vmem:[#allocation2 + $0x568] sm:$0xff] }
 0x59b   : > { %v4702_v8 = vadd.f32 %v4613_v41, %v4510_v42 }
 0x59c   : > { %4751 = vst.msk [vmem:[#allocation2 + $0x4b8] sm:$0xff] %vm1963_vm3, %v4687_v61  ;;  %v4532_v61 = vld [vmem:[#allocation2 + $0x5e0] sm:$0xff] }
 0x59d   : > { %4766 = vst.msk [vmem:[#allocation2 + $0x530] sm:$0xff] %vm1963_vm3, %v4702_v8  ;;  %v4587_v59 = vpop.xlane.xlu0 %4586 }
 0x59e   : > { %v4689_v53 = vadd.f32 %v4587_v59, %v4497_v46  ;;  %v4617_v62 = vpop.xlane.xlu1 %4616  ;;  %v4519_v59 = vld [vmem:[#allocation2 + $0x578] sm:$0xff] }
 0x59f   : > { %v4704_v29 = vadd.f32 %v4617_v62, %v4512_v14 }
 0x5a0   : > { %4753 = vst.msk [vmem:[#allocation2 + $0x4c8] sm:$0xff] %vm1963_vm3, %v4689_v53  ;;  %v4534_v53 = vld [vmem:[#allocation2 + $0x5f0] sm:$0xff] }
 0x5a1   : > { %4768 = vst.msk [vmem:[#allocation2 + $0x540] sm:$0xff] %vm1963_vm3, %v4704_v29  ;;  %v4591_v57 = vpop.xlane.xlu0 %4590 }
 0x5a2   : > { %v4691_v4 = vadd.f32 %v4591_v57, %v4499_v26  ;;  %v4621_v47 = vpop.xlane.xlu1 %4620  ;;  %v4521_v57 = vld [vmem:[#allocation2 + $0x588] sm:$0xff] }
 0x5a3   : > { %v4706_v60 = vadd.f32 %v4621_v47, %v4514_v19 }
 0x5a4   : > { %4755 = vst.msk [vmem:[#allocation2 + $0x4d8] sm:$0xff] %vm1963_vm3, %v4691_v4 }
 0x5a5   : > { %4770 = vst.msk [vmem:[#allocation2 + $0x550] sm:$0xff] %vm1963_vm3, %v4706_v60  ;;  %v4595_v39 = vpop.xlane.xlu0 %4594  ;;  %v4523_v60 = vld [vmem:[#allocation2 + $0x598] sm:$0xff] }
 0x5a6   : > { %v4693_v31 = vadd.f32 %v4595_v39, %v4501_v52  ;;  %v4625_v49 = vpop.xlane.xlu1 %4624  ;;  %v4525_v39 = vld [vmem:[#allocation2 + $0x5a8] sm:$0xff] }
 0x5a7   : > { %v4708_v16 = vadd.f32 %v4625_v49, %v4516_v21 }
 0x5a8   : > { %4757 = vst.msk [vmem:[#allocation2 + $0x4e8] sm:$0xff] %vm1963_vm3, %v4693_v31 }
 0x5a9   : > { %4772 = vst.msk [vmem:[#allocation2 + $0x560] sm:$0xff] %vm1963_vm3, %v4708_v16  ;;  %v4599_v35 = vpop.xlane.xlu0 %4598  ;;  %v4527_v16 = vld [vmem:[#allocation2 + $0x5b8] sm:$0xff] }
 0x5aa   : > { %v4695_v3 = vadd.f32 %v4599_v35, %v4503_v10  ;;  %v4629_v63 = vpop.xlane.xlu1 %4628  ;;  %v4529_v35 = vld [vmem:[#allocation2 + $0x5c8] sm:$0xff] }
 0x5ab   : > { %v4710_v15 = vadd.f32 %v4629_v63, %v4518_v30 }
 0x5ac   : > { %4759 = vst.msk [vmem:[#allocation2 + $0x4f8] sm:$0xff] %vm1963_vm3, %v4695_v3 }
 0x5ad   : > { %4774 = vst.msk [vmem:[#allocation2 + $0x570] sm:$0xff] %vm1963_vm3, %v4710_v15  ;;  %v4603_v37 = vpop.xlane.xlu0 %4602  ;;  %v4531_v15 = vld [vmem:[#allocation2 + $0x5d8] sm:$0xff] }
 0x5ae   : > { %v4697_v58 = vadd.f32 %v4603_v37, %v4505_v45  ;;  %v4633_v20 = vpop.xlane.xlu1 %4632  ;;  %v4533_v37 = vld [vmem:[#allocation2 + $0x5e8] sm:$0xff] }
 0x5af   : > { %v4712_v33 = vadd.f32 %v4633_v20, %v4520_v50 }
 0x5b0   : > { %4761 = vst.msk [vmem:[#allocation2 + $0x508] sm:$0xff] %vm1963_vm3, %v4697_v58 }
 0x5b1   : > { %4776 = vst.msk [vmem:[#allocation2 + $0x580] sm:$0xff] %vm1963_vm3, %v4712_v33  ;;  %v4607_v0 = vpop.xlane.xlu0 %4606  ;;  %v4535_v33 = vld [vmem:[#allocation2 + $0x5f8] sm:$0xff] }
 0x5b2   : > { %v4699_v22 = vadd.f32 %v4607_v0, %v4507_v28  ;;  %v4637_v36 = vpop.xlane.xlu1 %4636 }
 0x5b3   : > { %v4714_v51 = vadd.f32 %v4637_v36, %v4522_v12 }
 0x5b4   : > { %4763 = vst.msk [vmem:[#allocation2 + $0x518] sm:$0xff] %vm1963_vm3, %v4699_v22 }
 0x5b5   : > { %4778 = vst.msk [vmem:[#allocation2 + $0x590] sm:$0xff] %vm1963_vm3, %v4714_v51  ;;  %v4611_v5 = vpop.xlane.xlu0 %4610 }
 0x5b6   : > { %v4701_v11 = vadd.f32 %v4611_v5, %v4509_v2  ;;  %v4641_v48 = vpop.xlane.xlu1 %4640 }
 0x5b7   : > { %v4716_v32 = vadd.f32 %v4641_v48, %v4524_v40 }
 0x5b8   : > { %4765 = vst.msk [vmem:[#allocation2 + $0x528] sm:$0xff] %vm1963_vm3, %v4701_v11 }
 0x5b9   : > { %4780 = vst.msk [vmem:[#allocation2 + $0x5a0] sm:$0xff] %vm1963_vm3, %v4716_v32  ;;  %v4615_v34 = vpop.xlane.xlu0 %4614 }
 0x5ba   : > { %v4703_v56 = vadd.f32 %v4615_v34, %v4511_v38  ;;  %v4645_v44 = vpop.xlane.xlu1 %4644 }
 0x5bb   : > { %v4718_v17 = vadd.f32 %v4645_v44, %v4526_v9 }
 0x5bc   : > { %4767 = vst.msk [vmem:[#allocation2 + $0x538] sm:$0xff] %vm1963_vm3, %v4703_v56 }
 0x5bd   : > { %4782 = vst.msk [vmem:[#allocation2 + $0x5b0] sm:$0xff] %vm1963_vm3, %v4718_v17  ;;  %v4619_v43 = vpop.xlane.xlu0 %4618 }
 0x5be   : > { %v4705_v23 = vadd.f32 %v4619_v43, %v4513_v13  ;;  %v4649_v6 = vpop.xlane.xlu1 %4648 }
 0x5bf   : > { %v4720_v1 = vadd.f32 %v4649_v6, %v4528_v25 }
 0x5c0   : > { %4769 = vst.msk [vmem:[#allocation2 + $0x548] sm:$0xff] %vm1963_vm3, %v4705_v23 }
 0x5c1   : > { %4784 = vst.msk [vmem:[#allocation2 + $0x5c0] sm:$0xff] %vm1963_vm3, %v4720_v1  ;;  %v4623_v7 = vpop.xlane.xlu0 %4622 }
 0x5c2   : > { %v4707_v55 = vadd.f32 %v4623_v7, %v4515_v27  ;;  %v4653_v54 = vpop.xlane.xlu1 %4652 }
 0x5c3   : > { %v4722_v42 = vadd.f32 %v4653_v54, %v4530_v18 }
 0x5c4   : > { %4771 = vst.msk [vmem:[#allocation2 + $0x558] sm:$0xff] %vm1963_vm3, %v4707_v55 }
 0x5c5   : > { %4786 = vst.msk [vmem:[#allocation2 + $0x5d0] sm:$0xff] %vm1963_vm3, %v4722_v42  ;;  %v4627_v41 = vpop.xlane.xlu0 %4626 }
 0x5c6   : > { %v4709_v8 = vadd.f32 %v4627_v41, %v4517_v24  ;;  %v4657_v46 = vpop.xlane.xlu1 %4656 }
 0x5c7   : > { %v4724_v14 = vadd.f32 %v4657_v46, %v4532_v61 }
 0x5c8   : > { %4773 = vst.msk [vmem:[#allocation2 + $0x568] sm:$0xff] %vm1963_vm3, %v4709_v8 }
 0x5c9   : > { %4788 = vst.msk [vmem:[#allocation2 + $0x5e0] sm:$0xff] %vm1963_vm3, %v4724_v14  ;;  %v4631_v62 = vpop.xlane.xlu0 %4630 }
 0x5ca   : > { %v4711_v29 = vadd.f32 %v4631_v62, %v4519_v59  ;;  %v4661_v26 = vpop.xlane.xlu1 %4660 }
 0x5cb   : > { %v4726_v19 = vadd.f32 %v4661_v26, %v4534_v53 }
 0x5cc   : > { %4775 = vst.msk [vmem:[#allocation2 + $0x578] sm:$0xff] %vm1963_vm3, %v4711_v29 }
 0x5cd   : > { %4790 = vst.msk [vmem:[#allocation2 + $0x5f0] sm:$0xff] %vm1963_vm3, %v4726_v19  ;;  %v4635_v4 = vpop.xlane.xlu0 %4634 }
 0x5ce   : > { %v4713_v47 = vadd.f32 %v4635_v4, %v4521_v57 }
 0x5d0   : > { %4777 = vst.msk [vmem:[#allocation2 + $0x588] sm:$0xff] %vm1963_vm3, %v4713_v47 }
 0x5d1   : > { %v4639_v52 = vpop.xlane.xlu0 %4638 }
 0x5d2   : > { %v4715_v21 = vadd.f32 %v4639_v52, %v4523_v60 }
 0x5d4   : > { %4779 = vst.msk [vmem:[#allocation2 + $0x598] sm:$0xff] %vm1963_vm3, %v4715_v21 }
 0x5d5   : > { %v4643_v31 = vpop.xlane.xlu0 %4642 }
 0x5d6   : > { %v4717_v49 = vadd.f32 %v4643_v31, %v4525_v39 }
 0x5d8   : > { %4781 = vst.msk [vmem:[#allocation2 + $0x5a8] sm:$0xff] %vm1963_vm3, %v4717_v49 }
 0x5d9   : > { %v4647_v10 = vpop.xlane.xlu0 %4646 }
 0x5da   : > { %v4719_v30 = vadd.f32 %v4647_v10, %v4527_v16 }
 0x5dc   : > { %4783 = vst.msk [vmem:[#allocation2 + $0x5b8] sm:$0xff] %vm1963_vm3, %v4719_v30 }
 0x5dd   : > { %v4651_v3 = vpop.xlane.xlu0 %4650 }
 0x5de   : > { %v4721_v63 = vadd.f32 %v4651_v3, %v4529_v35 }
 0x5e0   : > { %4785 = vst.msk [vmem:[#allocation2 + $0x5c8] sm:$0xff] %vm1963_vm3, %v4721_v63 }
 0x5e1   : > { %v4655_v45 = vpop.xlane.xlu0 %4654 }
 0x5e2   : > { %v4723_v50 = vadd.f32 %v4655_v45, %v4531_v15 }
 0x5e4   : > { %4787 = vst.msk [vmem:[#allocation2 + $0x5d8] sm:$0xff] %vm1963_vm3, %v4723_v50 }
 0x5e5   : > { %v4659_v58 = vpop.xlane.xlu0 %4658 }
 0x5e6   : > { %v4725_v20 = vadd.f32 %v4659_v58, %v4533_v37 }
 0x5e8   : > { %4789 = vst.msk [vmem:[#allocation2 + $0x5e8] sm:$0xff] %vm1963_vm3, %v4725_v20  ;;  %4795 = sbr.rel (%p5710_p7) target bundleno = 1616 (0x650), region = 76 }
 0x5e9   : > { %v4663_v28 = vpop.xlane.xlu0 %4662 }
 0x5ea   : > { %v4727_v12 = vadd.f32 %v4663_v28, %v4535_v33 }
 0x5ec   : > { %4791 = vst.msk [vmem:[#allocation2 + $0x5f8] sm:$0xff] %vm1963_vm3, %v4727_v12 }
 0x5ed   : > { %v4796_v0 = vld [vmem:[#allocation2] sm:$0xff]  ;;  %v4797_v22 = vld [vmem:[#allocation2 + $0x8] sm:$0xff]  ;;  %v4798_v36 = vld [vmem:[#allocation2 + $0x10] sm:$0xff] }
 0x5ee   : > { %v4988_v51 = vmul.f32 0.00390625, %v4796_v0  ;;  %v4989_v2 = vmul.f32 0.00390625, %v4797_v22  ;;  %v4990_v40 = vmul.f32 0.00390625, %v4798_v36  ;;  %v4799_v5 = vld [vmem:[#allocation2 + $0x18] sm:$0xff]  ;;  %v4800_v11 = vld [vmem:[#allocation2 + $0x20] sm:$0xff]  ;;  %v4801_v48 = vld [vmem:[#allocation2 + $0x28] sm:$0xff] }
 0x5ef   : > { %v4991_v32 = vmul.f32 0.00390625, %v4799_v5  ;;  %v4992_v38 = vmul.f32 0.00390625, %v4800_v11  ;;  %v4993_v9 = vmul.f32 0.00390625, %v4801_v48  ;;  %v4802_v34 = vld [vmem:[#allocation2 + $0x30] sm:$0xff]  ;;  %v4803_v56 = vld [vmem:[#allocation2 + $0x38] sm:$0xff]  ;;  %v4804_v44 = vld [vmem:[#allocation2 + $0x40] sm:$0xff] }
 0x5f0   : > { %5180 = vst.msk [vmem:[%s6556_s24] sm:$0xff] %vm1963_vm3, %v4988_v51  ;;  %5181 = vst.msk [vmem:[%s6556_s24 + $0x8] sm:$0xff] %vm1963_vm3, %v4989_v2  ;;  %v4994_v17 = vmul.f32 0.00390625, %v4802_v34  ;;  %v4995_v13 = vmul.f32 0.00390625, %v4803_v56  ;;  %v4996_v25 = vmul.f32 0.00390625, %v4804_v44  ;;  %v4805_v43 = vld [vmem:[#allocation2 + $0x48] sm:$0xff] }
 0x5f1   : > { %5182 = vst.msk [vmem:[%s6556_s24 + $0x10] sm:$0xff] %vm1963_vm3, %v4990_v40  ;;  %v4806_v23 = vld [vmem:[#allocation2 + $0x50] sm:$0xff]  ;;  %v4807_v6 = vld [vmem:[#allocation2 + $0x58] sm:$0xff]  ;;  %5183 = vst.msk [vmem:[%s6556_s24 + $0x18] sm:$0xff] %vm1963_vm3, %v4991_v32  ;;  %v4997_v1 = vmul.f32 0.00390625, %v4805_v43 }
 0x5f2   : > { %5184 = vst.msk [vmem:[%s6556_s24 + $0x20] sm:$0xff] %vm1963_vm3, %v4992_v38  ;;  %5185 = vst.msk [vmem:[%s6556_s24 + $0x28] sm:$0xff] %vm1963_vm3, %v4993_v9  ;;  %v4998_v27 = vmul.f32 0.00390625, %v4806_v23  ;;  %v4999_v18 = vmul.f32 0.00390625, %v4807_v6  ;;  %v4808_v7 = vld [vmem:[#allocation2 + $0x60] sm:$0xff]  ;;  %v4809_v55 = vld [vmem:[#allocation2 + $0x68] sm:$0xff] }
 0x5f3   : > { %v4810_v54 = vld [vmem:[#allocation2 + $0x70] sm:$0xff]  ;;  %5186 = vst.msk [vmem:[%s6556_s24 + $0x30] sm:$0xff] %vm1963_vm3, %v4994_v17  ;;  %5187 = vst.msk [vmem:[%s6556_s24 + $0x38] sm:$0xff] %vm1963_vm3, %v4995_v13  ;;  %v5000_v42 = vmul.f32 0.00390625, %v4808_v7  ;;  %v5001_v24 = vmul.f32 0.00390625, %v4809_v55  ;;  %v4811_v41 = vld [vmem:[#allocation2 + $0x78] sm:$0xff] }
 0x5f4   : > { %5188 = vst.msk [vmem:[%s6556_s24 + $0x40] sm:$0xff] %vm1963_vm3, %v4996_v25  ;;  %v5002_v61 = vmul.f32 0.00390625, %v4810_v54  ;;  %v4812_v8 = vld [vmem:[#allocation2 + $0x80] sm:$0xff]  ;;  %v4813_v46 = vld [vmem:[#allocation2 + $0x88] sm:$0xff]  ;;  %5189 = vst.msk [vmem:[%s6556_s24 + $0x48] sm:$0xff] %vm1963_vm3, %v4997_v1  ;;  %v5003_v14 = vmul.f32 0.00390625, %v4811_v41 }
 0x5f5   : > { %5190 = vst.msk [vmem:[%s6556_s24 + $0x50] sm:$0xff] %vm1963_vm3, %v4998_v27  ;;  %5191 = vst.msk [vmem:[%s6556_s24 + $0x58] sm:$0xff] %vm1963_vm3, %v4999_v18  ;;  %v5004_v59 = vmul.f32 0.00390625, %v4812_v8  ;;  %v5005_v53 = vmul.f32 0.00390625, %v4813_v46  ;;  %v4814_v62 = vld [vmem:[#allocation2 + $0x90] sm:$0xff]  ;;  %v4815_v29 = vld [vmem:[#allocation2 + $0x98] sm:$0xff] }
 0x5f6   : > { %v4816_v26 = vld [vmem:[#allocation2 + $0xa0] sm:$0xff]  ;;  %5192 = vst.msk [vmem:[%s6556_s24 + $0x60] sm:$0xff] %vm1963_vm3, %v5000_v42  ;;  %5193 = vst.msk [vmem:[%s6556_s24 + $0x68] sm:$0xff] %vm1963_vm3, %v5001_v24  ;;  %v5006_v19 = vmul.f32 0.00390625, %v4814_v62  ;;  %v5007_v57 = vmul.f32 0.00390625, %v4815_v29  ;;  %v4817_v47 = vld [vmem:[#allocation2 + $0xa8] sm:$0xff] }
 0x5f7   : > { %5194 = vst.msk [vmem:[%s6556_s24 + $0x70] sm:$0xff] %vm1963_vm3, %v5002_v61  ;;  %v5008_v4 = vmul.f32 0.00390625, %v4816_v26  ;;  %v4818_v60 = vld [vmem:[#allocation2 + $0xb0] sm:$0xff]  ;;  %v4819_v52 = vld [vmem:[#allocation2 + $0xb8] sm:$0xff]  ;;  %5195 = vst.msk [vmem:[%s6556_s24 + $0x78] sm:$0xff] %vm1963_vm3, %v5003_v14  ;;  %v5009_v21 = vmul.f32 0.00390625, %v4817_v47 }
 0x5f8   : > { %5196 = vst.msk [vmem:[%s6556_s24 + $0x80] sm:$0xff] %vm1963_vm3, %v5004_v59  ;;  %5197 = vst.msk [vmem:[%s6556_s24 + $0x88] sm:$0xff] %vm1963_vm3, %v5005_v53  ;;  %v5010_v39 = vmul.f32 0.00390625, %v4818_v60  ;;  %v5011_v31 = vmul.f32 0.00390625, %v4819_v52  ;;  %v4820_v49 = vld [vmem:[#allocation2 + $0xc0] sm:$0xff]  ;;  %v4821_v16 = vld [vmem:[#allocation2 + $0xc8] sm:$0xff] }
 0x5f9   : > { %v4822_v10 = vld [vmem:[#allocation2 + $0xd0] sm:$0xff]  ;;  %5198 = vst.msk [vmem:[%s6556_s24 + $0x90] sm:$0xff] %vm1963_vm3, %v5006_v19  ;;  %5199 = vst.msk [vmem:[%s6556_s24 + $0x98] sm:$0xff] %vm1963_vm3, %v5007_v57  ;;  %v5012_v30 = vmul.f32 0.00390625, %v4820_v49  ;;  %v5013_v35 = vmul.f32 0.00390625, %v4821_v16  ;;  %v4823_v63 = vld [vmem:[#allocation2 + $0xd8] sm:$0xff] }
 0x5fa   : > { %5200 = vst.msk [vmem:[%s6556_s24 + $0xa0] sm:$0xff] %vm1963_vm3, %v5008_v4  ;;  %v5014_v3 = vmul.f32 0.00390625, %v4822_v10  ;;  %v4824_v15 = vld [vmem:[#allocation2 + $0xe0] sm:$0xff]  ;;  %v4825_v45 = vld [vmem:[#allocation2 + $0xe8] sm:$0xff]  ;;  %5201 = vst.msk [vmem:[%s6556_s24 + $0xa8] sm:$0xff] %vm1963_vm3, %v5009_v21  ;;  %v5015_v50 = vmul.f32 0.00390625, %v4823_v63 }
 0x5fb   : > { %5202 = vst.msk [vmem:[%s6556_s24 + $0xb0] sm:$0xff] %vm1963_vm3, %v5010_v39  ;;  %5203 = vst.msk [vmem:[%s6556_s24 + $0xb8] sm:$0xff] %vm1963_vm3, %v5011_v31  ;;  %v5016_v37 = vmul.f32 0.00390625, %v4824_v15  ;;  %v5017_v58 = vmul.f32 0.00390625, %v4825_v45  ;;  %v4826_v20 = vld [vmem:[#allocation2 + $0xf0] sm:$0xff]  ;;  %v4827_v33 = vld [vmem:[#allocation2 + $0xf8] sm:$0xff] }
 0x5fc   : > { %v4828_v28 = vld [vmem:[#allocation2 + $0x100] sm:$0xff]  ;;  %5204 = vst.msk [vmem:[%s6556_s24 + $0xc0] sm:$0xff] %vm1963_vm3, %v5012_v30  ;;  %5205 = vst.msk [vmem:[%s6556_s24 + $0xc8] sm:$0xff] %vm1963_vm3, %v5013_v35  ;;  %v5018_v12 = vmul.f32 0.00390625, %v4826_v20  ;;  %v5019_v0 = vmul.f32 0.00390625, %v4827_v33  ;;  %v4829_v36 = vld [vmem:[#allocation2 + $0x108] sm:$0xff] }
 0x5fd   : > { %5206 = vst.msk [vmem:[%s6556_s24 + $0xd0] sm:$0xff] %vm1963_vm3, %v5014_v3  ;;  %v5020_v22 = vmul.f32 0.00390625, %v4828_v28  ;;  %v4830_v51 = vld [vmem:[#allocation2 + $0x110] sm:$0xff]  ;;  %v4831_v2 = vld [vmem:[#allocation2 + $0x118] sm:$0xff]  ;;  %5207 = vst.msk [vmem:[%s6556_s24 + $0xd8] sm:$0xff] %vm1963_vm3, %v5015_v50  ;;  %v5021_v40 = vmul.f32 0.00390625, %v4829_v36 }
 0x5fe   : > { %5208 = vst.msk [vmem:[%s6556_s24 + $0xe0] sm:$0xff] %vm1963_vm3, %v5016_v37  ;;  %5209 = vst.msk [vmem:[%s6556_s24 + $0xe8] sm:$0xff] %vm1963_vm3, %v5017_v58  ;;  %v5022_v5 = vmul.f32 0.00390625, %v4830_v51  ;;  %v5023_v11 = vmul.f32 0.00390625, %v4831_v2  ;;  %v4832_v48 = vld [vmem:[#allocation2 + $0x120] sm:$0xff]  ;;  %v4833_v32 = vld [vmem:[#allocation2 + $0x128] sm:$0xff] }
 0x5ff   : > { %v4834_v38 = vld [vmem:[#allocation2 + $0x130] sm:$0xff]  ;;  %5210 = vst.msk [vmem:[%s6556_s24 + $0xf0] sm:$0xff] %vm1963_vm3, %v5018_v12  ;;  %5211 = vst.msk [vmem:[%s6556_s24 + $0xf8] sm:$0xff] %vm1963_vm3, %v5019_v0  ;;  %v5024_v9 = vmul.f32 0.00390625, %v4832_v48  ;;  %v5025_v34 = vmul.f32 0.00390625, %v4833_v32  ;;  %v4835_v44 = vld [vmem:[#allocation2 + $0x138] sm:$0xff] }
 0x600   : > { %5212 = vst.msk [vmem:[%s6556_s24 + $0x100] sm:$0xff] %vm1963_vm3, %v5020_v22  ;;  %v5026_v56 = vmul.f32 0.00390625, %v4834_v38  ;;  %v4836_v17 = vld [vmem:[#allocation2 + $0x140] sm:$0xff]  ;;  %v4837_v13 = vld [vmem:[#allocation2 + $0x148] sm:$0xff]  ;;  %5213 = vst.msk [vmem:[%s6556_s24 + $0x108] sm:$0xff] %vm1963_vm3, %v5021_v40  ;;  %v5027_v25 = vmul.f32 0.00390625, %v4835_v44 }
 0x601   : > { %5214 = vst.msk [vmem:[%s6556_s24 + $0x110] sm:$0xff] %vm1963_vm3, %v5022_v5  ;;  %5215 = vst.msk [vmem:[%s6556_s24 + $0x118] sm:$0xff] %vm1963_vm3, %v5023_v11  ;;  %v5028_v43 = vmul.f32 0.00390625, %v4836_v17  ;;  %v5029_v23 = vmul.f32 0.00390625, %v4837_v13  ;;  %v4838_v6 = vld [vmem:[#allocation2 + $0x150] sm:$0xff]  ;;  %v4839_v1 = vld [vmem:[#allocation2 + $0x158] sm:$0xff] }
 0x602   : > { %v4840_v27 = vld [vmem:[#allocation2 + $0x160] sm:$0xff]  ;;  %5216 = vst.msk [vmem:[%s6556_s24 + $0x120] sm:$0xff] %vm1963_vm3, %v5024_v9  ;;  %5217 = vst.msk [vmem:[%s6556_s24 + $0x128] sm:$0xff] %vm1963_vm3, %v5025_v34  ;;  %v5030_v18 = vmul.f32 0.00390625, %v4838_v6  ;;  %v5031_v7 = vmul.f32 0.00390625, %v4839_v1  ;;  %v4841_v54 = vld [vmem:[#allocation2 + $0x168] sm:$0xff] }
 0x603   : > { %5218 = vst.msk [vmem:[%s6556_s24 + $0x130] sm:$0xff] %vm1963_vm3, %v5026_v56  ;;  %v5032_v55 = vmul.f32 0.00390625, %v4840_v27  ;;  %v4842_v42 = vld [vmem:[#allocation2 + $0x170] sm:$0xff]  ;;  %v4843_v24 = vld [vmem:[#allocation2 + $0x178] sm:$0xff]  ;;  %5219 = vst.msk [vmem:[%s6556_s24 + $0x138] sm:$0xff] %vm1963_vm3, %v5027_v25  ;;  %v5033_v61 = vmul.f32 0.00390625, %v4841_v54 }
 0x604   : > { %5220 = vst.msk [vmem:[%s6556_s24 + $0x140] sm:$0xff] %vm1963_vm3, %v5028_v43  ;;  %5221 = vst.msk [vmem:[%s6556_s24 + $0x148] sm:$0xff] %vm1963_vm3, %v5029_v23  ;;  %v5034_v41 = vmul.f32 0.00390625, %v4842_v42  ;;  %v5035_v8 = vmul.f32 0.00390625, %v4843_v24  ;;  %v4844_v46 = vld [vmem:[#allocation2 + $0x180] sm:$0xff]  ;;  %v4845_v14 = vld [vmem:[#allocation2 + $0x188] sm:$0xff] }
 0x605   : > { %v4846_v59 = vld [vmem:[#allocation2 + $0x190] sm:$0xff]  ;;  %5222 = vst.msk [vmem:[%s6556_s24 + $0x150] sm:$0xff] %vm1963_vm3, %v5030_v18  ;;  %5223 = vst.msk [vmem:[%s6556_s24 + $0x158] sm:$0xff] %vm1963_vm3, %v5031_v7  ;;  %v5036_v53 = vmul.f32 0.00390625, %v4844_v46  ;;  %v5037_v62 = vmul.f32 0.00390625, %v4845_v14  ;;  %v4847_v26 = vld [vmem:[#allocation2 + $0x198] sm:$0xff] }
 0x606   : > { %5224 = vst.msk [vmem:[%s6556_s24 + $0x160] sm:$0xff] %vm1963_vm3, %v5032_v55  ;;  %v5038_v29 = vmul.f32 0.00390625, %v4846_v59  ;;  %v4848_v19 = vld [vmem:[#allocation2 + $0x1a0] sm:$0xff]  ;;  %v4849_v57 = vld [vmem:[#allocation2 + $0x1a8] sm:$0xff]  ;;  %5225 = vst.msk [vmem:[%s6556_s24 + $0x168] sm:$0xff] %vm1963_vm3, %v5033_v61  ;;  %v5039_v4 = vmul.f32 0.00390625, %v4847_v26 }
 0x607   : > { %5226 = vst.msk [vmem:[%s6556_s24 + $0x170] sm:$0xff] %vm1963_vm3, %v5034_v41  ;;  %5227 = vst.msk [vmem:[%s6556_s24 + $0x178] sm:$0xff] %vm1963_vm3, %v5035_v8  ;;  %v5040_v47 = vmul.f32 0.00390625, %v4848_v19  ;;  %v5041_v60 = vmul.f32 0.00390625, %v4849_v57  ;;  %v4850_v52 = vld [vmem:[#allocation2 + $0x1b0] sm:$0xff]  ;;  %v4851_v21 = vld [vmem:[#allocation2 + $0x1b8] sm:$0xff] }
 0x608   : > { %v4852_v39 = vld [vmem:[#allocation2 + $0x1c0] sm:$0xff]  ;;  %5228 = vst.msk [vmem:[%s6556_s24 + $0x180] sm:$0xff] %vm1963_vm3, %v5036_v53  ;;  %5229 = vst.msk [vmem:[%s6556_s24 + $0x188] sm:$0xff] %vm1963_vm3, %v5037_v62  ;;  %v5042_v31 = vmul.f32 0.00390625, %v4850_v52  ;;  %v5043_v49 = vmul.f32 0.00390625, %v4851_v21  ;;  %v4853_v10 = vld [vmem:[#allocation2 + $0x1c8] sm:$0xff] }
 0x609   : > { %5230 = vst.msk [vmem:[%s6556_s24 + $0x190] sm:$0xff] %vm1963_vm3, %v5038_v29  ;;  %v5044_v16 = vmul.f32 0.00390625, %v4852_v39  ;;  %v4854_v30 = vld [vmem:[#allocation2 + $0x1d0] sm:$0xff]  ;;  %v4855_v35 = vld [vmem:[#allocation2 + $0x1d8] sm:$0xff]  ;;  %5231 = vst.msk [vmem:[%s6556_s24 + $0x198] sm:$0xff] %vm1963_vm3, %v5039_v4  ;;  %v5045_v3 = vmul.f32 0.00390625, %v4853_v10 }
 0x60a   : > { %5232 = vst.msk [vmem:[%s6556_s24 + $0x1a0] sm:$0xff] %vm1963_vm3, %v5040_v47  ;;  %5233 = vst.msk [vmem:[%s6556_s24 + $0x1a8] sm:$0xff] %vm1963_vm3, %v5041_v60  ;;  %v5046_v63 = vmul.f32 0.00390625, %v4854_v30  ;;  %v5047_v15 = vmul.f32 0.00390625, %v4855_v35  ;;  %v4856_v45 = vld [vmem:[#allocation2 + $0x1e0] sm:$0xff]  ;;  %v4857_v50 = vld [vmem:[#allocation2 + $0x1e8] sm:$0xff] }
 0x60b   : > { %v4858_v37 = vld [vmem:[#allocation2 + $0x1f0] sm:$0xff]  ;;  %5234 = vst.msk [vmem:[%s6556_s24 + $0x1b0] sm:$0xff] %vm1963_vm3, %v5042_v31  ;;  %5235 = vst.msk [vmem:[%s6556_s24 + $0x1b8] sm:$0xff] %vm1963_vm3, %v5043_v49  ;;  %v5048_v58 = vmul.f32 0.00390625, %v4856_v45  ;;  %v5049_v20 = vmul.f32 0.00390625, %v4857_v50  ;;  %v4859_v28 = vld [vmem:[#allocation2 + $0x1f8] sm:$0xff] }
 0x60c   : > { %5236 = vst.msk [vmem:[%s6556_s24 + $0x1c0] sm:$0xff] %vm1963_vm3, %v5044_v16  ;;  %v5050_v33 = vmul.f32 0.00390625, %v4858_v37  ;;  %v4860_v12 = vld [vmem:[#allocation2 + $0x200] sm:$0xff]  ;;  %v4861_v0 = vld [vmem:[#allocation2 + $0x208] sm:$0xff]  ;;  %5237 = vst.msk [vmem:[%s6556_s24 + $0x1c8] sm:$0xff] %vm1963_vm3, %v5045_v3  ;;  %v5051_v22 = vmul.f32 0.00390625, %v4859_v28 }
 0x60d   : > { %5238 = vst.msk [vmem:[%s6556_s24 + $0x1d0] sm:$0xff] %vm1963_vm3, %v5046_v63  ;;  %5239 = vst.msk [vmem:[%s6556_s24 + $0x1d8] sm:$0xff] %vm1963_vm3, %v5047_v15  ;;  %v5052_v36 = vmul.f32 0.00390625, %v4860_v12  ;;  %v5053_v51 = vmul.f32 0.00390625, %v4861_v0  ;;  %v4862_v2 = vld [vmem:[#allocation2 + $0x210] sm:$0xff]  ;;  %v4863_v40 = vld [vmem:[#allocation2 + $0x218] sm:$0xff] }
 0x60e   : > { %v4864_v5 = vld [vmem:[#allocation2 + $0x220] sm:$0xff]  ;;  %5240 = vst.msk [vmem:[%s6556_s24 + $0x1e0] sm:$0xff] %vm1963_vm3, %v5048_v58  ;;  %5241 = vst.msk [vmem:[%s6556_s24 + $0x1e8] sm:$0xff] %vm1963_vm3, %v5049_v20  ;;  %v5054_v11 = vmul.f32 0.00390625, %v4862_v2  ;;  %v5055_v48 = vmul.f32 0.00390625, %v4863_v40  ;;  %v4865_v38 = vld [vmem:[#allocation2 + $0x228] sm:$0xff] }
 0x60f   : > { %5242 = vst.msk [vmem:[%s6556_s24 + $0x1f0] sm:$0xff] %vm1963_vm3, %v5050_v33  ;;  %v5056_v32 = vmul.f32 0.00390625, %v4864_v5  ;;  %v4866_v9 = vld [vmem:[#allocation2 + $0x230] sm:$0xff]  ;;  %v4867_v34 = vld [vmem:[#allocation2 + $0x238] sm:$0xff]  ;;  %5243 = vst.msk [vmem:[%s6556_s24 + $0x1f8] sm:$0xff] %vm1963_vm3, %v5051_v22  ;;  %v5057_v56 = vmul.f32 0.00390625, %v4865_v38 }
 0x610   : > { %5244 = vst.msk [vmem:[%s6556_s24 + $0x200] sm:$0xff] %vm1963_vm3, %v5052_v36  ;;  %5245 = vst.msk [vmem:[%s6556_s24 + $0x208] sm:$0xff] %vm1963_vm3, %v5053_v51  ;;  %v5058_v44 = vmul.f32 0.00390625, %v4866_v9  ;;  %v5059_v17 = vmul.f32 0.00390625, %v4867_v34  ;;  %v4868_v13 = vld [vmem:[#allocation2 + $0x240] sm:$0xff]  ;;  %v4869_v25 = vld [vmem:[#allocation2 + $0x248] sm:$0xff] }
 0x611   : > { %v4870_v43 = vld [vmem:[#allocation2 + $0x250] sm:$0xff]  ;;  %5246 = vst.msk [vmem:[%s6556_s24 + $0x210] sm:$0xff] %vm1963_vm3, %v5054_v11  ;;  %5247 = vst.msk [vmem:[%s6556_s24 + $0x218] sm:$0xff] %vm1963_vm3, %v5055_v48  ;;  %v5060_v23 = vmul.f32 0.00390625, %v4868_v13  ;;  %v5061_v6 = vmul.f32 0.00390625, %v4869_v25  ;;  %v4871_v27 = vld [vmem:[#allocation2 + $0x258] sm:$0xff] }
 0x612   : > { %5248 = vst.msk [vmem:[%s6556_s24 + $0x220] sm:$0xff] %vm1963_vm3, %v5056_v32  ;;  %v5062_v1 = vmul.f32 0.00390625, %v4870_v43  ;;  %v4872_v18 = vld [vmem:[#allocation2 + $0x260] sm:$0xff]  ;;  %v4873_v7 = vld [vmem:[#allocation2 + $0x268] sm:$0xff]  ;;  %5249 = vst.msk [vmem:[%s6556_s24 + $0x228] sm:$0xff] %vm1963_vm3, %v5057_v56  ;;  %v5063_v55 = vmul.f32 0.00390625, %v4871_v27 }
 0x613   : > { %5250 = vst.msk [vmem:[%s6556_s24 + $0x230] sm:$0xff] %vm1963_vm3, %v5058_v44  ;;  %5251 = vst.msk [vmem:[%s6556_s24 + $0x238] sm:$0xff] %vm1963_vm3, %v5059_v17  ;;  %v5064_v54 = vmul.f32 0.00390625, %v4872_v18  ;;  %v5065_v42 = vmul.f32 0.00390625, %v4873_v7  ;;  %v4874_v24 = vld [vmem:[#allocation2 + $0x270] sm:$0xff]  ;;  %v4875_v61 = vld [vmem:[#allocation2 + $0x278] sm:$0xff] }
 0x614   : > { %v4876_v41 = vld [vmem:[#allocation2 + $0x280] sm:$0xff]  ;;  %5252 = vst.msk [vmem:[%s6556_s24 + $0x240] sm:$0xff] %vm1963_vm3, %v5060_v23  ;;  %5253 = vst.msk [vmem:[%s6556_s24 + $0x248] sm:$0xff] %vm1963_vm3, %v5061_v6  ;;  %v5066_v8 = vmul.f32 0.00390625, %v4874_v24  ;;  %v5067_v46 = vmul.f32 0.00390625, %v4875_v61  ;;  %v4877_v59 = vld [vmem:[#allocation2 + $0x288] sm:$0xff] }
 0x615   : > { %5254 = vst.msk [vmem:[%s6556_s24 + $0x250] sm:$0xff] %vm1963_vm3, %v5062_v1  ;;  %v5068_v14 = vmul.f32 0.00390625, %v4876_v41  ;;  %v4878_v53 = vld [vmem:[#allocation2 + $0x290] sm:$0xff]  ;;  %v4879_v62 = vld [vmem:[#allocation2 + $0x298] sm:$0xff]  ;;  %5255 = vst.msk [vmem:[%s6556_s24 + $0x258] sm:$0xff] %vm1963_vm3, %v5063_v55  ;;  %v5069_v29 = vmul.f32 0.00390625, %v4877_v59 }
 0x616   : > { %5256 = vst.msk [vmem:[%s6556_s24 + $0x260] sm:$0xff] %vm1963_vm3, %v5064_v54  ;;  %5257 = vst.msk [vmem:[%s6556_s24 + $0x268] sm:$0xff] %vm1963_vm3, %v5065_v42  ;;  %v5070_v26 = vmul.f32 0.00390625, %v4878_v53  ;;  %v5071_v19 = vmul.f32 0.00390625, %v4879_v62  ;;  %v4880_v57 = vld [vmem:[#allocation2 + $0x2a0] sm:$0xff]  ;;  %v4881_v4 = vld [vmem:[#allocation2 + $0x2a8] sm:$0xff] }
 0x617   : > { %v4882_v47 = vld [vmem:[#allocation2 + $0x2b0] sm:$0xff]  ;;  %5258 = vst.msk [vmem:[%s6556_s24 + $0x270] sm:$0xff] %vm1963_vm3, %v5066_v8  ;;  %5259 = vst.msk [vmem:[%s6556_s24 + $0x278] sm:$0xff] %vm1963_vm3, %v5067_v46  ;;  %v5072_v60 = vmul.f32 0.00390625, %v4880_v57  ;;  %v5073_v52 = vmul.f32 0.00390625, %v4881_v4  ;;  %v4883_v39 = vld [vmem:[#allocation2 + $0x2b8] sm:$0xff] }
 0x618   : > { %5260 = vst.msk [vmem:[%s6556_s24 + $0x280] sm:$0xff] %vm1963_vm3, %v5068_v14  ;;  %v5074_v21 = vmul.f32 0.00390625, %v4882_v47  ;;  %v4884_v31 = vld [vmem:[#allocation2 + $0x2c0] sm:$0xff]  ;;  %v4885_v49 = vld [vmem:[#allocation2 + $0x2c8] sm:$0xff]  ;;  %5261 = vst.msk [vmem:[%s6556_s24 + $0x288] sm:$0xff] %vm1963_vm3, %v5069_v29  ;;  %v5075_v16 = vmul.f32 0.00390625, %v4883_v39 }
 0x619   : > { %5262 = vst.msk [vmem:[%s6556_s24 + $0x290] sm:$0xff] %vm1963_vm3, %v5070_v26  ;;  %5263 = vst.msk [vmem:[%s6556_s24 + $0x298] sm:$0xff] %vm1963_vm3, %v5071_v19  ;;  %v5076_v10 = vmul.f32 0.00390625, %v4884_v31  ;;  %v5077_v30 = vmul.f32 0.00390625, %v4885_v49  ;;  %v4886_v35 = vld [vmem:[#allocation2 + $0x2d0] sm:$0xff]  ;;  %v4887_v3 = vld [vmem:[#allocation2 + $0x2d8] sm:$0xff] }
 0x61a   : > { %v4888_v63 = vld [vmem:[#allocation2 + $0x2e0] sm:$0xff]  ;;  %5264 = vst.msk [vmem:[%s6556_s24 + $0x2a0] sm:$0xff] %vm1963_vm3, %v5072_v60  ;;  %5265 = vst.msk [vmem:[%s6556_s24 + $0x2a8] sm:$0xff] %vm1963_vm3, %v5073_v52  ;;  %v5078_v15 = vmul.f32 0.00390625, %v4886_v35  ;;  %v5079_v45 = vmul.f32 0.00390625, %v4887_v3  ;;  %v4889_v37 = vld [vmem:[#allocation2 + $0x2e8] sm:$0xff] }
 0x61b   : > { %5266 = vst.msk [vmem:[%s6556_s24 + $0x2b0] sm:$0xff] %vm1963_vm3, %v5074_v21  ;;  %v5080_v50 = vmul.f32 0.00390625, %v4888_v63  ;;  %v4890_v58 = vld [vmem:[#allocation2 + $0x2f0] sm:$0xff]  ;;  %v4891_v20 = vld [vmem:[#allocation2 + $0x2f8] sm:$0xff]  ;;  %5267 = vst.msk [vmem:[%s6556_s24 + $0x2b8] sm:$0xff] %vm1963_vm3, %v5075_v16  ;;  %v5081_v33 = vmul.f32 0.00390625, %v4889_v37 }
 0x61c   : > { %5268 = vst.msk [vmem:[%s6556_s24 + $0x2c0] sm:$0xff] %vm1963_vm3, %v5076_v10  ;;  %5269 = vst.msk [vmem:[%s6556_s24 + $0x2c8] sm:$0xff] %vm1963_vm3, %v5077_v30  ;;  %v5082_v28 = vmul.f32 0.00390625, %v4890_v58  ;;  %v5083_v12 = vmul.f32 0.00390625, %v4891_v20  ;;  %v4892_v0 = vld [vmem:[#allocation2 + $0x300] sm:$0xff]  ;;  %v4893_v22 = vld [vmem:[#allocation2 + $0x308] sm:$0xff] }
 0x61d   : > { %v4894_v36 = vld [vmem:[#allocation2 + $0x310] sm:$0xff]  ;;  %5270 = vst.msk [vmem:[%s6556_s24 + $0x2d0] sm:$0xff] %vm1963_vm3, %v5078_v15  ;;  %5271 = vst.msk [vmem:[%s6556_s24 + $0x2d8] sm:$0xff] %vm1963_vm3, %v5079_v45  ;;  %v5084_v51 = vmul.f32 0.00390625, %v4892_v0  ;;  %v5085_v2 = vmul.f32 0.00390625, %v4893_v22  ;;  %v4895_v5 = vld [vmem:[#allocation2 + $0x318] sm:$0xff] }
 0x61e   : > { %5272 = vst.msk [vmem:[%s6556_s24 + $0x2e0] sm:$0xff] %vm1963_vm3, %v5080_v50  ;;  %v5086_v40 = vmul.f32 0.00390625, %v4894_v36  ;;  %v4896_v11 = vld [vmem:[#allocation2 + $0x320] sm:$0xff]  ;;  %v4897_v48 = vld [vmem:[#allocation2 + $0x328] sm:$0xff]  ;;  %5273 = vst.msk [vmem:[%s6556_s24 + $0x2e8] sm:$0xff] %vm1963_vm3, %v5081_v33  ;;  %v5087_v32 = vmul.f32 0.00390625, %v4895_v5 }
 0x61f   : > { %5274 = vst.msk [vmem:[%s6556_s24 + $0x2f0] sm:$0xff] %vm1963_vm3, %v5082_v28  ;;  %5275 = vst.msk [vmem:[%s6556_s24 + $0x2f8] sm:$0xff] %vm1963_vm3, %v5083_v12  ;;  %v5088_v38 = vmul.f32 0.00390625, %v4896_v11  ;;  %v5089_v9 = vmul.f32 0.00390625, %v4897_v48  ;;  %v4898_v34 = vld [vmem:[#allocation2 + $0x330] sm:$0xff]  ;;  %v4899_v56 = vld [vmem:[#allocation2 + $0x338] sm:$0xff] }
 0x620   : > { %v4900_v44 = vld [vmem:[#allocation2 + $0x340] sm:$0xff]  ;;  %5276 = vst.msk [vmem:[%s6556_s24 + $0x300] sm:$0xff] %vm1963_vm3, %v5084_v51  ;;  %5277 = vst.msk [vmem:[%s6556_s24 + $0x308] sm:$0xff] %vm1963_vm3, %v5085_v2  ;;  %v5090_v17 = vmul.f32 0.00390625, %v4898_v34  ;;  %v5091_v13 = vmul.f32 0.00390625, %v4899_v56  ;;  %v4901_v43 = vld [vmem:[#allocation2 + $0x348] sm:$0xff] }
 0x621   : > { %5278 = vst.msk [vmem:[%s6556_s24 + $0x310] sm:$0xff] %vm1963_vm3, %v5086_v40  ;;  %v5092_v25 = vmul.f32 0.00390625, %v4900_v44  ;;  %v4902_v23 = vld [vmem:[#allocation2 + $0x350] sm:$0xff]  ;;  %v4903_v6 = vld [vmem:[#allocation2 + $0x358] sm:$0xff]  ;;  %5279 = vst.msk [vmem:[%s6556_s24 + $0x318] sm:$0xff] %vm1963_vm3, %v5087_v32  ;;  %v5093_v1 = vmul.f32 0.00390625, %v4901_v43 }
 0x622   : > { %5280 = vst.msk [vmem:[%s6556_s24 + $0x320] sm:$0xff] %vm1963_vm3, %v5088_v38  ;;  %5281 = vst.msk [vmem:[%s6556_s24 + $0x328] sm:$0xff] %vm1963_vm3, %v5089_v9  ;;  %v5094_v27 = vmul.f32 0.00390625, %v4902_v23  ;;  %v5095_v18 = vmul.f32 0.00390625, %v4903_v6  ;;  %v4904_v7 = vld [vmem:[#allocation2 + $0x360] sm:$0xff]  ;;  %v4905_v55 = vld [vmem:[#allocation2 + $0x368] sm:$0xff] }
 0x623   : > { %v4906_v54 = vld [vmem:[#allocation2 + $0x370] sm:$0xff]  ;;  %5282 = vst.msk [vmem:[%s6556_s24 + $0x330] sm:$0xff] %vm1963_vm3, %v5090_v17  ;;  %5283 = vst.msk [vmem:[%s6556_s24 + $0x338] sm:$0xff] %vm1963_vm3, %v5091_v13  ;;  %v5096_v42 = vmul.f32 0.00390625, %v4904_v7  ;;  %v5097_v24 = vmul.f32 0.00390625, %v4905_v55  ;;  %v4907_v41 = vld [vmem:[#allocation2 + $0x378] sm:$0xff] }
 0x624   : > { %5284 = vst.msk [vmem:[%s6556_s24 + $0x340] sm:$0xff] %vm1963_vm3, %v5092_v25  ;;  %v5098_v61 = vmul.f32 0.00390625, %v4906_v54  ;;  %v4908_v8 = vld [vmem:[#allocation2 + $0x380] sm:$0xff]  ;;  %v4909_v46 = vld [vmem:[#allocation2 + $0x388] sm:$0xff]  ;;  %5285 = vst.msk [vmem:[%s6556_s24 + $0x348] sm:$0xff] %vm1963_vm3, %v5093_v1  ;;  %v5099_v14 = vmul.f32 0.00390625, %v4907_v41 }
 0x625   : > { %5286 = vst.msk [vmem:[%s6556_s24 + $0x350] sm:$0xff] %vm1963_vm3, %v5094_v27  ;;  %5287 = vst.msk [vmem:[%s6556_s24 + $0x358] sm:$0xff] %vm1963_vm3, %v5095_v18  ;;  %v5100_v59 = vmul.f32 0.00390625, %v4908_v8  ;;  %v5101_v53 = vmul.f32 0.00390625, %v4909_v46  ;;  %v4910_v62 = vld [vmem:[#allocation2 + $0x390] sm:$0xff]  ;;  %v4911_v29 = vld [vmem:[#allocation2 + $0x398] sm:$0xff] }
 0x626   : > { %v4912_v26 = vld [vmem:[#allocation2 + $0x3a0] sm:$0xff]  ;;  %5288 = vst.msk [vmem:[%s6556_s24 + $0x360] sm:$0xff] %vm1963_vm3, %v5096_v42  ;;  %5289 = vst.msk [vmem:[%s6556_s24 + $0x368] sm:$0xff] %vm1963_vm3, %v5097_v24  ;;  %v5102_v19 = vmul.f32 0.00390625, %v4910_v62  ;;  %v5103_v57 = vmul.f32 0.00390625, %v4911_v29  ;;  %v4913_v47 = vld [vmem:[#allocation2 + $0x3a8] sm:$0xff] }
 0x627   : > { %5290 = vst.msk [vmem:[%s6556_s24 + $0x370] sm:$0xff] %vm1963_vm3, %v5098_v61  ;;  %v5104_v4 = vmul.f32 0.00390625, %v4912_v26  ;;  %v4914_v60 = vld [vmem:[#allocation2 + $0x3b0] sm:$0xff]  ;;  %v4915_v52 = vld [vmem:[#allocation2 + $0x3b8] sm:$0xff]  ;;  %5291 = vst.msk [vmem:[%s6556_s24 + $0x378] sm:$0xff] %vm1963_vm3, %v5099_v14  ;;  %v5105_v21 = vmul.f32 0.00390625, %v4913_v47 }
 0x628   : > { %5292 = vst.msk [vmem:[%s6556_s24 + $0x380] sm:$0xff] %vm1963_vm3, %v5100_v59  ;;  %5293 = vst.msk [vmem:[%s6556_s24 + $0x388] sm:$0xff] %vm1963_vm3, %v5101_v53  ;;  %v5106_v39 = vmul.f32 0.00390625, %v4914_v60  ;;  %v5107_v31 = vmul.f32 0.00390625, %v4915_v52  ;;  %v4916_v49 = vld [vmem:[#allocation2 + $0x3c0] sm:$0xff]  ;;  %v4917_v16 = vld [vmem:[#allocation2 + $0x3c8] sm:$0xff] }
 0x629   : > { %v4918_v10 = vld [vmem:[#allocation2 + $0x3d0] sm:$0xff]  ;;  %5294 = vst.msk [vmem:[%s6556_s24 + $0x390] sm:$0xff] %vm1963_vm3, %v5102_v19  ;;  %5295 = vst.msk [vmem:[%s6556_s24 + $0x398] sm:$0xff] %vm1963_vm3, %v5103_v57  ;;  %v5108_v30 = vmul.f32 0.00390625, %v4916_v49  ;;  %v5109_v35 = vmul.f32 0.00390625, %v4917_v16  ;;  %v4919_v63 = vld [vmem:[#allocation2 + $0x3d8] sm:$0xff] }
 0x62a   : > { %5296 = vst.msk [vmem:[%s6556_s24 + $0x3a0] sm:$0xff] %vm1963_vm3, %v5104_v4  ;;  %v5110_v3 = vmul.f32 0.00390625, %v4918_v10  ;;  %v4920_v15 = vld [vmem:[#allocation2 + $0x3e0] sm:$0xff]  ;;  %v4921_v45 = vld [vmem:[#allocation2 + $0x3e8] sm:$0xff]  ;;  %5297 = vst.msk [vmem:[%s6556_s24 + $0x3a8] sm:$0xff] %vm1963_vm3, %v5105_v21  ;;  %v5111_v50 = vmul.f32 0.00390625, %v4919_v63 }
 0x62b   : > { %5298 = vst.msk [vmem:[%s6556_s24 + $0x3b0] sm:$0xff] %vm1963_vm3, %v5106_v39  ;;  %5299 = vst.msk [vmem:[%s6556_s24 + $0x3b8] sm:$0xff] %vm1963_vm3, %v5107_v31  ;;  %v5112_v37 = vmul.f32 0.00390625, %v4920_v15  ;;  %v5113_v58 = vmul.f32 0.00390625, %v4921_v45  ;;  %v4922_v20 = vld [vmem:[#allocation2 + $0x3f0] sm:$0xff]  ;;  %v4923_v33 = vld [vmem:[#allocation2 + $0x3f8] sm:$0xff] }
 0x62c   : > { %v4924_v28 = vld [vmem:[#allocation2 + $0x400] sm:$0xff]  ;;  %5300 = vst.msk [vmem:[%s6556_s24 + $0x3c0] sm:$0xff] %vm1963_vm3, %v5108_v30  ;;  %5301 = vst.msk [vmem:[%s6556_s24 + $0x3c8] sm:$0xff] %vm1963_vm3, %v5109_v35  ;;  %v5114_v12 = vmul.f32 0.00390625, %v4922_v20  ;;  %v5115_v0 = vmul.f32 0.00390625, %v4923_v33  ;;  %v4925_v36 = vld [vmem:[#allocation2 + $0x408] sm:$0xff] }
 0x62d   : > { %5302 = vst.msk [vmem:[%s6556_s24 + $0x3d0] sm:$0xff] %vm1963_vm3, %v5110_v3  ;;  %v5116_v22 = vmul.f32 0.00390625, %v4924_v28  ;;  %v4926_v51 = vld [vmem:[#allocation2 + $0x410] sm:$0xff]  ;;  %v4927_v2 = vld [vmem:[#allocation2 + $0x418] sm:$0xff]  ;;  %5303 = vst.msk [vmem:[%s6556_s24 + $0x3d8] sm:$0xff] %vm1963_vm3, %v5111_v50  ;;  %v5117_v40 = vmul.f32 0.00390625, %v4925_v36 }
 0x62e   : > { %5304 = vst.msk [vmem:[%s6556_s24 + $0x3e0] sm:$0xff] %vm1963_vm3, %v5112_v37  ;;  %5305 = vst.msk [vmem:[%s6556_s24 + $0x3e8] sm:$0xff] %vm1963_vm3, %v5113_v58  ;;  %v5118_v5 = vmul.f32 0.00390625, %v4926_v51  ;;  %v5119_v11 = vmul.f32 0.00390625, %v4927_v2  ;;  %v4928_v48 = vld [vmem:[#allocation2 + $0x420] sm:$0xff]  ;;  %v4929_v32 = vld [vmem:[#allocation2 + $0x428] sm:$0xff] }
 0x62f   : > { %v4930_v38 = vld [vmem:[#allocation2 + $0x430] sm:$0xff]  ;;  %5306 = vst.msk [vmem:[%s6556_s24 + $0x3f0] sm:$0xff] %vm1963_vm3, %v5114_v12  ;;  %5307 = vst.msk [vmem:[%s6556_s24 + $0x3f8] sm:$0xff] %vm1963_vm3, %v5115_v0  ;;  %v5120_v9 = vmul.f32 0.00390625, %v4928_v48  ;;  %v5121_v34 = vmul.f32 0.00390625, %v4929_v32  ;;  %v4931_v44 = vld [vmem:[#allocation2 + $0x438] sm:$0xff] }
 0x630   : > { %5308 = vst.msk [vmem:[%s6556_s24 + $0x400] sm:$0xff] %vm1963_vm3, %v5116_v22  ;;  %v5122_v56 = vmul.f32 0.00390625, %v4930_v38  ;;  %v4932_v17 = vld [vmem:[#allocation2 + $0x440] sm:$0xff]  ;;  %v4933_v13 = vld [vmem:[#allocation2 + $0x448] sm:$0xff]  ;;  %5309 = vst.msk [vmem:[%s6556_s24 + $0x408] sm:$0xff] %vm1963_vm3, %v5117_v40  ;;  %v5123_v25 = vmul.f32 0.00390625, %v4931_v44 }
 0x631   : > { %5310 = vst.msk [vmem:[%s6556_s24 + $0x410] sm:$0xff] %vm1963_vm3, %v5118_v5  ;;  %5311 = vst.msk [vmem:[%s6556_s24 + $0x418] sm:$0xff] %vm1963_vm3, %v5119_v11  ;;  %v5124_v43 = vmul.f32 0.00390625, %v4932_v17  ;;  %v5125_v23 = vmul.f32 0.00390625, %v4933_v13  ;;  %v4934_v6 = vld [vmem:[#allocation2 + $0x450] sm:$0xff]  ;;  %v4935_v1 = vld [vmem:[#allocation2 + $0x458] sm:$0xff] }
 0x632   : > { %v4936_v27 = vld [vmem:[#allocation2 + $0x460] sm:$0xff]  ;;  %5312 = vst.msk [vmem:[%s6556_s24 + $0x420] sm:$0xff] %vm1963_vm3, %v5120_v9  ;;  %5313 = vst.msk [vmem:[%s6556_s24 + $0x428] sm:$0xff] %vm1963_vm3, %v5121_v34  ;;  %v5126_v18 = vmul.f32 0.00390625, %v4934_v6  ;;  %v5127_v7 = vmul.f32 0.00390625, %v4935_v1  ;;  %v4937_v54 = vld [vmem:[#allocation2 + $0x468] sm:$0xff] }
 0x633   : > { %5314 = vst.msk [vmem:[%s6556_s24 + $0x430] sm:$0xff] %vm1963_vm3, %v5122_v56  ;;  %v5128_v55 = vmul.f32 0.00390625, %v4936_v27  ;;  %v4938_v42 = vld [vmem:[#allocation2 + $0x470] sm:$0xff]  ;;  %v4939_v24 = vld [vmem:[#allocation2 + $0x478] sm:$0xff]  ;;  %5315 = vst.msk [vmem:[%s6556_s24 + $0x438] sm:$0xff] %vm1963_vm3, %v5123_v25  ;;  %v5129_v61 = vmul.f32 0.00390625, %v4937_v54 }
 0x634   : > { %5316 = vst.msk [vmem:[%s6556_s24 + $0x440] sm:$0xff] %vm1963_vm3, %v5124_v43  ;;  %5317 = vst.msk [vmem:[%s6556_s24 + $0x448] sm:$0xff] %vm1963_vm3, %v5125_v23  ;;  %v5130_v41 = vmul.f32 0.00390625, %v4938_v42  ;;  %v5131_v8 = vmul.f32 0.00390625, %v4939_v24  ;;  %v4940_v46 = vld [vmem:[#allocation2 + $0x480] sm:$0xff]  ;;  %v4941_v14 = vld [vmem:[#allocation2 + $0x488] sm:$0xff] }
 0x635   : > { %v4942_v59 = vld [vmem:[#allocation2 + $0x490] sm:$0xff]  ;;  %5318 = vst.msk [vmem:[%s6556_s24 + $0x450] sm:$0xff] %vm1963_vm3, %v5126_v18  ;;  %5319 = vst.msk [vmem:[%s6556_s24 + $0x458] sm:$0xff] %vm1963_vm3, %v5127_v7  ;;  %v5132_v53 = vmul.f32 0.00390625, %v4940_v46  ;;  %v5133_v62 = vmul.f32 0.00390625, %v4941_v14  ;;  %v4943_v26 = vld [vmem:[#allocation2 + $0x498] sm:$0xff] }
 0x636   : > { %5320 = vst.msk [vmem:[%s6556_s24 + $0x460] sm:$0xff] %vm1963_vm3, %v5128_v55  ;;  %v5134_v29 = vmul.f32 0.00390625, %v4942_v59  ;;  %v4944_v19 = vld [vmem:[#allocation2 + $0x4a0] sm:$0xff]  ;;  %v4945_v57 = vld [vmem:[#allocation2 + $0x4a8] sm:$0xff]  ;;  %5321 = vst.msk [vmem:[%s6556_s24 + $0x468] sm:$0xff] %vm1963_vm3, %v5129_v61  ;;  %v5135_v4 = vmul.f32 0.00390625, %v4943_v26 }
 0x637   : > { %5322 = vst.msk [vmem:[%s6556_s24 + $0x470] sm:$0xff] %vm1963_vm3, %v5130_v41  ;;  %5323 = vst.msk [vmem:[%s6556_s24 + $0x478] sm:$0xff] %vm1963_vm3, %v5131_v8  ;;  %v5136_v47 = vmul.f32 0.00390625, %v4944_v19  ;;  %v5137_v60 = vmul.f32 0.00390625, %v4945_v57  ;;  %v4946_v52 = vld [vmem:[#allocation2 + $0x4b0] sm:$0xff]  ;;  %v4947_v21 = vld [vmem:[#allocation2 + $0x4b8] sm:$0xff] }
 0x638   : > { %v4948_v39 = vld [vmem:[#allocation2 + $0x4c0] sm:$0xff]  ;;  %5324 = vst.msk [vmem:[%s6556_s24 + $0x480] sm:$0xff] %vm1963_vm3, %v5132_v53  ;;  %5325 = vst.msk [vmem:[%s6556_s24 + $0x488] sm:$0xff] %vm1963_vm3, %v5133_v62  ;;  %v5138_v31 = vmul.f32 0.00390625, %v4946_v52  ;;  %v5139_v49 = vmul.f32 0.00390625, %v4947_v21  ;;  %v4949_v10 = vld [vmem:[#allocation2 + $0x4c8] sm:$0xff] }
 0x639   : > { %5326 = vst.msk [vmem:[%s6556_s24 + $0x490] sm:$0xff] %vm1963_vm3, %v5134_v29  ;;  %v5140_v16 = vmul.f32 0.00390625, %v4948_v39  ;;  %v4950_v30 = vld [vmem:[#allocation2 + $0x4d0] sm:$0xff]  ;;  %v4951_v35 = vld [vmem:[#allocation2 + $0x4d8] sm:$0xff]  ;;  %5327 = vst.msk [vmem:[%s6556_s24 + $0x498] sm:$0xff] %vm1963_vm3, %v5135_v4  ;;  %v5141_v3 = vmul.f32 0.00390625, %v4949_v10 }
 0x63a   : > { %5328 = vst.msk [vmem:[%s6556_s24 + $0x4a0] sm:$0xff] %vm1963_vm3, %v5136_v47  ;;  %5329 = vst.msk [vmem:[%s6556_s24 + $0x4a8] sm:$0xff] %vm1963_vm3, %v5137_v60  ;;  %v5142_v63 = vmul.f32 0.00390625, %v4950_v30  ;;  %v5143_v15 = vmul.f32 0.00390625, %v4951_v35  ;;  %v4952_v45 = vld [vmem:[#allocation2 + $0x4e0] sm:$0xff]  ;;  %v4953_v50 = vld [vmem:[#allocation2 + $0x4e8] sm:$0xff] }
 0x63b   : > { %v4954_v37 = vld [vmem:[#allocation2 + $0x4f0] sm:$0xff]  ;;  %5330 = vst.msk [vmem:[%s6556_s24 + $0x4b0] sm:$0xff] %vm1963_vm3, %v5138_v31  ;;  %5331 = vst.msk [vmem:[%s6556_s24 + $0x4b8] sm:$0xff] %vm1963_vm3, %v5139_v49  ;;  %v5144_v58 = vmul.f32 0.00390625, %v4952_v45  ;;  %v5145_v20 = vmul.f32 0.00390625, %v4953_v50  ;;  %v4955_v28 = vld [vmem:[#allocation2 + $0x4f8] sm:$0xff] }
 0x63c   : > { %5332 = vst.msk [vmem:[%s6556_s24 + $0x4c0] sm:$0xff] %vm1963_vm3, %v5140_v16  ;;  %v5146_v33 = vmul.f32 0.00390625, %v4954_v37  ;;  %v4956_v12 = vld [vmem:[#allocation2 + $0x500] sm:$0xff]  ;;  %v4957_v0 = vld [vmem:[#allocation2 + $0x508] sm:$0xff]  ;;  %5333 = vst.msk [vmem:[%s6556_s24 + $0x4c8] sm:$0xff] %vm1963_vm3, %v5141_v3  ;;  %v5147_v22 = vmul.f32 0.00390625, %v4955_v28 }
 0x63d   : > { %5334 = vst.msk [vmem:[%s6556_s24 + $0x4d0] sm:$0xff] %vm1963_vm3, %v5142_v63  ;;  %5335 = vst.msk [vmem:[%s6556_s24 + $0x4d8] sm:$0xff] %vm1963_vm3, %v5143_v15  ;;  %v5148_v36 = vmul.f32 0.00390625, %v4956_v12  ;;  %v5149_v51 = vmul.f32 0.00390625, %v4957_v0  ;;  %v4958_v2 = vld [vmem:[#allocation2 + $0x510] sm:$0xff]  ;;  %v4959_v40 = vld [vmem:[#allocation2 + $0x518] sm:$0xff] }
 0x63e   : > { %v4960_v5 = vld [vmem:[#allocation2 + $0x520] sm:$0xff]  ;;  %5336 = vst.msk [vmem:[%s6556_s24 + $0x4e0] sm:$0xff] %vm1963_vm3, %v5144_v58  ;;  %5337 = vst.msk [vmem:[%s6556_s24 + $0x4e8] sm:$0xff] %vm1963_vm3, %v5145_v20  ;;  %v5150_v11 = vmul.f32 0.00390625, %v4958_v2  ;;  %v5151_v48 = vmul.f32 0.00390625, %v4959_v40  ;;  %v4961_v38 = vld [vmem:[#allocation2 + $0x528] sm:$0xff] }
 0x63f   : > { %5338 = vst.msk [vmem:[%s6556_s24 + $0x4f0] sm:$0xff] %vm1963_vm3, %v5146_v33  ;;  %v5152_v32 = vmul.f32 0.00390625, %v4960_v5  ;;  %v4962_v9 = vld [vmem:[#allocation2 + $0x530] sm:$0xff]  ;;  %v4963_v34 = vld [vmem:[#allocation2 + $0x538] sm:$0xff]  ;;  %5339 = vst.msk [vmem:[%s6556_s24 + $0x4f8] sm:$0xff] %vm1963_vm3, %v5147_v22  ;;  %v5153_v56 = vmul.f32 0.00390625, %v4961_v38 }
 0x640   : > { %5340 = vst.msk [vmem:[%s6556_s24 + $0x500] sm:$0xff] %vm1963_vm3, %v5148_v36  ;;  %5341 = vst.msk [vmem:[%s6556_s24 + $0x508] sm:$0xff] %vm1963_vm3, %v5149_v51  ;;  %v5154_v44 = vmul.f32 0.00390625, %v4962_v9  ;;  %v5155_v17 = vmul.f32 0.00390625, %v4963_v34  ;;  %v4964_v13 = vld [vmem:[#allocation2 + $0x540] sm:$0xff]  ;;  %v4965_v25 = vld [vmem:[#allocation2 + $0x548] sm:$0xff] }
 0x641   : > { %v4966_v43 = vld [vmem:[#allocation2 + $0x550] sm:$0xff]  ;;  %5342 = vst.msk [vmem:[%s6556_s24 + $0x510] sm:$0xff] %vm1963_vm3, %v5150_v11  ;;  %5343 = vst.msk [vmem:[%s6556_s24 + $0x518] sm:$0xff] %vm1963_vm3, %v5151_v48  ;;  %v5156_v23 = vmul.f32 0.00390625, %v4964_v13  ;;  %v5157_v6 = vmul.f32 0.00390625, %v4965_v25  ;;  %v4967_v27 = vld [vmem:[#allocation2 + $0x558] sm:$0xff] }
 0x642   : > { %5344 = vst.msk [vmem:[%s6556_s24 + $0x520] sm:$0xff] %vm1963_vm3, %v5152_v32  ;;  %v5158_v1 = vmul.f32 0.00390625, %v4966_v43  ;;  %v4968_v18 = vld [vmem:[#allocation2 + $0x560] sm:$0xff]  ;;  %v4969_v7 = vld [vmem:[#allocation2 + $0x568] sm:$0xff]  ;;  %5345 = vst.msk [vmem:[%s6556_s24 + $0x528] sm:$0xff] %vm1963_vm3, %v5153_v56  ;;  %v5159_v55 = vmul.f32 0.00390625, %v4967_v27 }
 0x643   : > { %5346 = vst.msk [vmem:[%s6556_s24 + $0x530] sm:$0xff] %vm1963_vm3, %v5154_v44  ;;  %5347 = vst.msk [vmem:[%s6556_s24 + $0x538] sm:$0xff] %vm1963_vm3, %v5155_v17  ;;  %v5160_v54 = vmul.f32 0.00390625, %v4968_v18  ;;  %v5161_v42 = vmul.f32 0.00390625, %v4969_v7  ;;  %v4970_v24 = vld [vmem:[#allocation2 + $0x570] sm:$0xff]  ;;  %v4971_v61 = vld [vmem:[#allocation2 + $0x578] sm:$0xff] }
 0x644   : > { %v4972_v41 = vld [vmem:[#allocation2 + $0x580] sm:$0xff]  ;;  %5348 = vst.msk [vmem:[%s6556_s24 + $0x540] sm:$0xff] %vm1963_vm3, %v5156_v23  ;;  %5349 = vst.msk [vmem:[%s6556_s24 + $0x548] sm:$0xff] %vm1963_vm3, %v5157_v6  ;;  %v5162_v8 = vmul.f32 0.00390625, %v4970_v24  ;;  %v5163_v46 = vmul.f32 0.00390625, %v4971_v61  ;;  %v4973_v59 = vld [vmem:[#allocation2 + $0x588] sm:$0xff] }
 0x645   : > { %5350 = vst.msk [vmem:[%s6556_s24 + $0x550] sm:$0xff] %vm1963_vm3, %v5158_v1  ;;  %v5164_v14 = vmul.f32 0.00390625, %v4972_v41  ;;  %v4974_v53 = vld [vmem:[#allocation2 + $0x590] sm:$0xff]  ;;  %v4975_v62 = vld [vmem:[#allocation2 + $0x598] sm:$0xff]  ;;  %5351 = vst.msk [vmem:[%s6556_s24 + $0x558] sm:$0xff] %vm1963_vm3, %v5159_v55  ;;  %v5165_v29 = vmul.f32 0.00390625, %v4973_v59 }
 0x646   : > { %5352 = vst.msk [vmem:[%s6556_s24 + $0x560] sm:$0xff] %vm1963_vm3, %v5160_v54  ;;  %5353 = vst.msk [vmem:[%s6556_s24 + $0x568] sm:$0xff] %vm1963_vm3, %v5161_v42  ;;  %v5166_v26 = vmul.f32 0.00390625, %v4974_v53  ;;  %v5167_v19 = vmul.f32 0.00390625, %v4975_v62  ;;  %v4976_v57 = vld [vmem:[#allocation2 + $0x5a0] sm:$0xff]  ;;  %v4977_v4 = vld [vmem:[#allocation2 + $0x5a8] sm:$0xff] }
 0x647   : > { %v4978_v47 = vld [vmem:[#allocation2 + $0x5b0] sm:$0xff]  ;;  %5354 = vst.msk [vmem:[%s6556_s24 + $0x570] sm:$0xff] %vm1963_vm3, %v5162_v8  ;;  %5355 = vst.msk [vmem:[%s6556_s24 + $0x578] sm:$0xff] %vm1963_vm3, %v5163_v46  ;;  %v5168_v60 = vmul.f32 0.00390625, %v4976_v57  ;;  %v5169_v52 = vmul.f32 0.00390625, %v4977_v4  ;;  %v4979_v39 = vld [vmem:[#allocation2 + $0x5b8] sm:$0xff] }
 0x648   : > { %5356 = vst.msk [vmem:[%s6556_s24 + $0x580] sm:$0xff] %vm1963_vm3, %v5164_v14  ;;  %v5170_v21 = vmul.f32 0.00390625, %v4978_v47  ;;  %v4980_v31 = vld [vmem:[#allocation2 + $0x5c0] sm:$0xff]  ;;  %v4981_v49 = vld [vmem:[#allocation2 + $0x5c8] sm:$0xff]  ;;  %5357 = vst.msk [vmem:[%s6556_s24 + $0x588] sm:$0xff] %vm1963_vm3, %v5165_v29  ;;  %v5171_v16 = vmul.f32 0.00390625, %v4979_v39 }
 0x649   : > { %5358 = vst.msk [vmem:[%s6556_s24 + $0x590] sm:$0xff] %vm1963_vm3, %v5166_v26  ;;  %5359 = vst.msk [vmem:[%s6556_s24 + $0x598] sm:$0xff] %vm1963_vm3, %v5167_v19  ;;  %v5172_v10 = vmul.f32 0.00390625, %v4980_v31  ;;  %v5173_v30 = vmul.f32 0.00390625, %v4981_v49  ;;  %v4982_v35 = vld [vmem:[#allocation2 + $0x5d0] sm:$0xff]  ;;  %v4983_v3 = vld [vmem:[#allocation2 + $0x5d8] sm:$0xff] }
 0x64a   : > { %v4984_v63 = vld [vmem:[#allocation2 + $0x5e0] sm:$0xff]  ;;  %5360 = vst.msk [vmem:[%s6556_s24 + $0x5a0] sm:$0xff] %vm1963_vm3, %v5168_v60  ;;  %5361 = vst.msk [vmem:[%s6556_s24 + $0x5a8] sm:$0xff] %vm1963_vm3, %v5169_v52  ;;  %v5174_v15 = vmul.f32 0.00390625, %v4982_v35  ;;  %v5175_v45 = vmul.f32 0.00390625, %v4983_v3  ;;  %v4985_v37 = vld [vmem:[#allocation2 + $0x5e8] sm:$0xff] }
 0x64b   : > { %5362 = vst.msk [vmem:[%s6556_s24 + $0x5b0] sm:$0xff] %vm1963_vm3, %v5170_v21  ;;  %v5176_v50 = vmul.f32 0.00390625, %v4984_v63  ;;  %v4986_v58 = vld [vmem:[#allocation2 + $0x5f0] sm:$0xff]  ;;  %v4987_v20 = vld [vmem:[#allocation2 + $0x5f8] sm:$0xff]  ;;  %5363 = vst.msk [vmem:[%s6556_s24 + $0x5b8] sm:$0xff] %vm1963_vm3, %v5171_v16  ;;  %v5177_v33 = vmul.f32 0.00390625, %v4985_v37 }
 0x64c   : > { %5364 = vst.msk [vmem:[%s6556_s24 + $0x5c0] sm:$0xff] %vm1963_vm3, %v5172_v10  ;;  %5365 = vst.msk [vmem:[%s6556_s24 + $0x5c8] sm:$0xff] %vm1963_vm3, %v5173_v30  ;;  %v5178_v28 = vmul.f32 0.00390625, %v4986_v58  ;;  %v5179_v12 = vmul.f32 0.00390625, %v4987_v20 }
 0x64d   : > { %5366 = vst.msk [vmem:[%s6556_s24 + $0x5d0] sm:$0xff] %vm1963_vm3, %v5174_v15  ;;  %5367 = vst.msk [vmem:[%s6556_s24 + $0x5d8] sm:$0xff] %vm1963_vm3, %v5175_v45 }
 0x64e   : > { %5368 = vst.msk [vmem:[%s6556_s24 + $0x5e0] sm:$0xff] %vm1963_vm3, %v5176_v50  ;;  %5369 = vst.msk [vmem:[%s6556_s24 + $0x5e8] sm:$0xff] %vm1963_vm3, %v5177_v33 }
 0x64f   : > { %5370 = vst.msk [vmem:[%s6556_s24 + $0x5f0] sm:$0xff] %vm1963_vm3, %v5178_v28  ;;  %5371 = vst.msk [vmem:[%s6556_s24 + $0x5f8] sm:$0xff] %vm1963_vm3, %v5179_v12 }
 0x650 PF: > { %s25_s16 = sadd.s32 1, %s6352_s16   ;;  %s9111_s12 = sld [smem:[#allocation10_spill]] }
 0x651   : > { %p22_p8 = scmp.ge.s32.totalorder %s25_s16, 6   ;;  %s9112_s13 = sld [smem:[#allocation11_spill]] }
 0x652   : > { %s9113_s14 = sld [smem:[#allocation12_spill]]  ;;  %s9115_s30 = smov %s6328_s10 }
 0x653   : > { %s9114_s15 = sld [smem:[#allocation13_spill]]  ;;  %s9116_s10 = smov %s6332_s11 }
 0x654   : > { %s9117_s11 = smov %s6482_s29  ;;  %24 = sbr.rel (!%p22_p8) target bundleno = 11 (0xb), region = 128 }
 0x659   :  { %5393 = vsyncpa [#allocation4], 1 }
 0x65a   :  { %5395 = vsyncpa [#allocation4 + $0x1], 1 }
 0x65b   :  { %5396 = vsyncpa [#allocation6], 1 }
 0x65c   :  { %5398 = vsyncpa [#allocation6 + $0x1], 1 }

</bundles_post_ra>
